<compile_context>
chip_gen: v7x
topology: tpu7x:2x2x1
jax: 0.10.0
libtpu: 0.0.40
codegen_flags: <defaults>
</compile_context>

<pallas_src>
import math
import functools

import jax
import jax.numpy as jnp
from jax.experimental import pallas as pl
from jax.experimental.pallas import tpu as pltpu


# ----------------------------------------------------------------------------- #
# Fused encoder kernel: one grid step = (one block of N rows) x (one layer)
# ----------------------------------------------------------------------------- #
def fused_encoder_kernel(x_ref, pe_ref,
                         wqkv_ref, bqkv_ref, wo_ref, bo_ref,
                         g1_ref, be1_ref, w1_ref, bb1_ref, w2_ref, bb2_ref,
                         g2_ref, be2_ref,
                         o_ref, h_ref,
                         *, nhead, eps, emb_scale):
    layer = pl.program_id(1)
    nlayers = pl.num_programs(1)
    TN, L, D = x_ref.shape
    M = TN * L
    Dh = D // nhead

    # Layer 0: build the encoder input once (emb * sqrt(d_model) + PE, broadcast over L)
    # and keep it resident in VMEM scratch for all subsequent layers.
    @pl.when(layer == 0)
    def _():
        xe = x_ref[...] * emb_scale + pe_ref[...][:, None, :]
        h_ref[...] = xe.reshape(M, D)

    x = h_ref[...]                                    # [M, D] f32 activations
    xb = x.astype(jnp.bfloat16)

    # ---- self-attention: fused QKV projection (weights pre-transposed: [D, 3D]) ----
    qkv = jnp.dot(xb, wqkv_ref[...],
                  preferred_element_type=jnp.float32) + bqkv_ref[...]   # [M, 3D] f32
    q = qkv[:, 0 * D:1 * D].reshape(TN, L, D)
    k = qkv[:, 1 * D:2 * D].reshape(TN, L, D)
    v = qkv[:, 2 * D:3 * D].reshape(TN, L, D)

    sm_scale = 1.0 / math.sqrt(Dh)
    head_outs = []
    for h in range(nhead):                            # static, tiny loop; only the
        sl = slice(h * Dh, (h + 1) * Dh)              # scores/value mix is per-head
        qh = q[:, :, sl].astype(jnp.bfloat16)
        kh = k[:, :, sl].astype(jnp.bfloat16)
        vh = v[:, :, sl].astype(jnp.bfloat16)
        s = jnp.einsum('bqd,bkd->bqk', qh, kh,
                       preferred_element_type=jnp.float32) * sm_scale   # [TN, L, L]
        s = s - jnp.max(s, axis=-1, keepdims=True)
        p = jnp.exp(s)
        p = p * pl.reciprocal(jnp.sum(p, axis=-1, keepdims=True), approx=True)
        head_outs.append(jnp.einsum('bqk,bkd->bqd', p.astype(jnp.bfloat16), vh,
                                    preferred_element_type=jnp.float32))
    # concatenated heads -> ONE [M, D] @ [D, D] out-projection (wo pre-transposed)
    attn = jnp.concatenate(head_outs, axis=-1).reshape(M, D)
    attn = jnp.dot(attn.astype(jnp.bfloat16), wo_ref[...],
                   preferred_element_type=jnp.float32) + bo_ref[...]

    # ---- residual + LayerNorm 1 (post-norm, f32 statistics) ----
    y = x + attn
    mu = jnp.mean(y, axis=-1, keepdims=True)
    var = jnp.mean((y - mu) ** 2, axis=-1, keepdims=True)
    y = (y - mu) * jax.lax.rsqrt(var + eps) * g1_ref[...] + be1_ref[...]

    # ---- feed-forward: linear1 -> ReLU -> linear2 (weights pre-transposed) ----
    h1 = jnp.dot(y.astype(jnp.bfloat16), w1_ref[...],
                 preferred_element_type=jnp.float32) + bb1_ref[...]
    h1 = jnp.maximum(h1, 0.0)
    h2 = jnp.dot(h1.astype(jnp.bfloat16), w2_ref[...],
                 preferred_element_type=jnp.float32) + bb2_ref[...]

    # ---- residual + LayerNorm 2 ----
    z = y + h2
    mu2 = jnp.mean(z, axis=-1, keepdims=True)
    var2 = jnp.mean((z - mu2) ** 2, axis=-1, keepdims=True)
    z = (z - mu2) * jax.lax.rsqrt(var2 + eps) * g2_ref[...] + be2_ref[...]

    h_ref[...] = z                                    # stays resident for next layer

    @pl.when(layer == nlayers - 1)
    def _():
        o_ref[...] = z.reshape(TN, L, D)


# ----------------------------------------------------------------------------- #
# Wrapper: pack weights (stack per layer, pre-transpose, bf16 cast) + pallas_call
# ----------------------------------------------------------------------------- #
def pack_layer_params(layers):
    """layers: list of per-layer tuples
       (wqkv, bqkv, wo, bo, g1, be1, w1, bb1, w2, bb2, g2, be2)."""
    def stack(i):
        return jnp.stack([p[i] for p in layers])
    wqkv, bqkv, wo, bo = stack(0), stack(1), stack(2), stack(3)
    g1, be1, w1, bb1 = stack(4), stack(5), stack(6), stack(7)
    w2, bb2, g2, be2 = stack(8), stack(9), stack(10), stack(11)
    return dict(
        wqkv_t=jnp.swapaxes(wqkv, 1, 2).astype(jnp.bfloat16),  # [nl, D, 3D]
        bqkv=bqkv[:, None, :],                                  # [nl, 1, 3D] f32
        wo_t=jnp.swapaxes(wo, 1, 2).astype(jnp.bfloat16),       # [nl, D, D]
        bo=bo[:, None, :],
        g1=g1[:, None, :], be1=be1[:, None, :],
        w1_t=jnp.swapaxes(w1, 1, 2).astype(jnp.bfloat16),       # [nl, D, d_hid]
        bb1=bb1[:, None, :],
        w2_t=jnp.swapaxes(w2, 1, 2).astype(jnp.bfloat16),       # [nl, d_hid, D]
        bb2=bb2[:, None, :],
        g2=g2[:, None, :], be2=be2[:, None, :],
    )


def _pick_block_n(N):
    if N <= 128:
        return N
    for cand in (128, 64, 32, 16, 8, 4, 2):
        if N % cand == 0:
            return cand
    return 1


def transformer_encoder(emb, pe_s, packed, nhead, d_model, block_n=None, eps=1e-5):
    # emb: [N, L, D] f32 (raw token embeddings), pe_s: [N, D] f32 positional encoding
    N, L, D = emb.shape
    nlayers = packed["wqkv_t"].shape[0]
    if block_n is None:
        block_n = _pick_block_n(N)
    assert N % block_n == 0
    NB = N // block_n

    weight_order = ["wqkv_t", "bqkv", "wo_t", "bo", "g1", "be1",
                    "w1_t", "bb1", "w2_t", "bb2", "g2", "be2"]
    weights = [packed[k] for k in weight_order]

    def layer_spec(a):
        # per-layer [r, c] tile, streamed along the layer grid axis (double-buffered)
        return pl.BlockSpec((None, a.shape[1], a.shape[2]), lambda nb, l: (l, 0, 0))

    in_specs = ([pl.BlockSpec((block_n, L, D), lambda nb, l: (nb, 0, 0)),   # x resident over l
                 pl.BlockSpec((block_n, D), lambda nb, l: (nb, 0))]         # pe resident over l
                + [layer_spec(w) for w in weights])
    out_spec = pl.BlockSpec((block_n, L, D), lambda nb, l: (nb, 0, 0))      # resident over l

    kernel = functools.partial(fused_encoder_kernel, nhead=nhead, eps=eps,
                               emb_scale=math.sqrt(d_model))

    return pl.pallas_call(
        kernel,
        out_shape=jax.ShapeDtypeStruct((N, L, D), jnp.float32),
        grid=(NB, nlayers),
        in_specs=in_specs,
        out_specs=out_spec,
        scratch_shapes=[pltpu.VMEM((block_n * L, D), jnp.float32)],
        compiler_params=pltpu.CompilerParams(
            dimension_semantics=("parallel", "arbitrary")),
    )(emb, pe_s, *weights)


def transformer_forward(src, emb_w, pe, packed, d_model, nhead, block_n=None):
    # src: [seq_len, batch] int32 token ids
    S, B = src.shape
    # TODO(synk): token-id gather stays as JAX glue (jnp.take); a data-dependent
    # Pallas gather would need scalar-prefetch row DMA and is not worth it here.
    emb = jnp.take(emb_w, src, axis=0)            # [S, B, D] f32
    pe_s = pe[:S, 0, :]                            # [S, D] (broadcast over B in-kernel)
    # dropout(p=0.1) is identity in eval mode
    return transformer_encoder(emb, pe_s, packed, nhead, d_model, block_n=block_n)


# ----------------------------------------------------------------------------- #
# Parameter / buffer construction (deterministic, synthetic)
# ----------------------------------------------------------------------------- #
def make_pe(max_len, d_model):
    position = jnp.arange(max_len, dtype=jnp.float32)[:, None]
    div_term = jnp.exp(jnp.arange(0, d_model, 2, dtype=jnp.float32)
                       * (-math.log(10000.0) / d_model))
    pe = jnp.zeros((max_len, 1, d_model), jnp.float32)
    pe = pe.at[:, 0, 0::2].set(jnp.sin(position * div_term))
    pe = pe.at[:, 0, 1::2].set(jnp.cos(position * div_term))
    return pe


def init_params(key, ntoken, d_model, nhead, d_hid, nlayers):
    keys = jax.random.split(key, 1 + nlayers)
    std = math.sqrt(2.0 / (ntoken + d_model))          # xavier_normal_
    emb_w = jax.random.normal(keys[0], (ntoken, d_model), jnp.float32) * std
    layers = []
    for l in range(nlayers):
        ks = jax.random.split(keys[1 + l], 4)
        wqkv = jax.random.normal(ks[0], (3 * d_model, d_model), jnp.float32) / math.sqrt(d_model)
        bqkv = jnp.zeros((3 * d_model,), jnp.float32)
        wo = jax.random.normal(ks[1], (d_model, d_model), jnp.float32) / math.sqrt(d_model)
        bo = jnp.zeros((d_model,), jnp.float32)
        w1 = jax.random.normal(ks[2], (d_hid, d_model), jnp.float32) / math.sqrt(d_model)
        bb1 = jnp.zeros((d_hid,), jnp.float32)
        w2 = jax.random.normal(ks[3], (d_model, d_hid), jnp.float32) / math.sqrt(d_hid)
        bb2 = jnp.zeros((d_model,), jnp.float32)
        g1 = jnp.ones((d_model,), jnp.float32)
        be1 = jnp.zeros((d_model,), jnp.float32)
        g2 = jnp.ones((d_model,), jnp.float32)
        be2 = jnp.zeros((d_model,), jnp.float32)
        layers.append((wqkv, bqkv, wo, bo, g1, be1, w1, bb1, w2, bb2, g2, be2))
    return emb_w, layers


# ----------------------------------------------------------------------------- #
# pure-JAX f32 reference for correctness check
# ----------------------------------------------------------------------------- #
def ref_forward(src, emb_w, pe, layers, d_model, nhead, eps=1e-5):
    S, B = src.shape
    x = jnp.take(emb_w, src, axis=0) * math.sqrt(d_model) + pe[:S]
    for (wqkv, bqkv, wo, bo, g1, be1, w1, bb1, w2, bb2, g2, be2) in layers:
        N, L, D = x.shape
        Dh = D // nhead
        qkv = x @ wqkv.T + bqkv
        q, k, v = jnp.split(qkv, 3, axis=-1)
        q = q.reshape(N, L, nhead, Dh).transpose(0, 2, 1, 3)
        k = k.reshape(N, L, nhead, Dh).transpose(0, 2, 1, 3)
        v = v.reshape(N, L, nhead, Dh).transpose(0, 2, 1, 3)
        s = (q @ jnp.swapaxes(k, -1, -2)) / math.sqrt(Dh)
        p = jax.nn.softmax(s, axis=-1)
        o = (p @ v).transpose(0, 2, 1, 3).reshape(N, L, D)
        attn = o @ wo.T + bo
        y = x + attn
        y = (y - y.mean(-1, keepdims=True)) / jnp.sqrt(y.var(-1, keepdims=True) + eps) * g1 + be1
        ff = jnp.maximum(y @ w1.T + bb1, 0.0) @ w2.T + bb2
        z = y + ff
        z = (z - z.mean(-1, keepdims=True)) / jnp.sqrt(z.var(-1, keepdims=True) + eps) * g2 + be2
        x = z
    return x


if __name__ == "__main__":
    ntoken, d_model, nhead, d_hid, nlayers = 50, 32, 4, 64, 2
    seq_len, batch = 8, 2

    key = jax.random.PRNGKey(0)
    k_param, k_src = jax.random.split(key)
    emb_w, layers = init_params(k_param, ntoken, d_model, nhead, d_hid, nlayers)
    pe = make_pe(2048, d_model)
    src = jax.random.randint(k_src, (seq_len, batch), 0, ntoken, dtype=jnp.int32)

    packed = pack_layer_params(layers)
    out = transformer_forward(src, emb_w, pe, packed, d_model, nhead)
    out = jax.block_until_ready(out)
    assert out.shape == (seq_len, batch, d_model)

    ref = ref_forward(src, emb_w, pe, layers, d_model, nhead)
    # bf16 matmul operands + approx reciprocal -> relaxed tolerance vs the f32 reference
    assert jnp.allclose(out, ref, atol=5e-2, rtol=5e-2), "mismatch vs JAX reference"

    print("KERNEL_OK")
</pallas_src>

<mosaic_0001>
module attributes {stable_mosaic.version = 11 : i64} {
  func.func @fused_encoder_kernel(%arg0: i32, %arg1: i32, %arg2: memref<8x2x32xf32, #tpu.memory_space<vmem>>, %arg3: memref<8x32xf32, #tpu.memory_space<vmem>>, %arg4: memref<1x32x96xbf16, #tpu.memory_space<vmem>>, %arg5: memref<1x1x96xf32, #tpu.memory_space<vmem>>, %arg6: memref<1x32x32xbf16, #tpu.memory_space<vmem>>, %arg7: memref<1x1x32xf32, #tpu.memory_space<vmem>>, %arg8: memref<1x1x32xf32, #tpu.memory_space<vmem>>, %arg9: memref<1x1x32xf32, #tpu.memory_space<vmem>>, %arg10: memref<1x32x64xbf16, #tpu.memory_space<vmem>>, %arg11: memref<1x1x64xf32, #tpu.memory_space<vmem>>, %arg12: memref<1x64x32xbf16, #tpu.memory_space<vmem>>, %arg13: memref<1x1x32xf32, #tpu.memory_space<vmem>>, %arg14: memref<1x1x32xf32, #tpu.memory_space<vmem>>, %arg15: memref<1x1x32xf32, #tpu.memory_space<vmem>>, %arg16: memref<8x2x32xf32, #tpu.memory_space<vmem>>, %arg17: memref<16x32xf32, #tpu.memory_space<vmem>>) attributes {dimension_semantics = [#tpu.dimension_semantics<parallel>, #tpu.dimension_semantics<arbitrary>], iteration_bounds = array<i64: 1, 2>, scalar_prefetch = 0 : i64, scratch_operands = 1 : i64, tpu.core_type = #tpu.core_type<tc>, window_params = [{transform_indices = @transform_0, window_bounds = array<i64: 8, 2, 32>}, {transform_indices = @transform_1, window_bounds = array<i64: 8, 32>}, {transform_indices = @transform_2, window_bounds = array<i64: 1, 32, 96>}, {transform_indices = @transform_3, window_bounds = array<i64: 1, 1, 96>}, {transform_indices = @transform_4, window_bounds = array<i64: 1, 32, 32>}, {transform_indices = @transform_5, window_bounds = array<i64: 1, 1, 32>}, {transform_indices = @transform_6, window_bounds = array<i64: 1, 1, 32>}, {transform_indices = @transform_7, window_bounds = array<i64: 1, 1, 32>}, {transform_indices = @transform_8, window_bounds = array<i64: 1, 32, 64>}, {transform_indices = @transform_9, window_bounds = array<i64: 1, 1, 64>}, {transform_indices = @transform_10, window_bounds = array<i64: 1, 64, 32>}, {transform_indices = @transform_11, window_bounds = array<i64: 1, 1, 32>}, {transform_indices = @transform_12, window_bounds = array<i64: 1, 1, 32>}, {transform_indices = @transform_13, window_bounds = array<i64: 1, 1, 32>}, {transform_indices = @transform_14, window_bounds = array<i64: 8, 2, 32>}]} {
    %c0_i32 = arith.constant 0 : i32
    %0 = arith.cmpi eq, %arg1, %c0_i32 : i32
    %1 = arith.extui %0 : i1 to i32
    %c0_i32_0 = arith.constant 0 : i32
    %2 = arith.cmpi ne, %1, %c0_i32_0 : i32
    scf.if %2 {
      %c0_75 = arith.constant 0 : index
      %c0_76 = arith.constant 0 : index
      %c0_77 = arith.constant 0 : index
      %188 = vector.load %arg2[%c0_75, %c0_76, %c0_77] : memref<8x2x32xf32, #tpu.memory_space<vmem>>, vector<8x2x32xf32>
      %cst_78 = arith.constant 5.65685415 : f32
      %189 = vector.broadcast %cst_78 : f32 to vector<8x2x32xf32>
      %190 = arith.mulf %188, %189 : vector<8x2x32xf32>
      %c0_79 = arith.constant 0 : index
      %c0_80 = arith.constant 0 : index
      %191 = vector.load %arg3[%c0_79, %c0_80] : memref<8x32xf32, #tpu.memory_space<vmem>>, vector<8x32xf32>
      %192 = vector.shape_cast %191 : vector<8x32xf32> to vector<8x1x32xf32>
      %193 = vector.broadcast %192 : vector<8x1x32xf32> to vector<8x2x32xf32>
      %194 = arith.addf %190, %193 : vector<8x2x32xf32>
      %195 = vector.shape_cast %194 : vector<8x2x32xf32> to vector<16x32xf32>
      %c0_81 = arith.constant 0 : index
      %c0_82 = arith.constant 0 : index
      %196 = vector.load %arg17[%c0_81, %c0_82] : memref<16x32xf32, #tpu.memory_space<vmem>>, vector<16x32xf32>
      tpu.vector_store %arg17[%c0_81, %c0_82], %195 {strides = array<i32>} : memref<16x32xf32, #tpu.memory_space<vmem>>, vector<16x32xf32>,
    } else {
    }
    %c0 = arith.constant 0 : index
    %c0_1 = arith.constant 0 : index
    %3 = vector.load %arg17[%c0, %c0_1] : memref<16x32xf32, #tpu.memory_space<vmem>>, vector<16x32xf32>
    %4 = arith.truncf %3 : vector<16x32xf32> to vector<16x32xbf16>
    %c0_2 = arith.constant 0 : index
    %c0_3 = arith.constant 0 : index
    %c0_4 = arith.constant 0 : index
    %5 = vector.load %arg4[%c0_2, %c0_3, %c0_4] : memref<1x32x96xbf16, #tpu.memory_space<vmem>>, vector<1x32x96xbf16>
    %6 = vector.shape_cast %5 : vector<1x32x96xbf16> to vector<32x96xbf16>
    %cst = arith.constant dense<0.000000e+00> : vector<16x96xf32>
    %7 = tpu.matmul %4, %6, %cst {dimension_numbers = #tpu.dot_dimension_numbers<[1], [0], [0], [1], [0, 0, 1, 1], [], []>} : vector<16x32xbf16>, vector<32x96xbf16>, vector<16x96xf32> -> vector<16x96xf32>
    %c0_5 = arith.constant 0 : index
    %c0_6 = arith.constant 0 : index
    %c0_7 = arith.constant 0 : index
    %8 = vector.load %arg5[%c0_5, %c0_6, %c0_7] : memref<1x1x96xf32, #tpu.memory_space<vmem>>, vector<1x1x96xf32>
    %9 = vector.shape_cast %8 : vector<1x1x96xf32> to vector<1x96xf32>
    %10 = vector.broadcast %9 : vector<1x96xf32> to vector<16x96xf32>
    %11 = arith.addf %7, %10 : vector<16x96xf32>
    %12 = vector.extract_strided_slice %11 {offsets = [0, 0], sizes = [16, 32], strides = [1, 1]} : vector<16x96xf32> to vector<16x32xf32>
    %13 = vector.shape_cast %12 : vector<16x32xf32> to vector<8x2x32xf32>
    %14 = vector.extract_strided_slice %11 {offsets = [0, 32], sizes = [16, 32], strides = [1, 1]} : vector<16x96xf32> to vector<16x32xf32>
    %15 = vector.shape_cast %14 : vector<16x32xf32> to vector<8x2x32xf32>
    %16 = vector.extract_strided_slice %11 {offsets = [0, 64], sizes = [16, 32], strides = [1, 1]} : vector<16x96xf32> to vector<16x32xf32>
    %17 = vector.shape_cast %16 : vector<16x32xf32> to vector<8x2x32xf32>
    %18 = vector.extract_strided_slice %13 {offsets = [0, 0, 0], sizes = [8, 2, 8], strides = [1, 1, 1]} : vector<8x2x32xf32> to vector<8x2x8xf32>
    %19 = arith.truncf %18 : vector<8x2x8xf32> to vector<8x2x8xbf16>
    %20 = vector.extract_strided_slice %15 {offsets = [0, 0, 0], sizes = [8, 2, 8], strides = [1, 1, 1]} : vector<8x2x32xf32> to vector<8x2x8xf32>
    %21 = arith.truncf %20 : vector<8x2x8xf32> to vector<8x2x8xbf16>
    %22 = vector.extract_strided_slice %17 {offsets = [0, 0, 0], sizes = [8, 2, 8], strides = [1, 1, 1]} : vector<8x2x32xf32> to vector<8x2x8xf32>
    %23 = arith.truncf %22 : vector<8x2x8xf32> to vector<8x2x8xbf16>
    "tpu.trace_start"() <{level = 10 : i32, message = "bqd,bkd->bqk"}> : () -> ()
    %cst_8 = arith.constant dense<0.000000e+00> : vector<8x2x2xf32>
    %24 = tpu.matmul %19, %21, %cst_8 {dimension_numbers = #tpu.dot_dimension_numbers<[2], [2], [1], [1], [0, 0, 0, 1, 1, 1], [0], [0]>} : vector<8x2x8xbf16>, vector<8x2x8xbf16>, vector<8x2x2xf32> -> vector<8x2x2xf32>
    "tpu.trace_stop"() : () -> ()
    %cst_9 = arith.constant 0.353553385 : f32
    %25 = vector.broadcast %cst_9 : f32 to vector<8x2x2xf32>
    %26 = arith.mulf %24, %25 : vector<8x2x2xf32>
    %cst_10 = arith.constant dense<0xFF800000> : vector<8x2xf32>
    %27 = vector.multi_reduction <maximumf>, %26, %cst_10 [2] : vector<8x2x2xf32> to vector<8x2xf32>
    %28 = vector.shape_cast %27 : vector<8x2xf32> to vector<8x2x1xf32>
    %29 = vector.broadcast %28 : vector<8x2x1xf32> to vector<8x2x2xf32>
    %30 = arith.subf %26, %29 : vector<8x2x2xf32>
    %31 = math.exp %30 : vector<8x2x2xf32>
    %cst_11 = arith.constant dense<0.000000e+00> : vector<8x2xf32>
    %32 = vector.multi_reduction <add>, %31, %cst_11 [2] : vector<8x2x2xf32> to vector<8x2xf32>
    %33 = vector.shape_cast %32 : vector<8x2xf32> to vector<8x2x1xf32>
    %34 = tpu.reciprocal %33 {approx = true} : vector<8x2x1xf32> -> vector<8x2x1xf32>
    %35 = vector.broadcast %34 : vector<8x2x1xf32> to vector<8x2x2xf32>
    %36 = arith.mulf %31, %35 : vector<8x2x2xf32>
    %37 = arith.truncf %36 : vector<8x2x2xf32> to vector<8x2x2xbf16>
    "tpu.trace_start"() <{level = 10 : i32, message = "bqk,bkd->bqd"}> : () -> ()
    %cst_12 = arith.constant dense<0.000000e+00> : vector<8x2x8xf32>
    %38 = tpu.matmul %37, %23, %cst_12 {dimension_numbers = #tpu.dot_dimension_numbers<[2], [1], [1], [2], [0, 0, 0, 1, 1, 2], [0], [0]>} : vector<8x2x2xbf16>, vector<8x2x8xbf16>, vector<8x2x8xf32> -> vector<8x2x8xf32>
    "tpu.trace_stop"() : () -> ()
    %39 = vector.extract_strided_slice %13 {offsets = [0, 0, 8], sizes = [8, 2, 8], strides = [1, 1, 1]} : vector<8x2x32xf32> to vector<8x2x8xf32>
    %40 = arith.truncf %39 : vector<8x2x8xf32> to vector<8x2x8xbf16>
    %41 = vector.extract_strided_slice %15 {offsets = [0, 0, 8], sizes = [8, 2, 8], strides = [1, 1, 1]} : vector<8x2x32xf32> to vector<8x2x8xf32>
    %42 = arith.truncf %41 : vector<8x2x8xf32> to vector<8x2x8xbf16>
    %43 = vector.extract_strided_slice %17 {offsets = [0, 0, 8], sizes = [8, 2, 8], strides = [1, 1, 1]} : vector<8x2x32xf32> to vector<8x2x8xf32>
    %44 = arith.truncf %43 : vector<8x2x8xf32> to vector<8x2x8xbf16>
    "tpu.trace_start"() <{level = 10 : i32, message = "bqd,bkd->bqk"}> : () -> ()
    %cst_13 = arith.constant dense<0.000000e+00> : vector<8x2x2xf32>
    %45 = tpu.matmul %40, %42, %cst_13 {dimension_numbers = #tpu.dot_dimension_numbers<[2], [2], [1], [1], [0, 0, 0, 1, 1, 1], [0], [0]>} : vector<8x2x8xbf16>, vector<8x2x8xbf16>, vector<8x2x2xf32> -> vector<8x2x2xf32>
    "tpu.trace_stop"() : () -> ()
    %cst_14 = arith.constant 0.353553385 : f32
    %46 = vector.broadcast %cst_14 : f32 to vector<8x2x2xf32>
    %47 = arith.mulf %45, %46 : vector<8x2x2xf32>
    %cst_15 = arith.constant dense<0xFF800000> : vector<8x2xf32>
    %48 = vector.multi_reduction <maximumf>, %47, %cst_15 [2] : vector<8x2x2xf32> to vector<8x2xf32>
    %49 = vector.shape_cast %48 : vector<8x2xf32> to vector<8x2x1xf32>
    %50 = vector.broadcast %49 : vector<8x2x1xf32> to vector<8x2x2xf32>
    %51 = arith.subf %47, %50 : vector<8x2x2xf32>
    %52 = math.exp %51 : vector<8x2x2xf32>
    %cst_16 = arith.constant dense<0.000000e+00> : vector<8x2xf32>
    %53 = vector.multi_reduction <add>, %52, %cst_16 [2] : vector<8x2x2xf32> to vector<8x2xf32>
    %54 = vector.shape_cast %53 : vector<8x2xf32> to vector<8x2x1xf32>
    %55 = tpu.reciprocal %54 {approx = true} : vector<8x2x1xf32> -> vector<8x2x1xf32>
    %56 = vector.broadcast %55 : vector<8x2x1xf32> to vector<8x2x2xf32>
    %57 = arith.mulf %52, %56 : vector<8x2x2xf32>
    %58 = arith.truncf %57 : vector<8x2x2xf32> to vector<8x2x2xbf16>
    "tpu.trace_start"() <{level = 10 : i32, message = "bqk,bkd->bqd"}> : () -> ()
    %cst_17 = arith.constant dense<0.000000e+00> : vector<8x2x8xf32>
    %59 = tpu.matmul %58, %44, %cst_17 {dimension_numbers = #tpu.dot_dimension_numbers<[2], [1], [1], [2], [0, 0, 0, 1, 1, 2], [0], [0]>} : vector<8x2x2xbf16>, vector<8x2x8xbf16>, vector<8x2x8xf32> -> vector<8x2x8xf32>
    "tpu.trace_stop"() : () -> ()
    %60 = vector.extract_strided_slice %13 {offsets = [0, 0, 16], sizes = [8, 2, 8], strides = [1, 1, 1]} : vector<8x2x32xf32> to vector<8x2x8xf32>
    %61 = arith.truncf %60 : vector<8x2x8xf32> to vector<8x2x8xbf16>
    %62 = vector.extract_strided_slice %15 {offsets = [0, 0, 16], sizes = [8, 2, 8], strides = [1, 1, 1]} : vector<8x2x32xf32> to vector<8x2x8xf32>
    %63 = arith.truncf %62 : vector<8x2x8xf32> to vector<8x2x8xbf16>
    %64 = vector.extract_strided_slice %17 {offsets = [0, 0, 16], sizes = [8, 2, 8], strides = [1, 1, 1]} : vector<8x2x32xf32> to vector<8x2x8xf32>
    %65 = arith.truncf %64 : vector<8x2x8xf32> to vector<8x2x8xbf16>
    "tpu.trace_start"() <{level = 10 : i32, message = "bqd,bkd->bqk"}> : () -> ()
    %cst_18 = arith.constant dense<0.000000e+00> : vector<8x2x2xf32>
    %66 = tpu.matmul %61, %63, %cst_18 {dimension_numbers = #tpu.dot_dimension_numbers<[2], [2], [1], [1], [0, 0, 0, 1, 1, 1], [0], [0]>} : vector<8x2x8xbf16>, vector<8x2x8xbf16>, vector<8x2x2xf32> -> vector<8x2x2xf32>
    "tpu.trace_stop"() : () -> ()
    %cst_19 = arith.constant 0.353553385 : f32
    %67 = vector.broadcast %cst_19 : f32 to vector<8x2x2xf32>
    %68 = arith.mulf %66, %67 : vector<8x2x2xf32>
    %cst_20 = arith.constant dense<0xFF800000> : vector<8x2xf32>
    %69 = vector.multi_reduction <maximumf>, %68, %cst_20 [2] : vector<8x2x2xf32> to vector<8x2xf32>
    %70 = vector.shape_cast %69 : vector<8x2xf32> to vector<8x2x1xf32>
    %71 = vector.broadcast %70 : vector<8x2x1xf32> to vector<8x2x2xf32>
    %72 = arith.subf %68, %71 : vector<8x2x2xf32>
    %73 = math.exp %72 : vector<8x2x2xf32>
    %cst_21 = arith.constant dense<0.000000e+00> : vector<8x2xf32>
    %74 = vector.multi_reduction <add>, %73, %cst_21 [2] : vector<8x2x2xf32> to vector<8x2xf32>
    %75 = vector.shape_cast %74 : vector<8x2xf32> to vector<8x2x1xf32>
    %76 = tpu.reciprocal %75 {approx = true} : vector<8x2x1xf32> -> vector<8x2x1xf32>
    %77 = vector.broadcast %76 : vector<8x2x1xf32> to vector<8x2x2xf32>
    %78 = arith.mulf %73, %77 : vector<8x2x2xf32>
    %79 = arith.truncf %78 : vector<8x2x2xf32> to vector<8x2x2xbf16>
    "tpu.trace_start"() <{level = 10 : i32, message = "bqk,bkd->bqd"}> : () -> ()
    %cst_22 = arith.constant dense<0.000000e+00> : vector<8x2x8xf32>
    %80 = tpu.matmul %79, %65, %cst_22 {dimension_numbers = #tpu.dot_dimension_numbers<[2], [1], [1], [2], [0, 0, 0, 1, 1, 2], [0], [0]>} : vector<8x2x2xbf16>, vector<8x2x8xbf16>, vector<8x2x8xf32> -> vector<8x2x8xf32>
    "tpu.trace_stop"() : () -> ()
    %81 = vector.extract_strided_slice %13 {offsets = [0, 0, 24], sizes = [8, 2, 8], strides = [1, 1, 1]} : vector<8x2x32xf32> to vector<8x2x8xf32>
    %82 = arith.truncf %81 : vector<8x2x8xf32> to vector<8x2x8xbf16>
    %83 = vector.extract_strided_slice %15 {offsets = [0, 0, 24], sizes = [8, 2, 8], strides = [1, 1, 1]} : vector<8x2x32xf32> to vector<8x2x8xf32>
    %84 = arith.truncf %83 : vector<8x2x8xf32> to vector<8x2x8xbf16>
    %85 = vector.extract_strided_slice %17 {offsets = [0, 0, 24], sizes = [8, 2, 8], strides = [1, 1, 1]} : vector<8x2x32xf32> to vector<8x2x8xf32>
    %86 = arith.truncf %85 : vector<8x2x8xf32> to vector<8x2x8xbf16>
    "tpu.trace_start"() <{level = 10 : i32, message = "bqd,bkd->bqk"}> : () -> ()
    %cst_23 = arith.constant dense<0.000000e+00> : vector<8x2x2xf32>
    %87 = tpu.matmul %82, %84, %cst_23 {dimension_numbers = #tpu.dot_dimension_numbers<[2], [2], [1], [1], [0, 0, 0, 1, 1, 1], [0], [0]>} : vector<8x2x8xbf16>, vector<8x2x8xbf16>, vector<8x2x2xf32> -> vector<8x2x2xf32>
    "tpu.trace_stop"() : () -> ()
    %cst_24 = arith.constant 0.353553385 : f32
    %88 = vector.broadcast %cst_24 : f32 to vector<8x2x2xf32>
    %89 = arith.mulf %87, %88 : vector<8x2x2xf32>
    %cst_25 = arith.constant dense<0xFF800000> : vector<8x2xf32>
    %90 = vector.multi_reduction <maximumf>, %89, %cst_25 [2] : vector<8x2x2xf32> to vector<8x2xf32>
    %91 = vector.shape_cast %90 : vector<8x2xf32> to vector<8x2x1xf32>
    %92 = vector.broadcast %91 : vector<8x2x1xf32> to vector<8x2x2xf32>
    %93 = arith.subf %89, %92 : vector<8x2x2xf32>
    %94 = math.exp %93 : vector<8x2x2xf32>
    %cst_26 = arith.constant dense<0.000000e+00> : vector<8x2xf32>
    %95 = vector.multi_reduction <add>, %94, %cst_26 [2] : vector<8x2x2xf32> to vector<8x2xf32>
    %96 = vector.shape_cast %95 : vector<8x2xf32> to vector<8x2x1xf32>
    %97 = tpu.reciprocal %96 {approx = true} : vector<8x2x1xf32> -> vector<8x2x1xf32>
    %98 = vector.broadcast %97 : vector<8x2x1xf32> to vector<8x2x2xf32>
    %99 = arith.mulf %94, %98 : vector<8x2x2xf32>
    %100 = arith.truncf %99 : vector<8x2x2xf32> to vector<8x2x2xbf16>
    "tpu.trace_start"() <{level = 10 : i32, message = "bqk,bkd->bqd"}> : () -> ()
    %cst_27 = arith.constant dense<0.000000e+00> : vector<8x2x8xf32>
    %101 = tpu.matmul %100, %86, %cst_27 {dimension_numbers = #tpu.dot_dimension_numbers<[2], [1], [1], [2], [0, 0, 0, 1, 1, 2], [0], [0]>} : vector<8x2x2xbf16>, vector<8x2x8xbf16>, vector<8x2x8xf32> -> vector<8x2x8xf32>
    "tpu.trace_stop"() : () -> ()
    %102 = tpu.concatenate %38, %59, %80, %101 in 2 : vector<8x2x8xf32>, vector<8x2x8xf32>, vector<8x2x8xf32>, vector<8x2x8xf32> -> vector<8x2x32xf32>
    %103 = vector.shape_cast %102 : vector<8x2x32xf32> to vector<16x32xf32>
    %104 = arith.truncf %103 : vector<16x32xf32> to vector<16x32xbf16>
    %c0_28 = arith.constant 0 : index
    %c0_29 = arith.constant 0 : index
    %c0_30 = arith.constant 0 : index
    %105 = vector.load %arg6[%c0_28, %c0_29, %c0_30] : memref<1x32x32xbf16, #tpu.memory_space<vmem>>, vector<1x32x32xbf16>
    %106 = vector.shape_cast %105 : vector<1x32x32xbf16> to vector<32x32xbf16>
    %cst_31 = arith.constant dense<0.000000e+00> : vector<16x32xf32>
    %107 = tpu.matmul %104, %106, %cst_31 {dimension_numbers = #tpu.dot_dimension_numbers<[1], [0], [0], [1], [0, 0, 1, 1], [], []>} : vector<16x32xbf16>, vector<32x32xbf16>, vector<16x32xf32> -> vector<16x32xf32>
    %c0_32 = arith.constant 0 : index
    %c0_33 = arith.constant 0 : index
    %c0_34 = arith.constant 0 : index
    %108 = vector.load %arg7[%c0_32, %c0_33, %c0_34] : memref<1x1x32xf32, #tpu.memory_space<vmem>>, vector<1x1x32xf32>
    %109 = vector.shape_cast %108 : vector<1x1x32xf32> to vector<1x32xf32>
    %110 = vector.broadcast %109 : vector<1x32xf32> to vector<16x32xf32>
    %111 = arith.addf %107, %110 : vector<16x32xf32>
    %112 = arith.addf %3, %111 : vector<16x32xf32>
    %cst_35 = arith.constant dense<0.000000e+00> : vector<16xf32>
    %113 = vector.multi_reduction <add>, %112, %cst_35 [1] : vector<16x32xf32> to vector<16xf32>
    %114 = vector.shape_cast %113 : vector<16xf32> to vector<16x1xf32>
    %cst_36 = arith.constant 3.200000e+01 : f32
    %115 = vector.broadcast %cst_36 : f32 to vector<16x1xf32>
    %116 = arith.divf %114, %115 : vector<16x1xf32>
    %117 = vector.broadcast %116 : vector<16x1xf32> to vector<16x32xf32>
    %118 = arith.subf %112, %117 : vector<16x32xf32>
    %119 = arith.mulf %118, %118 : vector<16x32xf32>
    %cst_37 = arith.constant dense<0.000000e+00> : vector<16xf32>
    %120 = vector.multi_reduction <add>, %119, %cst_37 [1] : vector<16x32xf32> to vector<16xf32>
    %121 = vector.shape_cast %120 : vector<16xf32> to vector<16x1xf32>
    %cst_38 = arith.constant 3.200000e+01 : f32
    %122 = vector.broadcast %cst_38 : f32 to vector<16x1xf32>
    %123 = arith.divf %121, %122 : vector<16x1xf32>
    %124 = vector.broadcast %116 : vector<16x1xf32> to vector<16x32xf32>
    %125 = arith.subf %112, %124 : vector<16x32xf32>
    %cst_39 = arith.constant 9.99999974E-6 : f32
    %126 = vector.broadcast %cst_39 : f32 to vector<16x1xf32>
    %127 = arith.addf %123, %126 : vector<16x1xf32>
    %128 = math.rsqrt %127 : vector<16x1xf32>
    %129 = vector.broadcast %128 : vector<16x1xf32> to vector<16x32xf32>
    %130 = arith.mulf %125, %129 : vector<16x32xf32>
    %c0_40 = arith.constant 0 : index
    %c0_41 = arith.constant 0 : index
    %c0_42 = arith.constant 0 : index
    %131 = vector.load %arg8[%c0_40, %c0_41, %c0_42] : memref<1x1x32xf32, #tpu.memory_space<vmem>>, vector<1x1x32xf32>
    %132 = vector.shape_cast %131 : vector<1x1x32xf32> to vector<1x32xf32>
    %133 = vector.broadcast %132 : vector<1x32xf32> to vector<16x32xf32>
    %134 = arith.mulf %130, %133 : vector<16x32xf32>
    %c0_43 = arith.constant 0 : index
    %c0_44 = arith.constant 0 : index
    %c0_45 = arith.constant 0 : index
    %135 = vector.load %arg9[%c0_43, %c0_44, %c0_45] : memref<1x1x32xf32, #tpu.memory_space<vmem>>, vector<1x1x32xf32>
    %136 = vector.shape_cast %135 : vector<1x1x32xf32> to vector<1x32xf32>
    %137 = vector.broadcast %136 : vector<1x32xf32> to vector<16x32xf32>
    %138 = arith.addf %134, %137 : vector<16x32xf32>
    %139 = arith.truncf %138 : vector<16x32xf32> to vector<16x32xbf16>
    %c0_46 = arith.constant 0 : index
    %c0_47 = arith.constant 0 : index
    %c0_48 = arith.constant 0 : index
    %140 = vector.load %arg10[%c0_46, %c0_47, %c0_48] : memref<1x32x64xbf16, #tpu.memory_space<vmem>>, vector<1x32x64xbf16>
    %141 = vector.shape_cast %140 : vector<1x32x64xbf16> to vector<32x64xbf16>
    %cst_49 = arith.constant dense<0.000000e+00> : vector<16x64xf32>
    %142 = tpu.matmul %139, %141, %cst_49 {dimension_numbers = #tpu.dot_dimension_numbers<[1], [0], [0], [1], [0, 0, 1, 1], [], []>} : vector<16x32xbf16>, vector<32x64xbf16>, vector<16x64xf32> -> vector<16x64xf32>
    %c0_50 = arith.constant 0 : index
    %c0_51 = arith.constant 0 : index
    %c0_52 = arith.constant 0 : index
    %143 = vector.load %arg11[%c0_50, %c0_51, %c0_52] : memref<1x1x64xf32, #tpu.memory_space<vmem>>, vector<1x1x64xf32>
    %144 = vector.shape_cast %143 : vector<1x1x64xf32> to vector<1x64xf32>
    %145 = vector.broadcast %144 : vector<1x64xf32> to vector<16x64xf32>
    %146 = arith.addf %142, %145 : vector<16x64xf32>
    %cst_53 = arith.constant 0.000000e+00 : f32
    %147 = vector.broadcast %cst_53 : f32 to vector<16x64xf32>
    %148 = arith.maximumf %146, %147 : vector<16x64xf32>
    %149 = arith.truncf %148 : vector<16x64xf32> to vector<16x64xbf16>
    %c0_54 = arith.constant 0 : index
    %c0_55 = arith.constant 0 : index
    %c0_56 = arith.constant 0 : index
    %150 = vector.load %arg12[%c0_54, %c0_55, %c0_56] : memref<1x64x32xbf16, #tpu.memory_space<vmem>>, vector<1x64x32xbf16>
    %151 = vector.shape_cast %150 : vector<1x64x32xbf16> to vector<64x32xbf16>
    %cst_57 = arith.constant dense<0.000000e+00> : vector<16x32xf32>
    %152 = tpu.matmul %149, %151, %cst_57 {dimension_numbers = #tpu.dot_dimension_numbers<[1], [0], [0], [1], [0, 0, 1, 1], [], []>} : vector<16x64xbf16>, vector<64x32xbf16>, vector<16x32xf32> -> vector<16x32xf32>
    %c0_58 = arith.constant 0 : index
    %c0_59 = arith.constant 0 : index
    %c0_60 = arith.constant 0 : index
    %153 = vector.load %arg13[%c0_58, %c0_59, %c0_60] : memref<1x1x32xf32, #tpu.memory_space<vmem>>, vector<1x1x32xf32>
    %154 = vector.shape_cast %153 : vector<1x1x32xf32> to vector<1x32xf32>
    %155 = vector.broadcast %154 : vector<1x32xf32> to vector<16x32xf32>
    %156 = arith.addf %152, %155 : vector<16x32xf32>
    %157 = arith.addf %138, %156 : vector<16x32xf32>
    %cst_61 = arith.constant dense<0.000000e+00> : vector<16xf32>
    %158 = vector.multi_reduction <add>, %157, %cst_61 [1] : vector<16x32xf32> to vector<16xf32>
    %159 = vector.shape_cast %158 : vector<16xf32> to vector<16x1xf32>
    %cst_62 = arith.constant 3.200000e+01 : f32
    %160 = vector.broadcast %cst_62 : f32 to vector<16x1xf32>
    %161 = arith.divf %159, %160 : vector<16x1xf32>
    %162 = vector.broadcast %161 : vector<16x1xf32> to vector<16x32xf32>
    %163 = arith.subf %157, %162 : vector<16x32xf32>
    %164 = arith.mulf %163, %163 : vector<16x32xf32>
    %cst_63 = arith.constant dense<0.000000e+00> : vector<16xf32>
    %165 = vector.multi_reduction <add>, %164, %cst_63 [1] : vector<16x32xf32> to vector<16xf32>
    %166 = vector.shape_cast %165 : vector<16xf32> to vector<16x1xf32>
    %cst_64 = arith.constant 3.200000e+01 : f32
    %167 = vector.broadcast %cst_64 : f32 to vector<16x1xf32>
    %168 = arith.divf %166, %167 : vector<16x1xf32>
    %169 = vector.broadcast %161 : vector<16x1xf32> to vector<16x32xf32>
    %170 = arith.subf %157, %169 : vector<16x32xf32>
    %cst_65 = arith.constant 9.99999974E-6 : f32
    %171 = vector.broadcast %cst_65 : f32 to vector<16x1xf32>
    %172 = arith.addf %168, %171 : vector<16x1xf32>
    %173 = math.rsqrt %172 : vector<16x1xf32>
    %174 = vector.broadcast %173 : vector<16x1xf32> to vector<16x32xf32>
    %175 = arith.mulf %170, %174 : vector<16x32xf32>
    %c0_66 = arith.constant 0 : index
    %c0_67 = arith.constant 0 : index
    %c0_68 = arith.constant 0 : index
    %176 = vector.load %arg14[%c0_66, %c0_67, %c0_68] : memref<1x1x32xf32, #tpu.memory_space<vmem>>, vector<1x1x32xf32>
    %177 = vector.shape_cast %176 : vector<1x1x32xf32> to vector<1x32xf32>
    %178 = vector.broadcast %177 : vector<1x32xf32> to vector<16x32xf32>
    %179 = arith.mulf %175, %178 : vector<16x32xf32>
    %c0_69 = arith.constant 0 : index
    %c0_70 = arith.constant 0 : index
    %c0_71 = arith.constant 0 : index
    %180 = vector.load %arg15[%c0_69, %c0_70, %c0_71] : memref<1x1x32xf32, #tpu.memory_space<vmem>>, vector<1x1x32xf32>
    %181 = vector.shape_cast %180 : vector<1x1x32xf32> to vector<1x32xf32>
    %182 = vector.broadcast %181 : vector<1x32xf32> to vector<16x32xf32>
    %183 = arith.addf %179, %182 : vector<16x32xf32>
    %c0_72 = arith.constant 0 : index
    %c0_73 = arith.constant 0 : index
    %184 = vector.load %arg17[%c0_72, %c0_73] : memref<16x32xf32, #tpu.memory_space<vmem>>, vector<16x32xf32>
    tpu.vector_store %arg17[%c0_72, %c0_73], %183 {strides = array<i32>} : memref<16x32xf32, #tpu.memory_space<vmem>>, vector<16x32xf32>,
    %c1_i32 = arith.constant 1 : i32
    %185 = arith.cmpi eq, %arg1, %c1_i32 : i32
    %186 = arith.extui %185 : i1 to i32
    %c0_i32_74 = arith.constant 0 : i32
    %187 = arith.cmpi ne, %186, %c0_i32_74 : i32
    scf.if %187 {
      %188 = vector.shape_cast %183 : vector<16x32xf32> to vector<8x2x32xf32>
      %c0_75 = arith.constant 0 : index
      %c0_76 = arith.constant 0 : index
      %c0_77 = arith.constant 0 : index
      %189 = vector.load %arg16[%c0_75, %c0_76, %c0_77] : memref<8x2x32xf32, #tpu.memory_space<vmem>>, vector<8x2x32xf32>
      tpu.vector_store %arg16[%c0_75, %c0_76, %c0_77], %188 {strides = array<i32>} : memref<8x2x32xf32, #tpu.memory_space<vmem>>, vector<8x2x32xf32>,
    } else {
    }
    return
  }
  func.func @transform_0(%arg0: i32, %arg1: i32) -> (i32, i32, i32) {
    %c0_i32 = arith.constant 0 : i32
    %c0_i32_0 = arith.constant 0 : i32
    %c0_i32_1 = arith.constant 0 : i32
    return %arg0, %c0_i32, %c0_i32_0 : i32, i32, i32
  }
  func.func @transform_1(%arg0: i32, %arg1: i32) -> (i32, i32) {
    %c0_i32 = arith.constant 0 : i32
    %c0_i32_0 = arith.constant 0 : i32
    return %arg0, %c0_i32 : i32, i32
  }
  func.func @transform_2(%arg0: i32, %arg1: i32) -> (i32, i32, i32) {
    %c0_i32 = arith.constant 0 : i32
    %c0_i32_0 = arith.constant 0 : i32
    %c0_i32_1 = arith.constant 0 : i32
    return %arg1, %c0_i32, %c0_i32_0 : i32, i32, i32
  }
  func.func @transform_3(%arg0: i32, %arg1: i32) -> (i32, i32, i32) {
    %c0_i32 = arith.constant 0 : i32
    %c0_i32_0 = arith.constant 0 : i32
    %c0_i32_1 = arith.constant 0 : i32
    return %arg1, %c0_i32, %c0_i32_0 : i32, i32, i32
  }
  func.func @transform_4(%arg0: i32, %arg1: i32) -> (i32, i32, i32) {
    %c0_i32 = arith.constant 0 : i32
    %c0_i32_0 = arith.constant 0 : i32
    %c0_i32_1 = arith.constant 0 : i32
    return %arg1, %c0_i32, %c0_i32_0 : i32, i32, i32
  }
  func.func @transform_5(%arg0: i32, %arg1: i32) -> (i32, i32, i32) {
    %c0_i32 = arith.constant 0 : i32
    %c0_i32_0 = arith.constant 0 : i32
    %c0_i32_1 = arith.constant 0 : i32
    return %arg1, %c0_i32, %c0_i32_0 : i32, i32, i32
  }
  func.func @transform_6(%arg0: i32, %arg1: i32) -> (i32, i32, i32) {
    %c0_i32 = arith.constant 0 : i32
    %c0_i32_0 = arith.constant 0 : i32
    %c0_i32_1 = arith.constant 0 : i32
    return %arg1, %c0_i32, %c0_i32_0 : i32, i32, i32
  }
  func.func @transform_7(%arg0: i32, %arg1: i32) -> (i32, i32, i32) {
    %c0_i32 = arith.constant 0 : i32
    %c0_i32_0 = arith.constant 0 : i32
    %c0_i32_1 = arith.constant 0 : i32
    return %arg1, %c0_i32, %c0_i32_0 : i32, i32, i32
  }
  func.func @transform_8(%arg0: i32, %arg1: i32) -> (i32, i32, i32) {
    %c0_i32 = arith.constant 0 : i32
    %c0_i32_0 = arith.constant 0 : i32
    %c0_i32_1 = arith.constant 0 : i32
    return %arg1, %c0_i32, %c0_i32_0 : i32, i32, i32
  }
  func.func @transform_9(%arg0: i32, %arg1: i32) -> (i32, i32, i32) {
    %c0_i32 = arith.constant 0 : i32
    %c0_i32_0 = arith.constant 0 : i32
    %c0_i32_1 = arith.constant 0 : i32
    return %arg1, %c0_i32, %c0_i32_0 : i32, i32, i32
  }
  func.func @transform_10(%arg0: i32, %arg1: i32) -> (i32, i32, i32) {
    %c0_i32 = arith.constant 0 : i32
    %c0_i32_0 = arith.constant 0 : i32
    %c0_i32_1 = arith.constant 0 : i32
    return %arg1, %c0_i32, %c0_i32_0 : i32, i32, i32
  }
  func.func @transform_11(%arg0: i32, %arg1: i32) -> (i32, i32, i32) {
    %c0_i32 = arith.constant 0 : i32
    %c0_i32_0 = arith.constant 0 : i32
    %c0_i32_1 = arith.constant 0 : i32
    return %arg1, %c0_i32, %c0_i32_0 : i32, i32, i32
  }
  func.func @transform_12(%arg0: i32, %arg1: i32) -> (i32, i32, i32) {
    %c0_i32 = arith.constant 0 : i32
    %c0_i32_0 = arith.constant 0 : i32
    %c0_i32_1 = arith.constant 0 : i32
    return %arg1, %c0_i32, %c0_i32_0 : i32, i32, i32
  }
  func.func @transform_13(%arg0: i32, %arg1: i32) -> (i32, i32, i32) {
    %c0_i32 = arith.constant 0 : i32
    %c0_i32_0 = arith.constant 0 : i32
    %c0_i32_1 = arith.constant 0 : i32
    return %arg1, %c0_i32, %c0_i32_0 : i32, i32, i32
  }
  func.func @transform_14(%arg0: i32, %arg1: i32) -> (i32, i32, i32) {
    %c0_i32 = arith.constant 0 : i32
    %c0_i32_0 = arith.constant 0 : i32
    %c0_i32_1 = arith.constant 0 : i32
    return %arg0, %c0_i32, %c0_i32_0 : i32, i32, i32
  }
}

</mosaic_0001>

<bundles_post_ra>
// kernel: tpu_custom_call.1
= control target key start
LH: loop header
LB: loop body
LE: loop exit
PB: predicated region body
PF: predicated region fallthrough
CT: control target
= control target key end

     0   :  { %s7835_s0 = inlined_call_operand.hbm [shape: f32[8,2,32], index: 0, kind: input, shape index: {}]   ;;  %s7836_s1 = inlined_call_operand.hbm [shape: f32[8,32], index: 1, kind: input, shape index: {}]   ;;  %s7837_s2 = inlined_call_operand.vmem [shape: bf16[2,32,96], index: 2, kind: input, shape index: {}]   ;;  %s7838_s3 = inlined_call_operand.vmem [shape: f32[2,1,96], index: 3, kind: input, shape index: {}]   ;;  %s7839_s4 = inlined_call_operand.vmem [shape: bf16[2,32,32], index: 4, kind: input, shape index: {}]   ;;  %s7840_s5 = inlined_call_operand.vmem [shape: f32[2,1,32], index: 5, kind: input, shape index: {}]   ;;  %s7841_s6 = inlined_call_operand.hbm [shape: f32[2,1,32], index: 6, kind: input, shape index: {}]   ;;  %s7842_s7 = inlined_call_operand.hbm [shape: f32[2,1,32], index: 7, kind: input, shape index: {}]   ;;  %s7843_s8 = inlined_call_operand.vmem [shape: bf16[2,32,64], index: 8, kind: input, shape index: {}]   ;;  %s7844_s9 = inlined_call_operand.hbm [shape: f32[2,1,64], index: 9, kind: input, shape index: {}]   ;;  %s7845_s10 = inlined_call_operand.vmem [shape: bf16[2,64,32], index: 10, kind: input, shape index: {}]   ;;  %s7846_s11 = inlined_call_operand.vmem [shape: f32[2,1,32], index: 11, kind: input, shape index: {}]   ;;  %s7847_s12 = inlined_call_operand.vmem [shape: f32[2,1,32], index: 12, kind: input, shape index: {}]   ;;  %s7848_s13 = inlined_call_operand.vmem [shape: f32[2,1,32], index: 13, kind: input, shape index: {}]   ;;  %s7849_s14 = inlined_call_operand.hbm [shape: f32[8,2,32], index: 14, kind: output, shape index: {}]  }
   0x1   :  { %7864 = sst [smem:[#allocation21_spill]] %s7835_s0 }
   0x2   :  { %7865 = sst [smem:[#allocation22_spill]] %s7836_s1 }
   0x3   :  { %7866 = sst [smem:[#allocation23_spill]] %s7837_s2 }
   0x4   :  { %7867 = sst [smem:[#allocation24_spill]] %s7839_s4 }
   0x5   :  { %7868 = sst [smem:[#allocation25_spill]] %s7841_s6 }
   0x6   :  { %7869 = sst [smem:[#allocation26_spill]] %s7842_s7 }
   0x7   :  { %7870 = sst [smem:[#allocation27_spill]] %s7843_s8 }
   0x8   :  { %7871 = sst [smem:[#allocation28_spill]] %s7845_s10 }
   0x9   :  { %7872 = sst [smem:[#allocation29_spill]] %s7846_s11 }
   0xa   :  { %7873 = sst [smem:[#allocation30_spill]] %s7847_s12 }
   0xb   :  { %7874 = sst [smem:[#allocation31_spill]] %s7848_s13 }
   0xc   :  { %7875 = sst [smem:[#allocation32_spill]] %s7849_s14 }
   0xd   :  { %19 = vsyncpa [#allocation4], 0 }
   0xe   :  { %20 = vsyncpa [#allocation7], 0 }
   0xf   :  { %21 = vsyncpa [#allocation5], 0  ;;  %s6619_s29 = smov 0   ;;  %s6621_s30 = smov 0  }
  0x10   :  { %s6623_s15 = smov 0   ;;  %s6625_s16 = smov 0  }
  0x11   :  { %s6627_s17 = smov 0   ;;  %s6629_s18 = smov 0  }
  0x12 LB: > { %7876 = sst [smem:[#allocation16_spill]] %s6501_s15  ;;  %s6648_s19 = sadd.s32 4294967295, %s6513_s18   ;;  %s6513_s18 = sphi %s6629_s18, %s27_s18   ;;  %s6509_s17 = sphi %s6627_s17, %s7919_s17   ;;  %s6505_s16 = sphi %s6625_s16, %s7918_s16   ;;  %s6501_s15 = sphi %s6623_s15, %s7917_s15   ;;  %s6497_s30 = sphi %s6621_s30, %s7921_s30   ;;  %s6493_s29 = sphi %s6619_s29, %s7920_s29  }
  0x13   : > { %7877 = sst [smem:[#allocation17_spill]] %s6509_s17  ;;  %p215_p0 = scmp.ne.s32.totalorder %s6497_s30, %s6493_s29 }
  0x14   : > { %7878 = sst [smem:[#allocation18_spill]] %s6513_s18  ;;  %p7851_p1 = scmp.eq.s32.totalorder %s6648_s19, 0 }
  0x15   : > { %p5339_p2 = scmp.ge.s32.totalorder %s6513_s18, 1  ;;  %p434_p3 = scmp.lt.s32.totalorder %s6513_s18, 3 }
  0x16   : > { %p6656_p4 = por %p7851_p1, %p215_p0  ;;  %s6515_s22 = smov [#allocation3]  }
  0x17   : > { %p6660_p5 = pnand %p5339_p2, %p434_p3  ;;  %s449_s23 = sshll.u32 %s6515_s22, 4  ;;  %s450_s23 = int_to_ptr.vmem [resolvable:$true] %s449_s23 }
  0x18   : > { %s7879_s20 = scalar_select %p6656_p4, 1, 0 }
  0x19   : > { %s7880_s21 = scalar_select %p6660_p5, 1, 0 }
  0x1a   : > { %p6033_p6 = pneg %p6660_p5  ;;  %s36_s25 = sadd.s32 1, %s6509_s17 }
  0x1b   : > { %s7882_s0 = sld [smem:[#allocation21_spill]] }
  0x1c   : > { %p6668_p7 = pnand %p6033_p6, %p7851_p1 }
  0x1e   : > { %s7881_s24 = scalar_select %p6668_p7, 1, 0 }
  0x1f   : > { %p7858_p9 = pneg %p6668_p7 }
  0x21   : > { %s6279_s28 = scalar_lea.hbm %s7882_s0, 256 }
  0x22   : > { %p6280_p8 = scmp.ne.s32.totalorder %s7882_s0, %s6279_s28  ;;  %p6286_p12 = scmp.lt.u32.totalorder %s6279_s28, %s7882_s0 }
  0x24   : > { %p6282_p10 = pnand %p7858_p9, %p6280_p8 }
  0x26   : > { %p6283_p11 = pneg %p6282_p10 }
  0x28   : > { %p6288_p13 = pnand %p6286_p12, %p6283_p11 }
  0x2a   : > { %6291 = shalt.err (!%p6288_p13)
}
  0x2b   : > { %s6292_s12 = scalar_lea.vmem %s450_s23, 256  ;;  %p6300_p6 = scmp.lt.s32.totalorder %s450_s23, %s450_s23 }
  0x2c   : > { %p6293_p0 = scmp.ne.s32.totalorder %s450_s23, %s6292_s12  ;;  %p6301_p1 = scmp.lt.s32.totalorder %s6292_s12, %s6292_s12 }
  0x2e   : > { %p6295_p2 = pnand %p6293_p0, %p7858_p9  ;;  %p6302_p4 = por %p6301_p1, %p6300_p6 }
  0x30   : > { %p6296_p3 = pneg %p6295_p2 }
  0x32   : > { %p6303_p5 = pnand %p6302_p4, %p6296_p3 }
  0x34   : > { %6306 = shalt.err (!%p6303_p5)
}
  0x35   : > { %s6516_s14 = smov 32   ;;  %s6517_s13 = smov 2  }
  0x36   : > { %6036 = dma.hbm_to_vmem [thread:$0]  (!%p6668_p7), %s7882_s0, 256, %s450_s23, [#allocation4], %s6516_s14, %s6516_s14, %s6517_s13  }
  0x37   : > { %p37_p1 = scmp.ge.s32.totalorder %s36_s25, 2  ;;  %s202_s12 = sadd.s32 1, %s6501_s15 }
  0x38   : > { %p209_p4 = scmp.ne.s32.totalorder %s6501_s15, %s6497_s30  ;;  %p210_p5 = scmp.eq.s32.totalorder %s6513_s18, 0 }
  0x39   : > { %s7923_s25 = smov (%p37_p1, %s36_s25), 0  ;;  %p6052_p10 = scmp.lt.s32.totalorder %s6513_s18, 2 }
  0x3a   : > { %7883 = sst [smem:[#allocation19_spill]] %s7923_s25  ;;  %p211_p8 = por %p210_p5, %p209_p4 }
  0x3b   : > { %s199_s28 = ssub.s32 %s6509_s17, %s7923_s25  ;;  %s504_s29 = sand.u32 1, %s6513_s18  }
  0x3c   : > { %p200_p11 = scmp.eq.s32.totalorder %s199_s28, 0  ;;  %s6706_s22 = sand.u32 1, %s6501_s15  }
  0x3d   : > { %s6709_s10 = sshll.u32 %s6509_s17, 4  ;;  %s7885_s6 = sld [smem:[#allocation25_spill]] }
  0x3e   : > { %s6712_s23 = scalar_select %p200_p11, %s6501_s15, %s202_s12  }
  0x3f   : > { %s507_s27 = scalar_lea.vmem [#allocation8], %s6706_s22  ;;  %p6721_p12 = pnand %p6052_p10, %p211_p8 }
  0x40   : > { %7884 = sst [smem:[#allocation20_spill]] %s6712_s23  ;;  %s514_s28 = sshll.u32 %s507_s27, 4  ;;  %s6725_s28 = int_to_ptr.vmem [resolvable:$true] %s514_s28 }
  0x41   : > { %s7886_s0 = scalar_select %p6721_p12, 1, 0 }
  0x42   : > { %s7887_s7 = sld [smem:[#allocation26_spill]]  ;;  %s6733_s14 = scalar_lea.sflag [#allocation4], %s504_s29 }
  0x43   : > { %s6718_s26 = scalar_lea.hbm %s7885_s6, %s6709_s10  ;;  %p6739_p0 = pneg %p6721_p12 }
  0x44   : > { %s6307_s13 = scalar_lea.hbm %s6718_s26, 16  ;;  %s6312_s18 = scalar_lea.hbm %s7885_s6, 32 }
  0x45   : > { %p6308_p13 = scmp.ne.s32.totalorder %s6718_s26, %s6307_s13  ;;  %p6313_p6 = scmp.lt.u32.totalorder %s6718_s26, %s7885_s6 }
  0x46   : > { %s7888_s23 = scalar_select %p6739_p0, 1, 0 }
  0x47   : > { %p6310_p2 = pnand %p6739_p0, %p6308_p13  ;;  %p6314_p1 = scmp.lt.u32.totalorder %s6312_s18, %s6307_s13 }
  0x48   : > { %s6731_s17 = scalar_lea.hbm %s7887_s7, %s6709_s10  ;;  %p6316_p5 = scmp.lt.u32.totalorder %s6307_s13, %s6718_s26 }
  0x49   : > { %p6311_p3 = pneg %p6310_p2  ;;  %p6315_p4 = por %p6314_p1, %p6313_p6 }
  0x4b   : > { %p6317_p8 = por %p6316_p5, %p6315_p4 }
  0x4d   : > { %p6318_p10 = pnand %p6317_p8, %p6311_p3 }
  0x4f   : > { %6321 = shalt.err (!%p6318_p10)
}
  0x50   : > { %s6322_s29 = scalar_lea.vmem %s6725_s28, 16  ;;  %s6518_s15 = smov [#allocation8]  }
  0x51   : > { %p6323_p11 = scmp.ne.s32.totalorder %s6725_s28, %s6322_s29  ;;  %s6327_s27 = sshll.u32 %s6518_s15, 4  ;;  %s6328_s27 = int_to_ptr.vmem [resolvable:$false] %s6327_s27 }
  0x52   : > { %s6329_s25 = scalar_lea.vmem %s6328_s27, 32  ;;  %p6330_p9 = scmp.lt.s32.totalorder %s6725_s28, %s6328_s27 }
  0x53   : > { %p6325_p13 = pnand %p6323_p11, %p6739_p0  ;;  %p6331_p7 = scmp.lt.s32.totalorder %s6329_s25, %s6322_s29 }
  0x55   : > { %p6326_p2 = pneg %p6325_p13  ;;  %p6332_p6 = por %p6331_p7, %p6330_p9 }
  0x57   : > { %p6333_p1 = pnand %p6332_p6, %p6326_p2 }
  0x59   : > { %6336 = shalt.err (!%p6333_p1)
}
  0x5a   : > { %6043 = dma.hbm_to_vmem [thread:$0]  (!%p6721_p12), %s6718_s26, 16, %s6725_s28, %s6733_s14  }
  0x5b   : > { %s524_s18 = scalar_lea.vmem [#allocation9], %s6706_s22  ;;  %s6519_s12 = smov [#allocation6]  }
  0x5c   : > { %s531_s13 = sshll.u32 %s524_s18, 4  ;;  %s465_s29 = sshll.u32 %s6519_s12, 4  ;;  %s6764_s13 = int_to_ptr.vmem [resolvable:$true] %s531_s13  ;;  %s466_s29 = int_to_ptr.vmem [resolvable:$true] %s465_s29 }
  0x5d   : > { %s6337_s15 = scalar_lea.hbm %s6731_s17, 16  ;;  %s6342_s6 = scalar_lea.hbm %s7887_s7, 32 }
  0x5e   : > { %p6338_p7 = scmp.ne.s32.totalorder %s6731_s17, %s6337_s15  ;;  %p6343_p4 = scmp.lt.u32.totalorder %s6731_s17, %s7887_s7 }
  0x5f   : > { %p6344_p5 = scmp.lt.u32.totalorder %s6342_s6, %s6337_s15  ;;  %p6346_p10 = scmp.lt.u32.totalorder %s6337_s15, %s6731_s17 }
  0x60   : > { %p6340_p9 = pnand %p6338_p7, %p6739_p0 }
  0x61   : > { %p6345_p8 = por %p6344_p5, %p6343_p4 }
  0x62   : > { %p6341_p3 = pneg %p6340_p9 }
  0x63   : > { %p6347_p11 = por %p6346_p10, %p6345_p8 }
  0x65   : > { %p6348_p13 = pnand %p6347_p11, %p6341_p3 }
  0x67   : > { %6351 = shalt.err (!%p6348_p13)
}
  0x68   : > { %s6352_s26 = scalar_lea.vmem %s6764_s13, 16  ;;  %s6520_s28 = smov [#allocation9]  }
  0x69   : > { %p6353_p2 = scmp.ne.s32.totalorder %s6764_s13, %s6352_s26  ;;  %s6357_s18 = sshll.u32 %s6520_s28, 4  ;;  %s6358_s18 = int_to_ptr.vmem [resolvable:$false] %s6357_s18 }
  0x6a   : > { %s6359_s8 = scalar_lea.vmem %s6358_s18, 32  ;;  %p6360_p7 = scmp.lt.s32.totalorder %s6764_s13, %s6358_s18 }
  0x6b   : > { %p6355_p6 = pnand %p6353_p2, %p6739_p0  ;;  %p6361_p9 = scmp.lt.s32.totalorder %s6359_s8, %s6352_s26 }
  0x6d   : > { %p6356_p1 = pneg %p6355_p6  ;;  %p6362_p4 = por %p6361_p9, %p6360_p7 }
  0x6f   : > { %p6363_p5 = pnand %p6362_p4, %p6356_p1 }
  0x71   : > { %6366 = shalt.err (!%p6363_p5)
}
  0x72   : > { %6046 = dma.hbm_to_vmem [thread:$0]  (!%p6721_p12), %s6731_s17, 16, %s6764_s13, %s6733_s14  }
  0x73   : > { %s7889_s1 = sld [smem:[#allocation22_spill]]  ;;  %p7890_p8 = scmp.ne.s32.totalorder %s7881_s24, 0 }
  0x75   : > { %p7891_p10 = pneg %p7890_p8 }
  0x79   : > { %s6367_s12 = scalar_lea.hbm %s7889_s1, 128 }
  0x7a   : > { %p6368_p3 = scmp.ne.s32.totalorder %s7889_s1, %s6367_s12  ;;  %p6374_p2 = scmp.lt.u32.totalorder %s6367_s12, %s7889_s1 }
  0x7c   : > { %p6370_p11 = pnand %p6368_p3, %p7891_p10 }
  0x7e   : > { %p6371_p13 = pneg %p6370_p11 }
  0x80   : > { %p6376_p6 = pnand %p6374_p2, %p6371_p13 }
  0x82   : > { %6379 = shalt.err (!%p6376_p6)
}
  0x83   : > { %s6380_s17 = scalar_lea.vmem %s466_s29, 128  ;;  %p7892_p7 = pmov %p7891_p10 }
  0x84   : > { %p6381_p1 = scmp.ne.s32.totalorder %s466_s29, %s6380_s17  ;;  %p6388_p5 = scmp.lt.s32.totalorder %s466_s29, %s466_s29 }
  0x85   : > { %p6389_p12 = scmp.lt.s32.totalorder %s6380_s17, %s6380_s17 }
  0x86   : > { %p6383_p9 = pnand %p6381_p1, %p7892_p7 }
  0x87   : > { %p6390_p0 = por %p6389_p12, %p6388_p5 }
  0x88   : > { %p6384_p4 = pneg %p6383_p9 }
  0x8a   : > { %p6391_p3 = pnand %p6390_p0, %p6384_p4 }
  0x8c   : > { %6394 = shalt.err (!%p6391_p3)
}
  0x8d   : > { %6039 = dma.hbm_to_vmem [thread:$0]  (!%p7890_p8), %s7889_s1, 128, %s466_s29, [#allocation7]  }
  0x8e   : > { %s6812_s6 = scalar_lea.hbm %s7844_s9, %s6709_s10  ;;  %s549_s11 = scalar_lea.vmem [#allocation10], %s6706_s22 }
  0x8f   : > { %s556_s12 = sshll.u32 %s549_s11, 4  ;;  %s6395_s24 = scalar_lea.hbm %s6812_s6, 16  ;;  %s557_s12 = int_to_ptr.vmem [resolvable:$true] %s556_s12 }
  0x90   : > { %p6396_p12 = scmp.ne.s32.totalorder %s6812_s6, %s6395_s24  ;;  %p7893_p0 = scmp.ne.s32.totalorder %s7888_s23, 0 }
  0x91   : > { %s6400_s29 = scalar_lea.hbm %s7844_s9, 32  ;;  %p6401_p8 = scmp.lt.u32.totalorder %s6812_s6, %s7844_s9 }
  0x92   : > { %p6398_p10 = pnand %p6396_p12, %p7893_p0  ;;  %p6402_p13 = scmp.lt.u32.totalorder %s6400_s29, %s6395_s24 }
  0x93   : > { %p6404_p6 = scmp.lt.u32.totalorder %s6395_s24, %s6812_s6 }
  0x94   : > { %p6399_p11 = pneg %p6398_p10  ;;  %p6403_p2 = por %p6402_p13, %p6401_p8 }
  0x96   : > { %p6405_p1 = por %p6404_p6, %p6403_p2 }
  0x98   : > { %p6406_p7 = pnand %p6405_p1, %p6399_p11 }
  0x9a   : > { %6409 = shalt.err (!%p6406_p7)
}
  0x9b   : > { %s6410_s10 = scalar_lea.vmem %s557_s12, 16  ;;  %s6521_s22 = smov [#allocation10]  }
  0x9c   : > { %p6411_p9 = scmp.ne.s32.totalorder %s557_s12, %s6410_s10  ;;  %s6415_s17 = sshll.u32 %s6521_s22, 4  ;;  %s6416_s17 = int_to_ptr.vmem [resolvable:$false] %s6415_s17 }
  0x9d   : > { %s6417_s13 = scalar_lea.vmem %s6416_s17, 32  ;;  %p6418_p3 = scmp.lt.s32.totalorder %s557_s12, %s6416_s17 }
  0x9e   : > { %p6413_p4 = pnand %p6411_p9, %p7893_p0  ;;  %p6419_p12 = scmp.lt.s32.totalorder %s6417_s13, %s6410_s10 }
  0xa0   : > { %p6414_p5 = pneg %p6413_p4  ;;  %p6420_p10 = por %p6419_p12, %p6418_p3 }
  0xa2   : > { %p6421_p8 = pnand %p6420_p10, %p6414_p5 }
  0xa4   : > { %6424 = shalt.err (!%p6421_p8)
}
  0xa5   : > { %p7894_p13 = scmp.ne.s32.totalorder %s7886_s0, 0  ;;  %p7895_p11 = scmp.ne.s32.totalorder %s7880_s21, 0 }
  0xa6   : > { %p7896_p0 = scmp.eq.s32.totalorder (!%p7895_p11), %s6648_s19, 0 }
  0xa7   : > { %6049 = dma.hbm_to_vmem [thread:$0]  (!%p7894_p13), %s6812_s6, 16, %s557_s12, %s6733_s14  }
  0xa8   : > { %591 = sbr.rel (%p7895_p11) target bundleno = 4653 (0x122d), region = 76 }
  0xaf   : > { %6476 = dma.done.wait (%p7896_p0), [#allocation4], 256   ;;  %p7897_p2 = pmov %p7896_p0 }
  0xb0   : > { %p7898_p6 = pmov %p7896_p0 }
  0xb1   : > { %6478 = vsyncadd (%p7897_p2), [#allocation4], 4294967040 }
  0xb2   : > { %6480 = dma.done.wait (%p7898_p6), [#allocation7], 128   ;;  %p7899_p1 = pmov %p7896_p0 }
  0xb3   : > { %s601_s0 = sand.u32 1, %s6648_s19   ;;  %s6845_s23 = sand.u32 1, %s6497_s30  }
  0xb4   : > { %6482 = vsyncadd (%p7899_p1), [#allocation7], 4294967168  ;;  %s602_s21 = scalar_lea.sflag [#allocation4], %s601_s0  ;;  %p7900_p7 = scmp.ne.s32.totalorder %s7879_s20, 0 }
  0xb6   : > { %6484 = dma.done.wait (%p7900_p7), %s602_s21, 48  }
  0xb7   : > { %6486 = vsyncadd (%p7900_p7), %s602_s21, 4294967248  ;;  %p703_p9 = scmp.lt.s32.totalorder %s6505_s16, 1  ;;  %s7901_s2 = sld [smem:[#allocation23_spill]] }
  0xb8   : > { %s7902_s4 = sld [smem:[#allocation24_spill]]  ;;  %s7903_s13 = sld [smem:[#allocation27_spill]] }
  0xb9   : > { %s6854_s28 = scalar_select %p703_p9, %s6505_s16, 1 }
  0xba   : > { %s7904_s11 = sld [smem:[#allocation29_spill]]  ;;  %s7905_s1 = sld [smem:[#allocation28_spill]] }
  0xbb   : > { %s5449_s18 = sshll.u32 %s6854_s28, 4  ;;  %s5452_s21 = sshll.u32 %s6854_s28, 5 }
  0xbc   : > { %s7907_s7 = sld [smem:[#allocation31_spill]]  ;;  %s620_s17 = scalar_lea.vmem [#allocation10], %s6845_s23 }
  0xbd   : > { %s6864_s24 = scalar_lea.vmem %s7901_s2, %s5449_s18  ;;  %p5357_p4 = scmp.ne.s32.totalorder %s6505_s16, 0 }
  0xbe   : > { %s6869_s29 = scalar_lea.vmem %s7902_s4, %s5449_s18  ;;  %s6878_s0 = scalar_lea.vmem %s7903_s13, %s5449_s18  ;;  %v766_v0 = vlaneseq (!%p5357_p4)  ;;  %v760_v1 = vld [vmem:[#allocation6] sm:$0xff] (!%p5357_p4)  ;;  %v6522_v2 = vmov (!%p5357_p4), 1966171168   ;;  %v744_v7 = vld [vmem:[#allocation3] sm:$0x3] (!%p5357_p4)  ;;  %vm903_vm0 = vcmask (!%p5357_p4), 261120  }
  0xbf   : > { %s7906_s4 = sld [smem:[#allocation30_spill]]  ;;  %s612_s18 = scalar_lea.vmem [#allocation9], %s6845_s23  ;;  %v764_v3 = vunpack.c.l.s4 (!%p5357_p4), %v6522_v2  ;;  %v762_v6 = vcombine.high (!%p5357_p4), %v760_v1, %v760_v1  ;;  %v745_v8 = vld [vmem:[#allocation3 + $0x2] sm:$0x3] (!%p5357_p4)  ;;  %v746_v9 = vld [vmem:[#allocation3 + $0x4] sm:$0x3] (!%p5357_p4) }
  0xc0   : > { %s731_s12 = scalar_lea.vmem %s7904_s11, %s6854_s28  ;;  %s6888_s15 = scalar_lea.vmem %s7905_s1, %s5452_s21  ;;  %v767_v4 = vshrl.u32 (!%p5357_p4), %v766_v0, 7  ;;  %v747_v11 = vld [vmem:[#allocation3 + $0x6] sm:$0x3] (!%p5357_p4)  ;;  %v6523_v12 = vmov (!%p5357_p4), 1983009808  }
  0xc1   : > { %743 = sbr.rel (%p5357_p4) target bundleno = 217 (0xd9), region = 100  ;;  %v765_v5 = vunpack.c.0.s8 (!%p5357_p4), %v764_v3  ;;  %v870_v13 = vunpack.c.l.s4 (!%p5357_p4), %v6523_v12  ;;  %v748_v16 = vld [vmem:[#allocation3 + $0x8] sm:$0x3] (!%p5357_p4)  ;;  %v749_v17 = vld [vmem:[#allocation3 + $0xa] sm:$0x3] (!%p5357_p4) }
  0xc2   : > { %s737_s22 = scalar_lea.vmem %s7907_s7, %s6854_s28  ;;  %v813_v15 = vsub.s32 (!%p5357_p4), 0, %v767_v4  ;;  %v752_v19 = vmul.f32 (!%p5357_p4), 5.656854, %v744_v7  ;;  %v753_v20 = vmul.f32 (!%p5357_p4), 5.656854, %v745_v8 }
  0xc3   : > { %v768_v10 = vsub.s32 (!%p5357_p4), %v765_v5, %v767_v4  ;;  %v754_v21 = vmul.f32 (!%p5357_p4), 5.656854, %v746_v9  ;;  %v750_v24 = vld [vmem:[#allocation3 + $0xc] sm:$0x3] (!%p5357_p4)  ;;  %v751_v25 = vld [vmem:[#allocation3 + $0xe] sm:$0x3] (!%p5357_p4)  ;;  %v871_v29 = vunpack.c.0.s8 (!%p5357_p4), %v870_v13 }
  0xc4   : > { %v755_v28 = vmul.f32 (!%p5357_p4), 5.656854, %v747_v11  ;;  %v756_v30 = vmul.f32 (!%p5357_p4), 5.656854, %v748_v16  ;;  %v757_v31 = vmul.f32 (!%p5357_p4), 5.656854, %v749_v17 }
  0xc5   : > { %s734_s25 = scalar_lea.vmem %s7906_s4, %s6854_s28  ;;  %v769_v14 = vrot.slane (!%p5357_p4), %v760_v1, %v768_v10  ;;  %v776_v18 = vrot.slane (!%p5357_p4), %v762_v6, %v768_v10  ;;  %v758_v36 = vmul.f32 (!%p5357_p4), 5.656854, %v750_v24  ;;  %v759_v37 = vmul.f32 (!%p5357_p4), 5.656854, %v751_v25 }
  0xc6   : > { %v874_v51 = vsub.s32 (!%p5357_p4), %v871_v29, %v767_v4 }
  0xc7   : > { %v777_v22 = vcombine.high (!%p5357_p4), %v769_v14, %v769_v14  ;;  %v785_v23 = vrot.slane (!%p5357_p4), %v769_v14, %v768_v10  ;;  %v778_v26 = vcombine.high (!%p5357_p4), %v776_v18, %v776_v18  ;;  %v792_v27 = vrot.slane (!%p5357_p4), %v776_v18, %v768_v10 }
  0xc9   : > { %v799_v32 = vrot.slane %v777_v22, %v768_v10  ;;  %v807_v33 = vcombine.high %v785_v23, %v785_v23  ;;  %v814_v34 = vrot.slane %v785_v23, %v813_v15  ;;  %v806_v35 = vrot.slane %v778_v26, %v768_v10 }
  0xca   : > { %v808_v38 = vcombine.high %v792_v27, %v792_v27  ;;  %v830_v39 = vrot.slane %v792_v27, %v813_v15 }
  0xcb   : > { %v809_v40 = vcombine.high %v799_v32, %v799_v32  ;;  %v818_v41 = vrot.slane %v799_v32, %v813_v15  ;;  %v822_v42 = vrot.slane %v807_v33, %v813_v15  ;;  %v851_v43 = vadd.f32 %v814_v34, %v752_v19 }
  0xcc   : > { %v810_v44 = vcombine.high %v806_v35, %v806_v35  ;;  %v834_v45 = vrot.slane %v806_v35, %v813_v15  ;;  %v838_v46 = vrot.slane %v808_v38, %v813_v15  ;;  %v855_v47 = vadd.f32 %v830_v39, %v756_v30 }
  0xcd   : > { %v826_v48 = vrot.slane %v809_v40, %v813_v15  ;;  %v852_v49 = vadd.f32 %v818_v41, %v753_v20  ;;  %v853_v50 = vadd.f32 %v822_v42, %v754_v21 }
  0xce   : > { %v842_v52 = vrot.slane %v810_v44, %v813_v15  ;;  %v856_v53 = vadd.f32 %v834_v45, %v757_v31  ;;  %v857_v54 = vadd.f32 %v838_v46, %v758_v36 }
  0xcf   : > { %v854_v55 = vadd.f32 %v826_v48, %v755_v28  ;;  %v867_v56 = vcombine.low %v851_v43, %v852_v49 }
  0xd0   : > { %v858_v57 = vadd.f32 %v842_v52, %v759_v37  ;;  %v884_v58 = vcombine.low %v855_v47, %v856_v53 }
  0xd1   : > { %v868_v59 = vcombine.low %v853_v50, %v854_v55  ;;  %v875_v60 = vrot.slane %v867_v56, %v874_v51 }
  0xd2   : > { %v885_v61 = vcombine.low %v857_v54, %v858_v57  ;;  %v892_v62 = vrot.slane %v884_v58, %v874_v51 }
  0xd3   : > { %v882_v63 = vrot.slane %v868_v59, %v874_v51 }
  0xd4   : > { %v899_v0 = vrot.slane %v885_v61, %v874_v51 }
  0xd5   : > { %v883_v1 = vcombine.low %v875_v60, %v882_v63 }
  0xd6   : > { %v900_v2 = vcombine.low %v892_v62, %v899_v0 }
  0xd7   : > { %904 = vst.msk [vmem:[#allocation2] sm:$0xff] %vm903_vm0, %v883_v1 }
  0xd8   : > { %905 = vst.msk [vmem:[#allocation2 + $0x8] sm:$0xff] %vm903_vm0, %v900_v2 }
  0xd9 PF: > { %v6131_v3 = vld [vmem:[%s6864_s24] sm:$0xff]   ;;  %v6524_v4 = vmov 0.0   ;;  %v6132_v5 = vld [vmem:[%s6864_s24 + $0x8] sm:$0xff]   ;;  %vm6525_vm1 = vmmov 0   ;;  %vm932_vm2 = vcmask 261120   ;;  %v983_v11 = vlaneseq  ;;  %s7908_s4 = scalar_lea.vmem %s7838_s3, %s6854_s28  ;;  %s6527_s7 = smov 96  }
  0xda   : > { %5595 = vmatprep.subr.bf16.mxu0 %v6524_v4  ;;  %5603 = vmatprep.subr.bf16.mxu1 %v6524_v4  ;;  %v6526_v9 = vmov 1983009808   ;;  %v5358_v14 = vld [vmem:[%s7908_s4] ss:$0 sm:$0xff]  ;;  %s6528_s14 = smov 64   ;;  %vm1032_vm3 = vcmask 64512  }
  0xdb   : > { %5596 = vmatpush3.bf16.msra.mxu0 %v6131_v3  ;;  %5599 = vmatprep.mubr.msk.bf16.mxu0 %vm6525_vm1, %v6524_v4  ;;  %v981_v10 = vunpack.c.l.s4 %v6526_v9  ;;  %v984_v13 = vshrl.u32 %v983_v11, 7  ;;  %vm1533_vm4 = vcmask 1040384   ;;  %vm1430_vm5 = vcmask 9216   ;;  %s6529_s20 = smov 88   ;;  %s6530_s24 = smov 120  }
  0xdc   : > { %5597 = vmatprep.subr.bf16.mxu0 %v6524_v4  ;;  %5605 = vmatprep.mubr.msk.bf16.mxu1 %vm6525_vm1, %v6524_v4  ;;  %s6531_s10 = smov 56   ;;  %vm1529_vm6 = vcmask 15360   ;;  %s6532_s13 = smov 80   ;;  %vm4681_vm7 = vcmask 130048   ;;  %vm4690_vm8 = vcmask 195584   ;;  %vm4968_vm9 = vcmask 523264  }
  0xdd   : > { %v982_v12 = vunpack.c.0.s8 %v981_v10  ;;  %s6533_s21 = smov 112   ;;  %s6534_s8 = smov 48  }
  0xde   : > { %v906_v6 = vld [vmem:[#allocation2] sm:$0xff]  ;;  %s6535_s6 = smov 72   ;;  %s6536_s11 = smov 104  }
  0xdf   : > { %v907_v7 = vld [vmem:[#allocation2 + $0x8] sm:$0xff]  ;;  %5598 = vmatpush3.bf16.msra.mxu0 %v6132_v5  ;;  %v6919_v15 = vsub.s32 %v982_v12, %v984_v13  ;;  %s6537_s27 = smov 40   ;;  %s6538_s26 = smov 8  }
  0xe0   : > { %v908_v8 = vpack.c.bf16 %v907_v7, %v906_v6  ;;  %5609 = vmatprep.subr.bf16.mxu0 %v6524_v4  ;;  %s6539_s1 = smov 16   ;;  %s6540_s2 = smov 24  }
  0xe1   : > { %p5444_p5 = scmp.ne.s32.totalorder %s6505_s16, 1 }
  0xe2   : > { %5600 = vmatmul.mubr.msk.bf16.vlgmr.msra.gmra.mrb[0].mxu0 %vm932_vm2, %v908_v8  ;;  %vm5109_vm10 = vcmask (!%p5444_p5), 254976  }
  0xe3   : > { %5611 = vmatprep.mubr.msk.bf16.mxu0 %vm6525_vm1, %v6524_v4 }
 0x1b5   : > { %v970_v16 = vpop.f32.mrb[0].mxu0 }
 0x1b6   : > { %v971_v17 = vadd.f32 %v5358_v14, %v970_v16  ;;  %v5601_v18 = vpop.f32.mrb[1].mxu0 }
 0x1b7   : > { %v973_v19 = vpop.f32.mrb[2].mxu0 }
 0x1b8   : > { %v979_v20 = vcombine.high %v971_v17, %v971_v17  ;;  %v986_v21 = vrot.slane %v971_v17, %v6919_v15  ;;  %v974_v22 = vadd.f32 %v5358_v14, %v973_v19  ;;  %v5602_v23 = vpop.f32.mrb[3].mxu0 }
 0x1ba   : > { %v993_v24 = vrot.slane %v979_v20, %v6919_v15  ;;  %v994_v25 = vcombine.high %v986_v21, %v986_v21  ;;  %v6923_v26 = vpack.c.bf16 %v986_v21, %v986_v21  ;;  %v996_v29 = vcombine.high %v974_v22, %v974_v22 }
 0x1bb   : > { %v1003_v30 = vrot.slane %v974_v22, %v6919_v15 }
 0x1bc   : > { %v995_v27 = vcombine.high %v993_v24, %v993_v24  ;;  %v6925_v28 = vpack.c.bf16 %v993_v24, %v993_v24  ;;  %1030 = vrot.lane.b32.xlu0 %v6923_v26, %s6527_s7  ;;  %v6929_v31 = vpack.c.bf16 %v994_v25, %v994_v25  ;;  %v1010_v33 = vrot.slane %v996_v29, %v6919_v15 }
 0x1bd   : > { %v1011_v34 = vcombine.high %v1003_v30, %v1003_v30  ;;  %v6936_v35 = vpack.c.bf16 %v1003_v30, %v1003_v30 }
 0x1be   : > { %1129 = vrot.lane.b32.xlu1 %v6925_v28, %s6527_s7  ;;  %v6932_v32 = vpack.c.bf16 %v995_v27, %v995_v27  ;;  %v1012_v36 = vcombine.high %v1010_v33, %v1010_v33  ;;  %v6942_v38 = vpack.c.bf16 %v1010_v33, %v1010_v33 }
 0x1bf   : > { %v6939_v37 = vpack.c.bf16 %v1011_v34, %v1011_v34 }
 0x1c0   : > { %1080 = vrot.lane.b32.xlu0 %v6929_v31, %s6527_s7  ;;  %v6945_v39 = vpack.c.bf16 %v1012_v36, %v1012_v36 }
 0x1c2   : > { %1178 = vrot.lane.b32.xlu1 %v6932_v32, %s6527_s7 }
 0x1c4   : > { %1227 = vrot.lane.b32.xlu0 %v6936_v35, %s6527_s7 }
 0x1c6   : > { %1276 = vrot.lane.b32.xlu1 %v6939_v37, %s6527_s7 }
 0x1c8   : > { %1325 = vrot.lane.b32.xlu0 %v6942_v38, %s6527_s7 }
 0x1ca   : > { %1374 = vrot.lane.b32.xlu1 %v6945_v39, %s6527_s7  ;;  %s7909_s7 = scalar_lea.vmem %s7840_s5, %s6854_s28 }
 0x1cc   : > { %1577 = vrot.lane.b32.xlu0 %v6929_v31, %s6528_s14 }
 0x1ce   : > { %1527 = vrot.lane.b32.xlu1 %v6923_v26, %s6528_s14 }
 0x1d2   : > { %1625 = vrot.lane.b32.xlu1 %v6925_v28, %s6528_s14 }
 0x1d6   : > { %1673 = vrot.lane.b32.xlu1 %v6932_v32, %s6528_s14 }
 0x22e   : > { %v1031_v40 = vpop.permute.xlu0 %1030 }
 0x22f   : > { %v1037_v41 = vsel %vm1032_vm3, %v1031_v40, 0 }
 0x230   : > { %5604 = vmatpush3.bf16.xpose.msra.mxu1 %v1037_v41  ;;  %v1130_v42 = vpop.permute.xlu1 %1129 }
 0x231   : > { %5615 = vmatprep.subr.bf16.mxu1 %v6524_v4  ;;  %v1135_v45 = vsel %vm1032_vm3, %v1130_v42, 0 }
 0x232   : > { %v1081_v43 = vpop.permute.xlu0 %1080 }
 0x233   : > { %v1086_v44 = vsel %vm1032_vm3, %v1081_v43, 0 }
 0x234   : > { %5610 = vmatpush3.bf16.xpose.msra.mxu0 %v1086_v44  ;;  %v1179_v46 = vpop.permute.xlu1 %1178 }
 0x235   : > { %5621 = vmatprep.subr.bf16.mxu0 %v6524_v4  ;;  %v1184_v47 = vsel %vm1032_vm3, %v1179_v46, 0 }
 0x236   : > { %v1228_v48 = vpop.permute.xlu0 %1227 }
 0x237   : > { %5606 = vmatmul.mubr.msk.bf16.vlgmr.msra.gmra.mrb[0].mxu1 %vm1032_vm3, %v6923_v26  ;;  %v1233_v49 = vsel %vm1032_vm3, %v1228_v48, 0 }
 0x238   : > { %5616 = vmatpush3.bf16.xpose.msra.mxu1 %v1135_v45  ;;  %5617 = vmatprep.mubr.msk.bf16.mxu1 %vm6525_vm1, %v6524_v4  ;;  %v1277_v50 = vpop.permute.xlu1 %1276 }
 0x239   : > { %5627 = vmatprep.subr.bf16.mxu1 %v6524_v4  ;;  %v1282_v51 = vsel %vm1032_vm3, %v1277_v50, 0 }
 0x23a   : > { %v1326_v52 = vpop.permute.xlu0 %1325 }
 0x23b   : > { %5612 = vmatmul.mubr.msk.bf16.vlgmr.msra.gmra.mrb[4].mxu0 %vm1032_vm3, %v6929_v31  ;;  %v1331_v54 = vsel %vm1032_vm3, %v1326_v52, 0 }
 0x23c   : > { %5622 = vmatpush3.bf16.xpose.msra.mxu0 %v1184_v47  ;;  %5623 = vmatprep.mubr.msk.bf16.mxu0 %vm6525_vm1, %v6524_v4  ;;  %v1375_v53 = vpop.permute.xlu1 %1374 }
 0x23d   : > { %5633 = vmatprep.subr.bf16.mxu0 %v6524_v4  ;;  %v1380_v55 = vsel %vm1032_vm3, %v1375_v53, 0 }
 0x23e   : > { %v1578_v58 = vpop.permute.xlu0 %1577 }
 0x23f   : > { %5618 = vmatmul.mubr.msk.bf16.vlgmr.msra.gmra.mrb[4].mxu1 %vm1032_vm3, %v6925_v28  ;;  %v1583_v59 = vsel %vm1533_vm4, %v1578_v58, 0 }
 0x240   : > { %5628 = vmatpush3.bf16.xpose.msra.mxu1 %v1233_v49  ;;  %5629 = vmatprep.mubr.msk.bf16.mxu1 %vm6525_vm1, %v6524_v4  ;;  %v1528_v56 = vpop.permute.xlu1 %1527 }
 0x241   : > { %5639 = vmatprep.subr.bf16.mxu1 %v6524_v4  ;;  %v1535_v57 = vsel %vm1533_vm4, %v1528_v56, 0 }
 0x243   : > { %5624 = vmatmul.mubr.msk.bf16.vlgmr.msra.gmra.mrb[8].mxu0 %vm1032_vm3, %v6932_v32 }
 0x244   : > { %5634 = vmatpush3.bf16.xpose.msra.mxu0 %v1282_v51  ;;  %5635 = vmatprep.mubr.msk.bf16.mxu0 %vm6525_vm1, %v6524_v4 }
 0x245   : > { %5645 = vmatprep.subr.bf16.mxu0 %v6524_v4 }
 0x247   : > { %5630 = vmatmul.mubr.msk.bf16.vlgmr.msra.gmra.mrb[8].mxu1 %vm1032_vm3, %v6936_v35 }
 0x248   : > { %5640 = vmatpush3.bf16.xpose.msra.mxu1 %v1331_v54  ;;  %5641 = vmatprep.mubr.msk.bf16.mxu1 %vm6525_vm1, %v6524_v4  ;;  %v7024_v54 = vpop.permute.xlu1 %1625 }
 0x249   : > { %5651 = vmatprep.subr.bf16.mxu1 %v6524_v4 }
 0x24b   : > { %5636 = vmatmul.mubr.msk.bf16.vlgmr.msra.gmra.mrb[12].mxu0 %vm1032_vm3, %v6939_v37 }
 0x24c   : > { %5646 = vmatpush3.bf16.xpose.msra.mxu0 %v1380_v55  ;;  %5647 = vmatprep.mubr.msk.bf16.mxu0 %vm6525_vm1, %v6524_v4  ;;  %v7026_v55 = vpop.permute.xlu1 %1673 }
 0x24d   : > { %5657 = vmatprep.subr.bf16.mxu0 %v6524_v4 }
 0x24f   : > { %5642 = vmatmul.mubr.msk.bf16.vlgmr.msra.gmra.mrb[12].mxu1 %vm1032_vm3, %v6942_v38 }
 0x250   : > { %5652 = vmatpush3.bf16.msra.mxu1 %v1535_v57  ;;  %5653 = vmatprep.mubr.msk.bf16.mxu1 %vm6525_vm1, %v6524_v4 }
 0x251   : > { %5663 = vmatprep.subr.bf16.mxu1 %v6524_v4 }
 0x253   : > { %5648 = vmatmul.mubr.msk.bf16.vlgmr.msra.gmra.mrb[16].mxu0 %vm1032_vm3, %v6945_v39 }
 0x254   : > { %5658 = vmatpush3.bf16.msra.mxu0 %v1583_v59  ;;  %5659 = vmatprep.mubr.msk.bf16.mxu0 %vm6525_vm1, %v6524_v4 }
 0x255   : > { %5669 = vmatprep.subr.bf16.mxu0 %v6524_v4 }
 0x30a   : > { %v1073_v60 = vpop.f32.mrb[0].mxu1 }
 0x30b   : > { %v1422_v61 = vmul.f32 0.35355338, %v1073_v60  ;;  %v5607_v62 = vpop.f32.mrb[1].mxu1 }
 0x30c   : > { %v1076_v63 = vpop.f32.mrb[2].mxu1 }
 0x30d   : > { %v5608_v0 = vpop.f32.mrb[3].mxu1  ;;  %v1431_v1 = vsel %vm1430_vm5, %v1422_v61, -inf }
 0x30e   : > { %1432 = vmax.xlane.f32.xlu0 %v1431_v1  ;;  %v1122_v2 = vpop.f32.mrb[4].mxu0 }
 0x30f   : > { %v1423_v3 = vmul.f32 0.35355338, %v1122_v2  ;;  %v5613_v5 = vpop.f32.mrb[5].mxu0 }
 0x310   : > { %v1125_v6 = vpop.f32.mrb[6].mxu0 }
 0x311   : > { %v5614_v7 = vpop.f32.mrb[7].mxu0  ;;  %v1434_v8 = vsel %vm1430_vm5, %v1423_v3, -inf }
 0x312   : > { %v1171_v9 = vpop.f32.mrb[4].mxu1  ;;  %1435 = vmax.xlane.f32.xlu1 %v1434_v8 }
 0x313   : > { %v1424_v10 = vmul.f32 0.35355338, %v1171_v9  ;;  %v5619_v11 = vpop.f32.mrb[5].mxu1 }
 0x314   : > { %v1174_v12 = vpop.f32.mrb[6].mxu1 }
 0x315   : > { %v5620_v13 = vpop.f32.mrb[7].mxu1  ;;  %v1437_v14 = vsel %vm1430_vm5, %v1424_v10, -inf }
 0x316   : > { %1438 = vmax.xlane.f32.xlu0 %v1437_v14  ;;  %v1220_v16 = vpop.f32.mrb[8].mxu0 }
 0x317   : > { %v1425_v17 = vmul.f32 0.35355338, %v1220_v16  ;;  %v5625_v18 = vpop.f32.mrb[9].mxu0 }
 0x318   : > { %v1223_v19 = vpop.f32.mrb[10].mxu0 }
 0x319   : > { %v5626_v20 = vpop.f32.mrb[11].mxu0  ;;  %v1440_v21 = vsel %vm1430_vm5, %v1425_v17, -inf }
 0x31a   : > { %v1269_v22 = vpop.f32.mrb[8].mxu1  ;;  %1441 = vmax.xlane.f32.xlu0 %v1440_v21 }
 0x31b   : > { %v1426_v23 = vmul.f32 0.35355338, %v1269_v22  ;;  %v5631_v24 = vpop.f32.mrb[9].mxu1 }
 0x31c   : > { %v1272_v25 = vpop.f32.mrb[10].mxu1 }
 0x31d   : > { %v5632_v27 = vpop.f32.mrb[11].mxu1  ;;  %v1443_v29 = vsel %vm1430_vm5, %v1426_v23, -inf }
 0x31e   : > { %1444 = vmax.xlane.f32.xlu1 %v1443_v29  ;;  %v1318_v30 = vpop.f32.mrb[12].mxu0 }
 0x31f   : > { %v1427_v33 = vmul.f32 0.35355338, %v1318_v30  ;;  %v5637_v34 = vpop.f32.mrb[13].mxu0 }
 0x320   : > { %v1321_v36 = vpop.f32.mrb[14].mxu0 }
 0x321   : > { %v5638_v40 = vpop.f32.mrb[15].mxu0  ;;  %v1446_v41 = vsel %vm1430_vm5, %v1427_v33, -inf }
 0x322   : > { %v1367_v42 = vpop.f32.mrb[12].mxu1  ;;  %1447 = vmax.xlane.f32.xlu0 %v1446_v41 }
 0x323   : > { %v7015_v43 = vmul.f32 0.35355338, %v1367_v42  ;;  %v5643_v44 = vpop.f32.mrb[13].mxu1 }
 0x324   : > { %v1370_v45 = vpop.f32.mrb[14].mxu1 }
 0x325   : > { %v5644_v46 = vpop.f32.mrb[15].mxu1  ;;  %v1449_v47 = vsel %vm1430_vm5, %v7015_v43, -inf }
 0x326   : > { %1450 = vmax.xlane.f32.xlu1 %v1449_v47  ;;  %v1416_v48 = vpop.f32.mrb[16].mxu0 }
 0x327   : > { %v1429_v49 = vmul.f32 0.35355338, %v1416_v48  ;;  %v5649_v50 = vpop.f32.mrb[17].mxu0 }
 0x328   : > { %v1419_v51 = vpop.f32.mrb[18].mxu0 }
 0x329   : > { %v5650_v52 = vpop.f32.mrb[19].mxu0  ;;  %v1452_v53 = vsel %vm1430_vm5, %v1429_v49, -inf }
 0x32a   : > { %1453 = vmax.xlane.f32.xlu0 %v1452_v53  ;;  %v1631_v52 = vsel %vm1533_vm4, %v7024_v54, 0 }
 0x337   : > { %1769 = vrot.lane.b32.xlu1 %v6939_v37, %s6528_s14 }
 0x340   : > { %1721 = vrot.lane.b32.xlu0 %v6936_v35, %s6528_s14 }
 0x39b   : > { %v1433_v56 = vpop.xlane.xlu0 %1432 }
 0x39c   : > { %v1455_v57 = vsub.f32 %v1422_v61, %v1433_v56 }
 0x39e   : > { %v1463_v58 = vmul.f32 1.442695, %v1455_v57 }
 0x39f   : > { %v1436_v59 = vpop.xlane.xlu1 %1435 }
 0x3a0   : > { %6141 = vpow2.f32 %v1463_v58  ;;  %v1456_v60 = vsub.f32 %v1423_v3, %v1436_v59  ;;  %v1679_v59 = vsel %vm1533_vm4, %v7026_v55, 0 }
 0x3a2   : > { %v1465_v62 = vmul.f32 1.442695, %v1456_v60 }
 0x3a3   : > { %v1439_v63 = vpop.xlane.xlu0 %1438 }
 0x3a4   : > { %6143 = vpow2.f32 %v1465_v62  ;;  %v1457_v0 = vsub.f32 %v1424_v10, %v1439_v63 }
 0x3a6   : > { %v1467_v1 = vmul.f32 1.442695, %v1457_v0 }
 0x3a7   : > { %v1442_v2 = vpop.xlane.xlu0 %1441 }
 0x3a8   : > { %6145 = vpow2.f32 %v1467_v1  ;;  %v1458_v5 = vsub.f32 %v1425_v17, %v1442_v2 }
 0x3aa   : > { %v7028_v6 = vpop.eup %6141  ;;  %v1469_v7 = vmul.f32 1.442695, %v1458_v5 }
 0x3ab   : > { %v1445_v8 = vpop.xlane.xlu1 %1444  ;;  %v1479_v9 = vsel %vm1430_vm5, %v7028_v6, 0.0 }
 0x3ac   : > { %6147 = vpow2.f32 %v1469_v7  ;;  %v1459_v61 = vsub.f32 %v1426_v23, %v1445_v8  ;;  %1480 = vadd.xlane.f32.xlu1 %v1479_v9 }
 0x3ae   : > { %v7032_v11 = vpop.eup %6143  ;;  %v1471_v3 = vmul.f32 1.442695, %v1459_v61 }
 0x3af   : > { %v1448_v12 = vpop.xlane.xlu0 %1447  ;;  %v1482_v10 = vsel %vm1430_vm5, %v7032_v11, 0.0 }
 0x3b0   : > { %6149 = vpow2.f32 %v1471_v3  ;;  %v1460_v13 = vsub.f32 %v1427_v33, %v1448_v12  ;;  %1483 = vadd.xlane.f32.xlu0 %v1482_v10 }
 0x3b2   : > { %v7036_v14 = vpop.eup %6145  ;;  %v1473_v16 = vmul.f32 1.442695, %v1460_v13 }
 0x3b3   : > { %v1485_v17 = vsel %vm1430_vm5, %v7036_v14, 0.0  ;;  %v1451_v24 = vpop.xlane.xlu1 %1450 }
 0x3b4   : > { %6151 = vpow2.f32 %v1473_v16  ;;  %1486 = vadd.xlane.f32.xlu1 %v1485_v17  ;;  %v1461_v25 = vsub.f32 %v7015_v43, %v1451_v24 }
 0x3b6   : > { %v7040_v18 = vpop.eup %6147  ;;  %v1475_v29 = vmul.f32 1.442695, %v1461_v25 }
 0x3b7   : > { %v1488_v19 = vsel %vm1430_vm5, %v7040_v18, 0.0  ;;  %v1454_v27 = vpop.xlane.xlu0 %1453  ;;  %v1770_v42 = vpop.permute.xlu1 %1769 }
 0x3b8   : > { %1489 = vadd.xlane.f32.xlu0 %v1488_v19  ;;  %v1462_v30 = vsub.f32 %v1429_v49, %v1454_v27  ;;  %6153 = vpow2.f32 %v1475_v29  ;;  %v1775_v5 = vsel %vm1533_vm4, %v1770_v42, 0 }
 0x3ba   : > { %v7044_v20 = vpop.eup %6149  ;;  %v1477_v33 = vmul.f32 1.442695, %v1462_v30 }
 0x3bb   : > { %v1491_v21 = vsel %vm1430_vm5, %v7044_v20, 0.0  ;;  %v1722_v43 = vpop.permute.xlu0 %1721 }
 0x3bc   : > { %1492 = vadd.xlane.f32.xlu1 %v1491_v21  ;;  %6155 = vpow2.f32 %v1477_v33  ;;  %v1727_v0 = vsel %vm1533_vm4, %v1722_v43, 0 }
 0x3be   : > { %v7048_v22 = vpop.eup %6151 }
 0x3bf   : > { %v1494_v23 = vsel %vm1430_vm5, %v7048_v22, 0.0 }
 0x3c0   : > { %1495 = vadd.xlane.f32.xlu0 %v1494_v23 }
 0x3c2   : > { %v7057_v34 = vpop.eup %6153 }
 0x3c3   : > { %v1497_v36 = vsel %vm1430_vm5, %v7057_v34, 0.0 }
 0x3c6   : > { %v7061_v40 = vpop.eup %6155 }
 0x3c7   : > { %v1500_v41 = vsel %vm1430_vm5, %v7061_v40, 0.0 }
 0x3cd   : > { %1865 = vrot.lane.b32.xlu1 %v6945_v39, %s6528_s14 }
 0x3d6   : > { %1817 = vrot.lane.b32.xlu0 %v6942_v38, %s6528_s14 }
 0x3f1   : > { %1498 = vadd.xlane.f32.xlu1 %v1497_v36 }
 0x3f5   : > { %1501 = vadd.xlane.f32.xlu0 %v1500_v41 }
 0x402   : > { %1965 = vrot.lane.b32.xlu1 %v6929_v31, %s6529_s20 }
 0x406   : > { %1963 = vrot.lane.b32.xlu1 %v6929_v31, %s6530_s24 }
 0x40a   : > { %2065 = vrot.lane.b32.xlu1 %v6932_v32, %s6529_s20 }
 0x40b   : > { %1915 = vrot.lane.b32.xlu0 %v6923_v26, %s6529_s20 }
 0x40e   : > { %2063 = vrot.lane.b32.xlu1 %v6932_v32, %s6530_s24 }
 0x40f   : > { %1913 = vrot.lane.b32.xlu0 %v6923_v26, %s6530_s24 }
 0x412   : > { %2165 = vrot.lane.b32.xlu1 %v6939_v37, %s6529_s20 }
 0x413   : > { %2015 = vrot.lane.b32.xlu0 %v6925_v28, %s6529_s20 }
 0x416   : > { %2163 = vrot.lane.b32.xlu1 %v6939_v37, %s6530_s24 }
 0x417   : > { %2013 = vrot.lane.b32.xlu0 %v6925_v28, %s6530_s24 }
 0x41a   : > { %2265 = vrot.lane.b32.xlu1 %v6945_v39, %s6529_s20 }
 0x41b   : > { %2115 = vrot.lane.b32.xlu0 %v6936_v35, %s6529_s20 }
 0x41e   : > { %2263 = vrot.lane.b32.xlu1 %v6945_v39, %s6530_s24 }
 0x41f   : > { %2113 = vrot.lane.b32.xlu0 %v6936_v35, %s6530_s24 }
 0x422   : > { %2417 = vrot.lane.b32.xlu1 %v6923_v26, %s6531_s10 }
 0x423   : > { %2215 = vrot.lane.b32.xlu0 %v6942_v38, %s6529_s20 }
 0x426   : > { %2513 = vrot.lane.b32.xlu1 %v6925_v28, %s6531_s10 }
 0x427   : > { %2213 = vrot.lane.b32.xlu0 %v6942_v38, %s6530_s24 }
 0x42a   : > { %2561 = vrot.lane.b32.xlu1 %v6932_v32, %s6531_s10 }
 0x42b   : > { %2465 = vrot.lane.b32.xlu0 %v6929_v31, %s6531_s10 }
 0x439   : > { %v1481_v44 = vpop.xlane.xlu1 %1480 }
 0x43a   : > { %6157 = vrcp.f32 %v1481_v44 }
 0x43d   : > { %v1484_v45 = vpop.xlane.xlu0 %1483 }
 0x43e   : > { %6159 = vrcp.f32 %v1484_v45 }
 0x441   : > { %v1487_v46 = vpop.xlane.xlu1 %1486 }
 0x442   : > { %6161 = vrcp.f32 %v1487_v46 }
 0x444   : > { %v6158_v47 = vpop.eup %6157 }
 0x445   : > { %v1490_v48 = vpop.xlane.xlu0 %1489  ;;  %v1511_v49 = vmul.f32 %v6158_v47, %v7028_v6 }
 0x446   : > { %6163 = vrcp.f32 %v1490_v48 }
 0x447   : > { %v1519_v50 = vpack.c.bf16 %v1511_v49, %v1511_v49 }
 0x448   : > { %v6160_v51 = vpop.eup %6159 }
 0x449   : > { %5654 = vmatmul.mubr.msk.bf16.vlgmr.msra.gmra.mrb[16].mxu1 %vm1529_vm6, %v1519_v50  ;;  %v1493_v53 = vpop.xlane.xlu1 %1492  ;;  %v1512_v56 = vmul.f32 %v6160_v51, %v7032_v11 }
 0x44a   : > { %5664 = vmatpush3.bf16.msra.mxu1 %v1631_v52  ;;  %6165 = vrcp.f32 %v1493_v53  ;;  %5665 = vmatprep.mubr.msk.bf16.mxu1 %vm6525_vm1, %v6524_v4 }
 0x44b   : > { %v1520_v57 = vpack.c.bf16 %v1512_v56, %v1512_v56  ;;  %5675 = vmatprep.subr.bf16.mxu1 %v6524_v4 }
 0x44c   : > { %v6162_v58 = vpop.eup %6161 }
 0x44d   : > { %5660 = vmatmul.mubr.msk.bf16.vlgmr.msra.gmra.mrb[20].mxu0 %vm1529_vm6, %v1520_v57  ;;  %v1496_v54 = vpop.xlane.xlu0 %1495  ;;  %v1513_v60 = vmul.f32 %v6162_v58, %v7036_v14  ;;  %v1866_v3 = vpop.permute.xlu1 %1865 }
 0x44e   : > { %5670 = vmatpush3.bf16.msra.mxu0 %v1679_v59  ;;  %6167 = vrcp.f32 %v1496_v54  ;;  %5671 = vmatprep.mubr.msk.bf16.mxu0 %vm6525_vm1, %v6524_v4  ;;  %v1871_v10 = vsel %vm1533_vm4, %v1866_v3, 0 }
 0x44f   : > { %v1521_v62 = vpack.c.bf16 %v1513_v60, %v1513_v60  ;;  %5681 = vmatprep.subr.bf16.mxu0 %v6524_v4 }
 0x450   : > { %v6164_v63 = vpop.eup %6163 }
 0x451   : > { %5666 = vmatmul.mubr.msk.bf16.vlgmr.msra.gmra.mrb[20].mxu1 %vm1529_vm6, %v1521_v62  ;;  %v1514_v55 = vmul.f32 %v6164_v63, %v7040_v18  ;;  %v1818_v7 = vpop.permute.xlu0 %1817 }
 0x452   : > { %5676 = vmatpush3.bf16.msra.mxu1 %v1727_v0  ;;  %5677 = vmatprep.mubr.msk.bf16.mxu1 %vm6525_vm1, %v6524_v4  ;;  %v1823_v61 = vsel %vm1533_vm4, %v1818_v7, 0 }
 0x453   : > { %v1522_v1 = vpack.c.bf16 %v1514_v55, %v1514_v55  ;;  %5687 = vmatprep.subr.bf16.mxu1 %v6524_v4 }
 0x454   : > { %v6166_v2 = vpop.eup %6165 }
 0x455   : > { %5672 = vmatmul.mubr.msk.bf16.vlgmr.msra.gmra.mrb[24].mxu0 %vm1529_vm6, %v1522_v1  ;;  %v1515_v6 = vmul.f32 %v6166_v2, %v7044_v20 }
 0x456   : > { %5682 = vmatpush3.bf16.msra.mxu0 %v1775_v5  ;;  %5683 = vmatprep.mubr.msk.bf16.mxu0 %vm6525_vm1, %v6524_v4 }
 0x457   : > { %v1523_v8 = vpack.c.bf16 %v1515_v6, %v1515_v6  ;;  %5693 = vmatprep.subr.bf16.mxu0 %v6524_v4 }
 0x458   : > { %v6168_v9 = vpop.eup %6167 }
 0x459   : > { %5678 = vmatmul.mubr.msk.bf16.vlgmr.msra.gmra.mrb[24].mxu1 %vm1529_vm6, %v1523_v8  ;;  %v1516_v11 = vmul.f32 %v6168_v9, %v7048_v22 }
 0x45a   : > { %5688 = vmatpush3.bf16.msra.mxu1 %v1823_v61  ;;  %5689 = vmatprep.mubr.msk.bf16.mxu1 %vm6525_vm1, %v6524_v4 }
 0x45b   : > { %v1524_v12 = vpack.c.bf16 %v1516_v11, %v1516_v11  ;;  %5699 = vmatprep.subr.bf16.mxu1 %v6524_v4 }
 0x45d   : > { %5684 = vmatmul.mubr.msk.bf16.vlgmr.msra.gmra.mrb[28].mxu0 %vm1529_vm6, %v1524_v12 }
 0x45e   : > { %5694 = vmatpush3.bf16.msra.mxu0 %v1871_v10  ;;  %5695 = vmatprep.mubr.msk.bf16.mxu0 %vm6525_vm1, %v6524_v4 }
 0x45f   : > { %5705 = vmatprep.subr.bf16.mxu0 %v6524_v4 }
 0x47e   : > { %v1499_v13 = vpop.xlane.xlu1 %1498 }
 0x47f   : > { %6169 = vrcp.f32 %v1499_v13 }
 0x482   : > { %v1966_v14 = vpop.permute.xlu1 %1965  ;;  %v1502_v16 = vpop.xlane.xlu0 %1501 }
 0x483   : > { %6171 = vrcp.f32 %v1502_v16  ;;  %v1971_v36 = vsel %vm1032_vm3, %v1966_v14, 0 }
 0x486   : > { %v1964_v17 = vpop.permute.xlu1 %1963  ;;  %v1916_v18 = vpop.permute.xlu0 %1915 }
 0x487   : > { %v1921_v25 = vsel %vm1032_vm3, %v1916_v18, 0 }
 0x489   : > { %v6170_v19 = vpop.eup %6169 }
 0x48a   : > { %v2066_v20 = vpop.permute.xlu1 %2065  ;;  %v1914_v21 = vpop.permute.xlu0 %1913  ;;  %v1517_v22 = vmul.f32 %v6170_v19, %v7057_v34 }
 0x48b   : > { %v2071_v44 = vsel %vm1032_vm3, %v2066_v20, 0 }
 0x48c   : > { %v1525_v23 = vpack.c.bf16 %v1517_v22, %v1517_v22 }
 0x48d   : > { %v6172_v24 = vpop.eup %6171 }
 0x48e   : > { %v2064_v27 = vpop.permute.xlu1 %2063  ;;  %5690 = vmatmul.mubr.msk.bf16.vlgmr.msra.gmra.mrb[28].mxu1 %vm1529_vm6, %v1525_v23  ;;  %v2016_v29 = vpop.permute.xlu0 %2015  ;;  %v1518_v30 = vmul.f32 %v6172_v24, %v7061_v40 }
 0x48f   : > { %5700 = vmatpush3.bf16.xpose.msra.mxu1 %v1921_v25  ;;  %5701 = vmatprep.mubr.msk.bf16.mxu1 %vm6525_vm1, %v6524_v4  ;;  %v2021_v40 = vsel %vm1032_vm3, %v2016_v29, 0 }
 0x490   : > { %v1526_v33 = vpack.c.bf16 %v1518_v30, %v1518_v30  ;;  %5711 = vmatprep.subr.bf16.mxu1 %v6524_v4 }
 0x492   : > { %5696 = vmatmul.mubr.msk.bf16.vlgmr.msra.gmra.mrb[32].mxu0 %vm1529_vm6, %v1526_v33  ;;  %v2014_v34 = vpop.permute.xlu0 %2013  ;;  %v2166_v41 = vpop.permute.xlu1 %2165 }
 0x493   : > { %5706 = vmatpush3.bf16.xpose.msra.mxu0 %v1971_v36  ;;  %5707 = vmatprep.mubr.msk.bf16.mxu0 %vm6525_vm1, %v6524_v4  ;;  %v2171_v48 = vsel %vm1032_vm3, %v2166_v41, 0 }
 0x494   : > { %5717 = vmatprep.subr.bf16.mxu0 %v6524_v4 }
 0x496   : > { %5702 = vmatmul.mubr.msk.bf16.vlgmr.msra.gmra.mrb[32].mxu1 %vm1032_vm3, %v1914_v21  ;;  %v2116_v42 = vpop.permute.xlu0 %2115  ;;  %v2164_v43 = vpop.permute.xlu1 %2163 }
 0x497   : > { %5712 = vmatpush3.bf16.xpose.msra.mxu1 %v2021_v40  ;;  %5713 = vmatprep.mubr.msk.bf16.mxu1 %vm6525_vm1, %v6524_v4  ;;  %v2121_v46 = vsel %vm1032_vm3, %v2116_v42, 0 }
 0x498   : > { %5723 = vmatprep.subr.bf16.mxu1 %v6524_v4 }
 0x49a   : > { %5708 = vmatmul.mubr.msk.bf16.vlgmr.msra.gmra.mrb[36].mxu0 %vm1032_vm3, %v1964_v17  ;;  %v2114_v45 = vpop.permute.xlu0 %2113  ;;  %v2266_v47 = vpop.permute.xlu1 %2265 }
 0x49b   : > { %5718 = vmatpush3.bf16.xpose.msra.mxu0 %v2071_v44  ;;  %5719 = vmatprep.mubr.msk.bf16.mxu0 %vm6525_vm1, %v6524_v4  ;;  %v2271_v53 = vsel %vm1032_vm3, %v2266_v47, 0 }
 0x49c   : > { %5729 = vmatprep.subr.bf16.mxu0 %v6524_v4 }
 0x49e   : > { %5714 = vmatmul.mubr.msk.bf16.vlgmr.msra.gmra.mrb[36].mxu1 %vm1032_vm3, %v2014_v34  ;;  %v2216_v49 = vpop.permute.xlu0 %2215  ;;  %v2264_v50 = vpop.permute.xlu1 %2263 }
 0x49f   : > { %5724 = vmatpush3.bf16.xpose.msra.mxu1 %v2121_v46  ;;  %5725 = vmatprep.mubr.msk.bf16.mxu1 %vm6525_vm1, %v6524_v4  ;;  %v2221_v51 = vsel %vm1032_vm3, %v2216_v49, 0 }
 0x4a0   : > { %5735 = vmatprep.subr.bf16.mxu1 %v6524_v4 }
 0x4a2   : > { %5720 = vmatmul.mubr.msk.bf16.vlgmr.msra.gmra.mrb[40].mxu0 %vm1032_vm3, %v2064_v27  ;;  %v2214_v52 = vpop.permute.xlu0 %2213  ;;  %v2418_v56 = vpop.permute.xlu1 %2417 }
 0x4a3   : > { %5730 = vmatpush3.bf16.xpose.msra.mxu0 %v2171_v48  ;;  %5731 = vmatprep.mubr.msk.bf16.mxu0 %vm6525_vm1, %v6524_v4  ;;  %v2423_v57 = vsel %vm1533_vm4, %v2418_v56, 0 }
 0x4a4   : > { %5741 = vmatprep.subr.bf16.mxu0 %v6524_v4 }
 0x4a6   : > { %5726 = vmatmul.mubr.msk.bf16.vlgmr.msra.gmra.mrb[40].mxu1 %vm1032_vm3, %v2114_v45  ;;  %v2466_v58 = vpop.permute.xlu0 %2465 }
 0x4a7   : > { %5736 = vmatpush3.bf16.xpose.msra.mxu1 %v2221_v51  ;;  %5737 = vmatprep.mubr.msk.bf16.mxu1 %vm6525_vm1, %v6524_v4  ;;  %v2471_v59 = vsel %vm1533_vm4, %v2466_v58, 0 }
 0x4a8   : > { %5747 = vmatprep.subr.bf16.mxu1 %v6524_v4 }
 0x4aa   : > { %5732 = vmatmul.mubr.msk.bf16.vlgmr.msra.gmra.mrb[44].mxu0 %vm1032_vm3, %v2164_v43 }
 0x4ab   : > { %5742 = vmatpush3.bf16.xpose.msra.mxu0 %v2271_v53  ;;  %5743 = vmatprep.mubr.msk.bf16.mxu0 %vm6525_vm1, %v6524_v4 }
 0x4ac   : > { %5753 = vmatprep.subr.bf16.mxu0 %v6524_v4 }
 0x4ae   : > { %5738 = vmatmul.mubr.msk.bf16.vlgmr.msra.gmra.mrb[44].mxu1 %vm1032_vm3, %v2214_v52 }
 0x4af   : > { %5748 = vmatpush3.bf16.msra.mxu1 %v2423_v57  ;;  %5749 = vmatprep.mubr.msk.bf16.mxu1 %vm6525_vm1, %v6524_v4 }
 0x4b0   : > { %5759 = vmatprep.subr.bf16.mxu1 %v6524_v4 }
 0x4b2   : > { %5744 = vmatmul.mubr.msk.bf16.vlgmr.msra.gmra.mrb[48].mxu0 %vm1032_vm3, %v2264_v50 }
 0x4b3   : > { %5754 = vmatpush3.bf16.msra.mxu0 %v2471_v59  ;;  %5755 = vmatprep.mubr.msk.bf16.mxu0 %vm6525_vm1, %v6524_v4 }
 0x4b4   : > { %5765 = vmatprep.subr.bf16.mxu0 %v6524_v4 }
 0x51c   : > { %v7179_v54 = vpop.f32.mrb[16].mxu1 }
 0x51d   : > { %v5655_v60 = vpop.f32.mrb[17].mxu1 }
 0x51e   : > { %v1574_v62 = vpop.f32.mrb[18].mxu1 }
 0x51f   : > { %v5656_v63 = vpop.f32.mrb[19].mxu1 }
 0x520   : > { %v7181_v0 = vpop.f32.mrb[20].mxu0 }
 0x521   : > { %v5661_v55 = vpop.f32.mrb[21].mxu0 }
 0x522   : > { %v1622_v1 = vpop.f32.mrb[22].mxu0 }
 0x523   : > { %v5662_v2 = vpop.f32.mrb[23].mxu0 }
 0x524   : > { %v7183_v5 = vpop.f32.mrb[20].mxu1 }
 0x525   : > { %v5667_v6 = vpop.f32.mrb[21].mxu1 }
 0x526   : > { %v1670_v7 = vpop.f32.mrb[22].mxu1 }
 0x527   : > { %v5668_v8 = vpop.f32.mrb[23].mxu1 }
 0x528   : > { %v7185_v9 = vpop.f32.mrb[24].mxu0 }
 0x529   : > { %v5673_v61 = vpop.f32.mrb[25].mxu0 }
 0x52a   : > { %v1718_v11 = vpop.f32.mrb[26].mxu0 }
 0x52b   : > { %v5674_v3 = vpop.f32.mrb[27].mxu0 }
 0x52c   : > { %v7187_v12 = vpop.f32.mrb[24].mxu1 }
 0x52d   : > { %v5679_v10 = vpop.f32.mrb[25].mxu1 }
 0x52e   : > { %v1766_v13 = vpop.f32.mrb[26].mxu1 }
 0x52f   : > { %v5680_v14 = vpop.f32.mrb[27].mxu1 }
 0x530   : > { %v7189_v16 = vpop.f32.mrb[28].mxu0 }
 0x531   : > { %v5685_v17 = vpop.f32.mrb[29].mxu0 }
 0x532   : > { %v1814_v18 = vpop.f32.mrb[30].mxu0 }
 0x533   : > { %v5686_v19 = vpop.f32.mrb[31].mxu0 }
 0x561   : > { %v7191_v20 = vpop.f32.mrb[28].mxu1 }
 0x562   : > { %v5691_v21 = vpop.f32.mrb[29].mxu1 }
 0x563   : > { %v1862_v22 = vpop.f32.mrb[30].mxu1 }
 0x564   : > { %v5692_v23 = vpop.f32.mrb[31].mxu1 }
 0x565   : > { %v7193_v24 = vpop.f32.mrb[32].mxu0 }
 0x566   : > { %v5697_v25 = vpop.f32.mrb[33].mxu0 }
 0x567   : > { %v1910_v27 = vpop.f32.mrb[34].mxu0 }
 0x568   : > { %v5698_v29 = vpop.f32.mrb[35].mxu0 }
 0x569   : > { %v1957_v30 = vpop.f32.mrb[32].mxu1 }
 0x56a   : > { %v2313_v33 = vmul.f32 0.35355338, %v1957_v30  ;;  %v5703_v36 = vpop.f32.mrb[33].mxu1 }
 0x56b   : > { %v1960_v34 = vpop.f32.mrb[34].mxu1 }
 0x56c   : > { %v5704_v41 = vpop.f32.mrb[35].mxu1  ;;  %v2321_v40 = vsel %vm1430_vm5, %v2313_v33, -inf  ;;  %v7210_v34 = vpop.permute.xlu1 %2513 }
 0x56d   : > { %2322 = vmax.xlane.f32.xlu0 %v2321_v40  ;;  %v2007_v42 = vpop.f32.mrb[36].mxu0 }
 0x56e   : > { %v2314_v43 = vmul.f32 0.35355338, %v2007_v42  ;;  %v5709_v44 = vpop.f32.mrb[37].mxu0 }
 0x56f   : > { %v2010_v45 = vpop.f32.mrb[38].mxu0 }
 0x570   : > { %v5710_v46 = vpop.f32.mrb[39].mxu0  ;;  %v2324_v47 = vsel %vm1430_vm5, %v2314_v43, -inf  ;;  %v7212_v41 = vpop.permute.xlu1 %2561 }
 0x571   : > { %v2057_v48 = vpop.f32.mrb[36].mxu1  ;;  %2325 = vmax.xlane.f32.xlu1 %v2324_v47 }
 0x572   : > { %v2315_v49 = vmul.f32 0.35355338, %v2057_v48  ;;  %v5715_v50 = vpop.f32.mrb[37].mxu1 }
 0x573   : > { %v2060_v51 = vpop.f32.mrb[38].mxu1 }
 0x574   : > { %v5716_v52 = vpop.f32.mrb[39].mxu1  ;;  %v2327_v53 = vsel %vm1430_vm5, %v2315_v49, -inf }
 0x575   : > { %2328 = vmax.xlane.f32.xlu0 %v2327_v53  ;;  %v2107_v56 = vpop.f32.mrb[40].mxu0 }
 0x576   : > { %v2316_v57 = vmul.f32 0.35355338, %v2107_v56  ;;  %v5721_v58 = vpop.f32.mrb[41].mxu0 }
 0x577   : > { %v2110_v59 = vpop.f32.mrb[42].mxu0 }
 0x578   : > { %v5722_v60 = vpop.f32.mrb[43].mxu0  ;;  %v2330_v62 = vsel %vm1430_vm5, %v2316_v57, -inf }
 0x579   : > { %v2157_v63 = vpop.f32.mrb[40].mxu1  ;;  %2331 = vmax.xlane.f32.xlu0 %v2330_v62 }
 0x57a   : > { %v2317_v55 = vmul.f32 0.35355338, %v2157_v63  ;;  %v5727_v1 = vpop.f32.mrb[41].mxu1 }
 0x57b   : > { %v2160_v2 = vpop.f32.mrb[42].mxu1 }
 0x57c   : > { %v5728_v6 = vpop.f32.mrb[43].mxu1  ;;  %v2333_v7 = vsel %vm1430_vm5, %v2317_v55, -inf }
 0x57d   : > { %2334 = vmax.xlane.f32.xlu1 %v2333_v7  ;;  %v2207_v8 = vpop.f32.mrb[44].mxu0 }
 0x57e   : > { %v2318_v61 = vmul.f32 0.35355338, %v2207_v8  ;;  %v5733_v11 = vpop.f32.mrb[45].mxu0 }
 0x57f   : > { %v2210_v3 = vpop.f32.mrb[46].mxu0 }
 0x580   : > { %v5734_v10 = vpop.f32.mrb[47].mxu0  ;;  %v2336_v13 = vsel %vm1430_vm5, %v2318_v61, -inf }
 0x581   : > { %v2257_v14 = vpop.f32.mrb[44].mxu1  ;;  %2337 = vmax.xlane.f32.xlu0 %v2336_v13 }
 0x582   : > { %v7201_v17 = vmul.f32 0.35355338, %v2257_v14  ;;  %v5739_v18 = vpop.f32.mrb[45].mxu1 }
 0x583   : > { %v2260_v19 = vpop.f32.mrb[46].mxu1 }
 0x584   : > { %v5740_v21 = vpop.f32.mrb[47].mxu1  ;;  %v2339_v22 = vsel %vm1430_vm5, %v7201_v17, -inf }
 0x585   : > { %2340 = vmax.xlane.f32.xlu1 %v2339_v22  ;;  %v2307_v23 = vpop.f32.mrb[48].mxu0 }
 0x586   : > { %v2320_v25 = vmul.f32 0.35355338, %v2307_v23  ;;  %v5745_v27 = vpop.f32.mrb[49].mxu0 }
 0x587   : > { %v2310_v29 = vpop.f32.mrb[50].mxu0 }
 0x588   : > { %v5746_v30 = vpop.f32.mrb[51].mxu0  ;;  %v2342_v36 = vsel %vm1430_vm5, %v2320_v25, -inf }
 0x589   : > { %2343 = vmax.xlane.f32.xlu0 %v2342_v36 }
 0x596   : > { %2657 = vrot.lane.b32.xlu1 %v6939_v37, %s6531_s10 }
 0x59f   : > { %2609 = vrot.lane.b32.xlu0 %v6936_v35, %s6531_s10 }
 0x5fa   : > { %v2323_v40 = vpop.xlane.xlu0 %2322 }
 0x5fb   : > { %v2345_v42 = vsub.f32 %v2313_v33, %v2323_v40 }
 0x5fd   : > { %v2353_v44 = vmul.f32 1.442695, %v2345_v42 }
 0x5fe   : > { %v2326_v45 = vpop.xlane.xlu1 %2325 }
 0x5ff   : > { %6173 = vpow2.f32 %v2353_v44  ;;  %v2346_v46 = vsub.f32 %v2314_v43, %v2326_v45 }
 0x601   : > { %v2355_v47 = vmul.f32 1.442695, %v2346_v46 }
 0x602   : > { %v2329_v48 = vpop.xlane.xlu0 %2328 }
 0x603   : > { %6175 = vpow2.f32 %v2355_v47  ;;  %v2347_v50 = vsub.f32 %v2315_v49, %v2329_v48  ;;  %v2519_v48 = vsel %vm1533_vm4, %v7210_v34, 0 }
 0x605   : > { %v2357_v51 = vmul.f32 1.442695, %v2347_v50 }
 0x606   : > { %v2332_v52 = vpop.xlane.xlu0 %2331 }
 0x607   : > { %6177 = vpow2.f32 %v2357_v51  ;;  %v2348_v53 = vsub.f32 %v2316_v57, %v2332_v52 }
 0x609   : > { %v7214_v56 = vpop.eup %6173  ;;  %v2359_v58 = vmul.f32 1.442695, %v2348_v53 }
 0x60a   : > { %v2335_v59 = vpop.xlane.xlu1 %2334  ;;  %v2369_v60 = vsel %vm1430_vm5, %v7214_v56, 0.0 }
 0x60b   : > { %6179 = vpow2.f32 %v2359_v58  ;;  %v2349_v33 = vsub.f32 %v2317_v55, %v2335_v59  ;;  %2370 = vadd.xlane.f32.xlu1 %v2369_v60 }
 0x60d   : > { %v7218_v62 = vpop.eup %6175  ;;  %v2361_v43 = vmul.f32 1.442695, %v2349_v33 }
 0x60e   : > { %v2338_v63 = vpop.xlane.xlu0 %2337  ;;  %v2372_v49 = vsel %vm1430_vm5, %v7218_v62, 0.0 }
 0x60f   : > { %6181 = vpow2.f32 %v2361_v43  ;;  %v2350_v1 = vsub.f32 %v2318_v61, %v2338_v63  ;;  %2373 = vadd.xlane.f32.xlu0 %v2372_v49 }
 0x611   : > { %v7222_v57 = vpop.eup %6177  ;;  %v2363_v2 = vmul.f32 1.442695, %v2350_v1 }
 0x612   : > { %v2375_v6 = vsel %vm1430_vm5, %v7222_v57, 0.0  ;;  %v2341_v10 = vpop.xlane.xlu1 %2340 }
 0x613   : > { %6183 = vpow2.f32 %v2363_v2  ;;  %2376 = vadd.xlane.f32.xlu1 %v2375_v6  ;;  %v2351_v13 = vsub.f32 %v7201_v17, %v2341_v10 }
 0x615   : > { %v7226_v55 = vpop.eup %6179  ;;  %v2365_v18 = vmul.f32 1.442695, %v2351_v13 }
 0x616   : > { %v2378_v7 = vsel %vm1430_vm5, %v7226_v55, 0.0  ;;  %v2344_v14 = vpop.xlane.xlu0 %2343  ;;  %v2658_v17 = vpop.permute.xlu1 %2657 }
 0x617   : > { %2379 = vadd.xlane.f32.xlu0 %v2378_v7  ;;  %v2352_v19 = vsub.f32 %v2320_v25, %v2344_v14  ;;  %6185 = vpow2.f32 %v2365_v18  ;;  %v2663_v63 = vsel %vm1533_vm4, %v2658_v17, 0 }
 0x619   : > { %v7230_v8 = vpop.eup %6181  ;;  %v2367_v21 = vmul.f32 1.442695, %v2352_v19 }
 0x61a   : > { %v2381_v61 = vsel %vm1430_vm5, %v7230_v8, 0.0  ;;  %v2610_v25 = vpop.permute.xlu0 %2609 }
 0x61b   : > { %2382 = vadd.xlane.f32.xlu1 %v2381_v61  ;;  %6187 = vpow2.f32 %v2367_v21  ;;  %v2615_v33 = vsel %vm1533_vm4, %v2610_v25, 0 }
 0x61d   : > { %v7234_v11 = vpop.eup %6183 }
 0x61e   : > { %v2384_v3 = vsel %vm1430_vm5, %v7234_v11, 0.0 }
 0x61f   : > { %2385 = vadd.xlane.f32.xlu0 %v2384_v3 }
 0x621   : > { %v7243_v22 = vpop.eup %6185 }
 0x622   : > { %v2387_v23 = vsel %vm1430_vm5, %v7243_v22, 0.0 }
 0x625   : > { %v7247_v27 = vpop.eup %6187 }
 0x626   : > { %v2390_v29 = vsel %vm1430_vm5, %v7247_v27, 0.0 }
 0x62c   : > { %2753 = vrot.lane.b32.xlu1 %v6945_v39, %s6531_s10 }
 0x635   : > { %2705 = vrot.lane.b32.xlu0 %v6942_v38, %s6531_s10 }
 0x650   : > { %2388 = vadd.xlane.f32.xlu1 %v2387_v23 }
 0x654   : > { %2391 = vadd.xlane.f32.xlu0 %v2390_v29 }
 0x661   : > { %2853 = vrot.lane.b32.xlu1 %v6929_v31, %s6532_s13 }
 0x665   : > { %2851 = vrot.lane.b32.xlu1 %v6929_v31, %s6533_s21 }
 0x669   : > { %2953 = vrot.lane.b32.xlu1 %v6932_v32, %s6532_s13 }
 0x66a   : > { %2803 = vrot.lane.b32.xlu0 %v6923_v26, %s6532_s13 }
 0x66d   : > { %2951 = vrot.lane.b32.xlu1 %v6932_v32, %s6533_s21 }
 0x66e   : > { %2801 = vrot.lane.b32.xlu0 %v6923_v26, %s6533_s21 }
 0x671   : > { %3053 = vrot.lane.b32.xlu1 %v6939_v37, %s6532_s13 }
 0x672   : > { %2903 = vrot.lane.b32.xlu0 %v6925_v28, %s6532_s13 }
 0x675   : > { %3051 = vrot.lane.b32.xlu1 %v6939_v37, %s6533_s21 }
 0x676   : > { %2901 = vrot.lane.b32.xlu0 %v6925_v28, %s6533_s21 }
 0x679   : > { %3153 = vrot.lane.b32.xlu1 %v6945_v39, %s6532_s13 }
 0x67a   : > { %3003 = vrot.lane.b32.xlu0 %v6936_v35, %s6532_s13 }
 0x67d   : > { %3151 = vrot.lane.b32.xlu1 %v6945_v39, %s6533_s21 }
 0x67e   : > { %3001 = vrot.lane.b32.xlu0 %v6936_v35, %s6533_s21 }
 0x681   : > { %3305 = vrot.lane.b32.xlu1 %v6923_v26, %s6534_s8 }
 0x682   : > { %3103 = vrot.lane.b32.xlu0 %v6942_v38, %s6532_s13 }
 0x685   : > { %3401 = vrot.lane.b32.xlu1 %v6925_v28, %s6534_s8 }
 0x686   : > { %3101 = vrot.lane.b32.xlu0 %v6942_v38, %s6533_s21 }
 0x689   : > { %3449 = vrot.lane.b32.xlu1 %v6932_v32, %s6534_s8 }
 0x68a   : > { %3353 = vrot.lane.b32.xlu0 %v6929_v31, %s6534_s8 }
 0x698   : > { %v2371_v30 = vpop.xlane.xlu1 %2370 }
 0x699   : > { %6189 = vrcp.f32 %v2371_v30 }
 0x69c   : > { %v2374_v36 = vpop.xlane.xlu0 %2373 }
 0x69d   : > { %6191 = vrcp.f32 %v2374_v36 }
 0x6a0   : > { %v2377_v40 = vpop.xlane.xlu1 %2376 }
 0x6a1   : > { %6193 = vrcp.f32 %v2377_v40 }
 0x6a3   : > { %v6190_v42 = vpop.eup %6189 }
 0x6a4   : > { %v2380_v44 = vpop.xlane.xlu0 %2379  ;;  %v2401_v45 = vmul.f32 %v6190_v42, %v7214_v56  ;;  %v2567_v56 = vsel %vm1533_vm4, %v7212_v41, 0 }
 0x6a5   : > { %6195 = vrcp.f32 %v2380_v44 }
 0x6a6   : > { %v2409_v46 = vpack.c.bf16 %v2401_v45, %v2401_v45 }
 0x6a7   : > { %v6192_v47 = vpop.eup %6191 }
 0x6a8   : > { %5750 = vmatmul.mubr.msk.bf16.vlgmr.msra.gmra.mrb[48].mxu1 %vm1529_vm6, %v2409_v46  ;;  %v2383_v50 = vpop.xlane.xlu1 %2382  ;;  %v2402_v51 = vmul.f32 %v6192_v47, %v7218_v62 }
 0x6a9   : > { %5760 = vmatpush3.bf16.msra.mxu1 %v2519_v48  ;;  %6197 = vrcp.f32 %v2383_v50  ;;  %5761 = vmatprep.mubr.msk.bf16.mxu1 %vm6525_vm1, %v6524_v4 }
 0x6aa   : > { %v2410_v52 = vpack.c.bf16 %v2402_v51, %v2402_v51  ;;  %5771 = vmatprep.subr.bf16.mxu1 %v6524_v4 }
 0x6ab   : > { %v6194_v53 = vpop.eup %6193 }
 0x6ac   : > { %5756 = vmatmul.mubr.msk.bf16.vlgmr.msra.gmra.mrb[52].mxu0 %vm1529_vm6, %v2410_v52  ;;  %v2386_v34 = vpop.xlane.xlu0 %2385  ;;  %v2403_v58 = vmul.f32 %v6194_v53, %v7222_v57  ;;  %v2754_v7 = vpop.permute.xlu1 %2753 }
 0x6ad   : > { %5766 = vmatpush3.bf16.msra.mxu0 %v2567_v56  ;;  %6199 = vrcp.f32 %v2386_v34  ;;  %5767 = vmatprep.mubr.msk.bf16.mxu0 %vm6525_vm1, %v6524_v4  ;;  %v2759_v61 = vsel %vm1533_vm4, %v2754_v7, 0 }
 0x6ae   : > { %v2411_v59 = vpack.c.bf16 %v2403_v58, %v2403_v58  ;;  %5777 = vmatprep.subr.bf16.mxu0 %v6524_v4 }
 0x6af   : > { %v6196_v60 = vpop.eup %6195 }
 0x6b0   : > { %5762 = vmatmul.mubr.msk.bf16.vlgmr.msra.gmra.mrb[52].mxu1 %vm1529_vm6, %v2411_v59  ;;  %v2404_v41 = vmul.f32 %v6196_v60, %v7226_v55  ;;  %v2706_v1 = vpop.permute.xlu0 %2705 }
 0x6b1   : > { %5772 = vmatpush3.bf16.msra.mxu1 %v2615_v33  ;;  %5773 = vmatprep.mubr.msk.bf16.mxu1 %vm6525_vm1, %v6524_v4  ;;  %v2711_v6 = vsel %vm1533_vm4, %v2706_v1, 0 }
 0x6b2   : > { %v2412_v62 = vpack.c.bf16 %v2404_v41, %v2404_v41  ;;  %5783 = vmatprep.subr.bf16.mxu1 %v6524_v4 }
 0x6b3   : > { %v6198_v43 = vpop.eup %6197 }
 0x6b4   : > { %5768 = vmatmul.mubr.msk.bf16.vlgmr.msra.gmra.mrb[56].mxu0 %vm1529_vm6, %v2412_v62  ;;  %v2405_v49 = vmul.f32 %v6198_v43, %v7230_v8 }
 0x6b5   : > { %5778 = vmatpush3.bf16.msra.mxu0 %v2663_v63  ;;  %5779 = vmatprep.mubr.msk.bf16.mxu0 %vm6525_vm1, %v6524_v4 }
 0x6b6   : > { %v2413_v57 = vpack.c.bf16 %v2405_v49, %v2405_v49  ;;  %5789 = vmatprep.subr.bf16.mxu0 %v6524_v4 }
 0x6b7   : > { %v6200_v2 = vpop.eup %6199 }
 0x6b8   : > { %5774 = vmatmul.mubr.msk.bf16.vlgmr.msra.gmra.mrb[56].mxu1 %vm1529_vm6, %v2413_v57  ;;  %v2406_v55 = vmul.f32 %v6200_v2, %v7234_v11 }
 0x6b9   : > { %5784 = vmatpush3.bf16.msra.mxu1 %v2711_v6  ;;  %5785 = vmatprep.mubr.msk.bf16.mxu1 %vm6525_vm1, %v6524_v4 }
 0x6ba   : > { %v2414_v8 = vpack.c.bf16 %v2406_v55, %v2406_v55  ;;  %5795 = vmatprep.subr.bf16.mxu1 %v6524_v4 }
 0x6bc   : > { %5780 = vmatmul.mubr.msk.bf16.vlgmr.msra.gmra.mrb[60].mxu0 %vm1529_vm6, %v2414_v8 }
 0x6bd   : > { %5790 = vmatpush3.bf16.msra.mxu0 %v2759_v61  ;;  %5791 = vmatprep.mubr.msk.bf16.mxu0 %vm6525_vm1, %v6524_v4 }
 0x6be   : > { %5801 = vmatprep.subr.bf16.mxu0 %v6524_v4 }
 0x6dd   : > { %v2389_v3 = vpop.xlane.xlu1 %2388 }
 0x6de   : > { %6201 = vrcp.f32 %v2389_v3 }
 0x6e1   : > { %v2854_v11 = vpop.permute.xlu1 %2853  ;;  %v2392_v10 = vpop.xlane.xlu0 %2391 }
 0x6e2   : > { %6203 = vrcp.f32 %v2392_v10  ;;  %v2859_v44 = vsel %vm1032_vm3, %v2854_v11, 0 }
 0x6e5   : > { %v2852_v13 = vpop.permute.xlu1 %2851  ;;  %v2804_v14 = vpop.permute.xlu0 %2803 }
 0x6e6   : > { %v2809_v25 = vsel %vm1032_vm3, %v2804_v14, 0 }
 0x6e8   : > { %v6202_v18 = vpop.eup %6201 }
 0x6e9   : > { %v2954_v19 = vpop.permute.xlu1 %2953  ;;  %v2802_v21 = vpop.permute.xlu0 %2801  ;;  %v2407_v23 = vmul.f32 %v6202_v18, %v7243_v22 }
 0x6ea   : > { %v2959_v48 = vsel %vm1032_vm3, %v2954_v19, 0 }
 0x6eb   : > { %v2415_v29 = vpack.c.bf16 %v2407_v23, %v2407_v23 }
 0x6ec   : > { %v6204_v17 = vpop.eup %6203 }
 0x6ed   : > { %v2952_v30 = vpop.permute.xlu1 %2951  ;;  %5786 = vmatmul.mubr.msk.bf16.vlgmr.msra.gmra.mrb[60].mxu1 %vm1529_vm6, %v2415_v29  ;;  %v2904_v36 = vpop.permute.xlu0 %2903  ;;  %v2408_v40 = vmul.f32 %v6204_v17, %v7247_v27 }
 0x6ee   : > { %5796 = vmatpush3.bf16.xpose.msra.mxu1 %v2809_v25  ;;  %5797 = vmatprep.mubr.msk.bf16.mxu1 %vm6525_vm1, %v6524_v4  ;;  %v2909_v27 = vsel %vm1032_vm3, %v2904_v36, 0 }
 0x6ef   : > { %v2416_v42 = vpack.c.bf16 %v2408_v40, %v2408_v40  ;;  %5807 = vmatprep.subr.bf16.mxu1 %v6524_v4 }
 0x6f1   : > { %5792 = vmatmul.mubr.msk.bf16.vlgmr.msra.gmra.mrb[64].mxu0 %vm1529_vm6, %v2416_v42  ;;  %v2902_v22 = vpop.permute.xlu0 %2901  ;;  %v3054_v45 = vpop.permute.xlu1 %3053 }
 0x6f2   : > { %5802 = vmatpush3.bf16.xpose.msra.mxu0 %v2859_v44  ;;  %5803 = vmatprep.mubr.msk.bf16.mxu0 %vm6525_vm1, %v6524_v4  ;;  %v3059_v53 = vsel %vm1032_vm3, %v3054_v45, 0 }
 0x6f3   : > { %5813 = vmatprep.subr.bf16.mxu0 %v6524_v4 }
 0x6f5   : > { %5798 = vmatmul.mubr.msk.bf16.vlgmr.msra.gmra.mrb[64].mxu1 %vm1032_vm3, %v2802_v21  ;;  %v3004_v46 = vpop.permute.xlu0 %3003  ;;  %v3052_v47 = vpop.permute.xlu1 %3051 }
 0x6f6   : > { %5808 = vmatpush3.bf16.xpose.msra.mxu1 %v2909_v27  ;;  %5809 = vmatprep.mubr.msk.bf16.mxu1 %vm6525_vm1, %v6524_v4  ;;  %v3009_v51 = vsel %vm1032_vm3, %v3004_v46, 0 }
 0x6f7   : > { %5819 = vmatprep.subr.bf16.mxu1 %v6524_v4 }
 0x6f9   : > { %5804 = vmatmul.mubr.msk.bf16.vlgmr.msra.gmra.mrb[68].mxu0 %vm1032_vm3, %v2852_v13  ;;  %v3002_v50 = vpop.permute.xlu0 %3001  ;;  %v3154_v52 = vpop.permute.xlu1 %3153 }
 0x6fa   : > { %5814 = vmatpush3.bf16.xpose.msra.mxu0 %v2959_v48  ;;  %5815 = vmatprep.mubr.msk.bf16.mxu0 %vm6525_vm1, %v6524_v4  ;;  %v3159_v60 = vsel %vm1032_vm3, %v3154_v52, 0 }
 0x6fb   : > { %5825 = vmatprep.subr.bf16.mxu0 %v6524_v4 }
 0x6fd   : > { %5810 = vmatmul.mubr.msk.bf16.vlgmr.msra.gmra.mrb[68].mxu1 %vm1032_vm3, %v2902_v22  ;;  %v3104_v56 = vpop.permute.xlu0 %3103  ;;  %v3152_v34 = vpop.permute.xlu1 %3151 }
 0x6fe   : > { %5820 = vmatpush3.bf16.xpose.msra.mxu1 %v3009_v51  ;;  %5821 = vmatprep.mubr.msk.bf16.mxu1 %vm6525_vm1, %v6524_v4  ;;  %v3109_v58 = vsel %vm1032_vm3, %v3104_v56, 0 }
 0x6ff   : > { %5831 = vmatprep.subr.bf16.mxu1 %v6524_v4 }
 0x701   : > { %5816 = vmatmul.mubr.msk.bf16.vlgmr.msra.gmra.mrb[72].mxu0 %vm1032_vm3, %v2952_v30  ;;  %v3102_v59 = vpop.permute.xlu0 %3101  ;;  %v3306_v33 = vpop.permute.xlu1 %3305 }
 0x702   : > { %5826 = vmatpush3.bf16.xpose.msra.mxu0 %v3059_v53  ;;  %5827 = vmatprep.mubr.msk.bf16.mxu0 %vm6525_vm1, %v6524_v4  ;;  %v3311_v41 = vsel %vm1533_vm4, %v3306_v33, 0 }
 0x703   : > { %5837 = vmatprep.subr.bf16.mxu0 %v6524_v4 }
 0x705   : > { %5822 = vmatmul.mubr.msk.bf16.vlgmr.msra.gmra.mrb[72].mxu1 %vm1032_vm3, %v3002_v50  ;;  %v3354_v62 = vpop.permute.xlu0 %3353 }
 0x706   : > { %5832 = vmatpush3.bf16.xpose.msra.mxu1 %v3109_v58  ;;  %5833 = vmatprep.mubr.msk.bf16.mxu1 %vm6525_vm1, %v6524_v4  ;;  %v3359_v43 = vsel %vm1533_vm4, %v3354_v62, 0 }
 0x707   : > { %5843 = vmatprep.subr.bf16.mxu1 %v6524_v4 }
 0x709   : > { %5828 = vmatmul.mubr.msk.bf16.vlgmr.msra.gmra.mrb[76].mxu0 %vm1032_vm3, %v3052_v47 }
 0x70a   : > { %5838 = vmatpush3.bf16.xpose.msra.mxu0 %v3159_v60  ;;  %5839 = vmatprep.mubr.msk.bf16.mxu0 %vm6525_vm1, %v6524_v4 }
 0x70b   : > { %5849 = vmatprep.subr.bf16.mxu0 %v6524_v4 }
 0x70d   : > { %5834 = vmatmul.mubr.msk.bf16.vlgmr.msra.gmra.mrb[76].mxu1 %vm1032_vm3, %v3102_v59 }
 0x70e   : > { %5844 = vmatpush3.bf16.msra.mxu1 %v3311_v41  ;;  %5845 = vmatprep.mubr.msk.bf16.mxu1 %vm6525_vm1, %v6524_v4 }
 0x70f   : > { %5855 = vmatprep.subr.bf16.mxu1 %v6524_v4 }
 0x711   : > { %5840 = vmatmul.mubr.msk.bf16.vlgmr.msra.gmra.mrb[80].mxu0 %vm1032_vm3, %v3152_v34 }
 0x712   : > { %5850 = vmatpush3.bf16.msra.mxu0 %v3359_v43  ;;  %5851 = vmatprep.mubr.msk.bf16.mxu0 %vm6525_vm1, %v6524_v4 }
 0x713   : > { %5861 = vmatprep.subr.bf16.mxu0 %v6524_v4 }
 0x77b   : > { %v7365_v63 = vpop.f32.mrb[48].mxu1 }
 0x77c   : > { %v5751_v49 = vpop.f32.mrb[49].mxu1 }
 0x77d   : > { %v2462_v1 = vpop.f32.mrb[50].mxu1 }
 0x77e   : > { %v5752_v57 = vpop.f32.mrb[51].mxu1 }
 0x77f   : > { %v7367_v2 = vpop.f32.mrb[52].mxu0 }
 0x780   : > { %v5757_v6 = vpop.f32.mrb[53].mxu0 }
 0x781   : > { %v2510_v55 = vpop.f32.mrb[54].mxu0 }
 0x782   : > { %v5758_v7 = vpop.f32.mrb[55].mxu0 }
 0x783   : > { %v7369_v8 = vpop.f32.mrb[52].mxu1 }
 0x784   : > { %v5763_v61 = vpop.f32.mrb[53].mxu1 }
 0x785   : > { %v2558_v3 = vpop.f32.mrb[54].mxu1 }
 0x786   : > { %v5764_v11 = vpop.f32.mrb[55].mxu1 }
 0x787   : > { %v7371_v10 = vpop.f32.mrb[56].mxu0 }
 0x788   : > { %v5769_v13 = vpop.f32.mrb[57].mxu0 }
 0x789   : > { %v2606_v14 = vpop.f32.mrb[58].mxu0 }
 0x78a   : > { %v5770_v18 = vpop.f32.mrb[59].mxu0 }
 0x78b   : > { %v7373_v19 = vpop.f32.mrb[56].mxu1 }
 0x78c   : > { %v5775_v21 = vpop.f32.mrb[57].mxu1 }
 0x78d   : > { %v2654_v23 = vpop.f32.mrb[58].mxu1 }
 0x78e   : > { %v5776_v29 = vpop.f32.mrb[59].mxu1 }
 0x78f   : > { %v7375_v17 = vpop.f32.mrb[60].mxu0 }
 0x790   : > { %v5781_v25 = vpop.f32.mrb[61].mxu0 }
 0x791   : > { %v2702_v30 = vpop.f32.mrb[62].mxu0 }
 0x792   : > { %v5782_v36 = vpop.f32.mrb[63].mxu0 }
 0x7c0   : > { %v7377_v40 = vpop.f32.mrb[60].mxu1 }
 0x7c1   : > { %v5787_v42 = vpop.f32.mrb[61].mxu1 }
 0x7c2   : > { %v2750_v44 = vpop.f32.mrb[62].mxu1 }
 0x7c3   : > { %v5788_v22 = vpop.f32.mrb[63].mxu1 }
 0x7c4   : > { %v7379_v45 = vpop.f32.mrb[64].mxu0 }
 0x7c5   : > { %v5793_v27 = vpop.f32.mrb[65].mxu0 }
 0x7c6   : > { %v2798_v46 = vpop.f32.mrb[66].mxu0 }
 0x7c7   : > { %v5794_v47 = vpop.f32.mrb[67].mxu0 }
 0x7c8   : > { %v2845_v48 = vpop.f32.mrb[64].mxu1 }
 0x7c9   : > { %v3201_v50 = vmul.f32 0.35355338, %v2845_v48  ;;  %v5799_v51 = vpop.f32.mrb[65].mxu1 }
 0x7ca   : > { %v2848_v52 = vpop.f32.mrb[66].mxu1 }
 0x7cb   : > { %v5800_v53 = vpop.f32.mrb[67].mxu1  ;;  %v3209_v56 = vsel %vm1430_vm5, %v3201_v50, -inf }
 0x7cc   : > { %3210 = vmax.xlane.f32.xlu0 %v3209_v56  ;;  %v2895_v34 = vpop.f32.mrb[68].mxu0 }
 0x7cd   : > { %v3202_v58 = vmul.f32 0.35355338, %v2895_v34  ;;  %v5805_v59 = vpop.f32.mrb[69].mxu0 }
 0x7ce   : > { %v2898_v60 = vpop.f32.mrb[70].mxu0 }
 0x7cf   : > { %v5806_v33 = vpop.f32.mrb[71].mxu0  ;;  %v3212_v41 = vsel %vm1430_vm5, %v3202_v58, -inf }
 0x7d0   : > { %v2945_v62 = vpop.f32.mrb[68].mxu1  ;;  %3213 = vmax.xlane.f32.xlu1 %v3212_v41 }
 0x7d1   : > { %v3203_v43 = vmul.f32 0.35355338, %v2945_v62  ;;  %v5811_v49 = vpop.f32.mrb[69].mxu1  ;;  %v7396_v62 = vpop.permute.xlu1 %3401 }
 0x7d2   : > { %v2948_v1 = vpop.f32.mrb[70].mxu1 }
 0x7d3   : > { %v5812_v57 = vpop.f32.mrb[71].mxu1  ;;  %v3215_v6 = vsel %vm1430_vm5, %v3203_v43, -inf }
 0x7d4   : > { %3216 = vmax.xlane.f32.xlu0 %v3215_v6  ;;  %v2995_v55 = vpop.f32.mrb[72].mxu0 }
 0x7d5   : > { %v3204_v7 = vmul.f32 0.35355338, %v2995_v55  ;;  %v5817_v61 = vpop.f32.mrb[73].mxu0  ;;  %v7398_v49 = vpop.permute.xlu1 %3449 }
 0x7d6   : > { %v2998_v3 = vpop.f32.mrb[74].mxu0 }
 0x7d7   : > { %v5818_v11 = vpop.f32.mrb[75].mxu0  ;;  %v3218_v13 = vsel %vm1430_vm5, %v3204_v7, -inf }
 0x7d8   : > { %v3045_v14 = vpop.f32.mrb[72].mxu1  ;;  %3219 = vmax.xlane.f32.xlu0 %v3218_v13 }
 0x7d9   : > { %v3205_v18 = vmul.f32 0.35355338, %v3045_v14  ;;  %v5823_v21 = vpop.f32.mrb[73].mxu1 }
 0x7da   : > { %v3048_v23 = vpop.f32.mrb[74].mxu1 }
 0x7db   : > { %v5824_v29 = vpop.f32.mrb[75].mxu1  ;;  %v3221_v25 = vsel %vm1430_vm5, %v3205_v18, -inf }
 0x7dc   : > { %3222 = vmax.xlane.f32.xlu1 %v3221_v25  ;;  %v3095_v30 = vpop.f32.mrb[76].mxu0 }
 0x7dd   : > { %v3206_v36 = vmul.f32 0.35355338, %v3095_v30  ;;  %v5829_v42 = vpop.f32.mrb[77].mxu0 }
 0x7de   : > { %v3098_v44 = vpop.f32.mrb[78].mxu0 }
 0x7df   : > { %v5830_v22 = vpop.f32.mrb[79].mxu0  ;;  %v3224_v27 = vsel %vm1430_vm5, %v3206_v36, -inf }
 0x7e0   : > { %v3145_v46 = vpop.f32.mrb[76].mxu1  ;;  %3225 = vmax.xlane.f32.xlu0 %v3224_v27 }
 0x7e1   : > { %v7387_v47 = vmul.f32 0.35355338, %v3145_v46  ;;  %v5835_v48 = vpop.f32.mrb[77].mxu1 }
 0x7e2   : > { %v3148_v51 = vpop.f32.mrb[78].mxu1 }
 0x7e3   : > { %v5836_v52 = vpop.f32.mrb[79].mxu1  ;;  %v3227_v53 = vsel %vm1430_vm5, %v7387_v47, -inf }
 0x7e4   : > { %3228 = vmax.xlane.f32.xlu1 %v3227_v53  ;;  %v3195_v56 = vpop.f32.mrb[80].mxu0 }
 0x7e5   : > { %v3208_v34 = vmul.f32 0.35355338, %v3195_v56  ;;  %v5841_v59 = vpop.f32.mrb[81].mxu0 }
 0x7e6   : > { %v3198_v60 = vpop.f32.mrb[82].mxu0 }
 0x7e7   : > { %v5842_v33 = vpop.f32.mrb[83].mxu0  ;;  %v3230_v41 = vsel %vm1430_vm5, %v3208_v34, -inf }
 0x7e8   : > { %3231 = vmax.xlane.f32.xlu0 %v3230_v41 }
 0x7f5   : > { %3545 = vrot.lane.b32.xlu1 %v6939_v37, %s6534_s8 }
 0x7fe   : > { %3497 = vrot.lane.b32.xlu0 %v6936_v35, %s6534_s8 }
 0x859   : > { %v3211_v1 = vpop.xlane.xlu0 %3210 }
 0x85a   : > { %v3233_v57 = vsub.f32 %v3201_v50, %v3211_v1 }
 0x85c   : > { %v3241_v6 = vmul.f32 1.442695, %v3233_v57 }
 0x85d   : > { %v3214_v55 = vpop.xlane.xlu1 %3213 }
 0x85e   : > { %6205 = vpow2.f32 %v3241_v6  ;;  %v3234_v61 = vsub.f32 %v3202_v58, %v3214_v55 }
 0x860   : > { %v3243_v3 = vmul.f32 1.442695, %v3234_v61 }
 0x861   : > { %v3217_v11 = vpop.xlane.xlu0 %3216 }
 0x862   : > { %6207 = vpow2.f32 %v3243_v3  ;;  %v3235_v13 = vsub.f32 %v3203_v43, %v3217_v11 }
 0x864   : > { %v3245_v14 = vmul.f32 1.442695, %v3235_v13 }
 0x865   : > { %v3220_v21 = vpop.xlane.xlu0 %3219 }
 0x866   : > { %6209 = vpow2.f32 %v3245_v14  ;;  %v3236_v23 = vsub.f32 %v3204_v7, %v3220_v21 }
 0x868   : > { %v7400_v29 = vpop.eup %6205  ;;  %v3247_v25 = vmul.f32 1.442695, %v3236_v23 }
 0x869   : > { %v3223_v30 = vpop.xlane.xlu1 %3222  ;;  %v3257_v42 = vsel %vm1430_vm5, %v7400_v29, 0.0 }
 0x86a   : > { %6211 = vpow2.f32 %v3247_v25  ;;  %v3237_v50 = vsub.f32 %v3205_v18, %v3223_v30  ;;  %3258 = vadd.xlane.f32.xlu1 %v3257_v42 }
 0x86c   : > { %v7404_v44 = vpop.eup %6207  ;;  %v3249_v58 = vmul.f32 1.442695, %v3237_v50 }
 0x86d   : > { %v3226_v22 = vpop.xlane.xlu0 %3225  ;;  %v3260_v43 = vsel %vm1430_vm5, %v7404_v44, 0.0 }
 0x86e   : > { %6213 = vpow2.f32 %v3249_v58  ;;  %v3238_v27 = vsub.f32 %v3206_v36, %v3226_v22  ;;  %3261 = vadd.xlane.f32.xlu0 %v3260_v43  ;;  %v3455_v43 = vsel %vm1533_vm4, %v7398_v49, 0 }
 0x870   : > { %v7408_v7 = vpop.eup %6209  ;;  %v3251_v46 = vmul.f32 1.442695, %v3238_v27 }
 0x871   : > { %v3263_v48 = vsel %vm1430_vm5, %v7408_v7, 0.0  ;;  %v3229_v59 = vpop.xlane.xlu1 %3228 }
 0x872   : > { %6215 = vpow2.f32 %v3251_v46  ;;  %3264 = vadd.xlane.f32.xlu1 %v3263_v48  ;;  %v3239_v60 = vsub.f32 %v7387_v47, %v3229_v59 }
 0x874   : > { %v7412_v18 = vpop.eup %6211  ;;  %v3253_v41 = vmul.f32 1.442695, %v3239_v60 }
 0x875   : > { %v3266_v51 = vsel %vm1430_vm5, %v7412_v18, 0.0  ;;  %v3232_v33 = vpop.xlane.xlu0 %3231  ;;  %v3546_v47 = vpop.permute.xlu1 %3545 }
 0x876   : > { %3267 = vadd.xlane.f32.xlu0 %v3266_v51  ;;  %v3240_v1 = vsub.f32 %v3208_v34, %v3232_v33  ;;  %6217 = vpow2.f32 %v3253_v41 }
 0x878   : > { %v7416_v52 = vpop.eup %6213  ;;  %v3255_v57 = vmul.f32 1.442695, %v3240_v1 }
 0x879   : > { %v3269_v36 = vsel %vm1430_vm5, %v7416_v52, 0.0  ;;  %v3498_v34 = vpop.permute.xlu0 %3497 }
 0x87a   : > { %3270 = vadd.xlane.f32.xlu1 %v3269_v36  ;;  %6219 = vpow2.f32 %v3255_v57  ;;  %v3503_v48 = vsel %vm1533_vm4, %v3498_v34, 0  ;;  %v3551_v36 = vsel %vm1533_vm4, %v3546_v47, 0 }
 0x87c   : > { %v7420_v53 = vpop.eup %6215 }
 0x87d   : > { %v3272_v56 = vsel %vm1430_vm5, %v7420_v53, 0.0 }
 0x87e   : > { %3273 = vadd.xlane.f32.xlu0 %v3272_v56 }
 0x880   : > { %v7429_v6 = vpop.eup %6217 }
 0x881   : > { %v3275_v55 = vsel %vm1430_vm5, %v7429_v6, 0.0 }
 0x884   : > { %v7433_v61 = vpop.eup %6219 }
 0x885   : > { %v3278_v3 = vsel %vm1430_vm5, %v7433_v61, 0.0 }
 0x88b   : > { %3641 = vrot.lane.b32.xlu1 %v6945_v39, %s6534_s8 }
 0x894   : > { %3593 = vrot.lane.b32.xlu0 %v6942_v38, %s6534_s8 }
 0x8af   : > { %3276 = vadd.xlane.f32.xlu1 %v3275_v55 }
 0x8b3   : > { %3279 = vadd.xlane.f32.xlu0 %v3278_v3 }
 0x8c0   : > { %3741 = vrot.lane.b32.xlu1 %v6929_v31, %s6535_s6 }
 0x8c4   : > { %3739 = vrot.lane.b32.xlu1 %v6929_v31, %s6536_s11 }
 0x8c8   : > { %3841 = vrot.lane.b32.xlu1 %v6932_v32, %s6535_s6 }
 0x8c9   : > { %3691 = vrot.lane.b32.xlu0 %v6923_v26, %s6535_s6 }
 0x8cc   : > { %3839 = vrot.lane.b32.xlu1 %v6932_v32, %s6536_s11 }
 0x8cd   : > { %3689 = vrot.lane.b32.xlu0 %v6923_v26, %s6536_s11 }
 0x8d0   : > { %3941 = vrot.lane.b32.xlu1 %v6939_v37, %s6535_s6 }
 0x8d1   : > { %3791 = vrot.lane.b32.xlu0 %v6925_v28, %s6535_s6 }
 0x8d4   : > { %3939 = vrot.lane.b32.xlu1 %v6939_v37, %s6536_s11 }
 0x8d5   : > { %3789 = vrot.lane.b32.xlu0 %v6925_v28, %s6536_s11 }
 0x8d8   : > { %4041 = vrot.lane.b32.xlu1 %v6945_v39, %s6535_s6 }
 0x8d9   : > { %3891 = vrot.lane.b32.xlu0 %v6936_v35, %s6535_s6 }
 0x8dc   : > { %4039 = vrot.lane.b32.xlu1 %v6945_v39, %s6536_s11 }
 0x8dd   : > { %3889 = vrot.lane.b32.xlu0 %v6936_v35, %s6536_s11 }
 0x8e0   : > { %4193 = vrot.lane.b32.xlu1 %v6923_v26, %s6537_s27  ;;  %v3407_v26 = vsel %vm1533_vm4, %v7396_v62, 0 }
 0x8e1   : > { %3991 = vrot.lane.b32.xlu0 %v6942_v38, %s6535_s6 }
 0x8e5   : > { %3989 = vrot.lane.b32.xlu0 %v6942_v38, %s6536_s11 }
 0x8f7   : > { %v3259_v11 = vpop.xlane.xlu1 %3258 }
 0x8f8   : > { %6221 = vrcp.f32 %v3259_v11 }
 0x8fb   : > { %v3262_v13 = vpop.xlane.xlu0 %3261 }
 0x8fc   : > { %6223 = vrcp.f32 %v3262_v13 }
 0x8ff   : > { %v3265_v14 = vpop.xlane.xlu1 %3264 }
 0x900   : > { %6225 = vrcp.f32 %v3265_v14 }
 0x902   : > { %v6222_v21 = vpop.eup %6221 }
 0x903   : > { %v3289_v23 = vmul.f32 %v6222_v21, %v7400_v29  ;;  %v3268_v25 = vpop.xlane.xlu0 %3267 }
 0x904   : > { %6227 = vrcp.f32 %v3268_v25 }
 0x905   : > { %v3297_v30 = vpack.c.bf16 %v3289_v23, %v3289_v23 }
 0x906   : > { %v6224_v42 = vpop.eup %6223 }
 0x907   : > { %v3290_v50 = vmul.f32 %v6224_v42, %v7404_v44  ;;  %5846 = vmatmul.mubr.msk.bf16.vlgmr.msra.gmra.mrb[80].mxu1 %vm1529_vm6, %v3297_v30  ;;  %v3271_v58 = vpop.xlane.xlu1 %3270 }
 0x908   : > { %5856 = vmatpush3.bf16.msra.mxu1 %v3407_v26  ;;  %6229 = vrcp.f32 %v3271_v58  ;;  %5857 = vmatprep.mubr.msk.bf16.mxu1 %vm6525_vm1, %v6524_v4 }
 0x909   : > { %v3298_v22 = vpack.c.bf16 %v3290_v50, %v3290_v50  ;;  %5867 = vmatprep.subr.bf16.mxu1 %v6524_v4 }
 0x90a   : > { %v6226_v29 = vpop.eup %6225 }
 0x90b   : > { %v3291_v27 = vmul.f32 %v6226_v29, %v7408_v7  ;;  %5852 = vmatmul.mubr.msk.bf16.vlgmr.msra.gmra.mrb[84].mxu0 %vm1529_vm6, %v3298_v22  ;;  %v3274_v62 = vpop.xlane.xlu0 %3273  ;;  %v3642_v1 = vpop.permute.xlu1 %3641 }
 0x90c   : > { %5862 = vmatpush3.bf16.msra.mxu0 %v3455_v43  ;;  %6231 = vrcp.f32 %v3274_v62  ;;  %5863 = vmatprep.mubr.msk.bf16.mxu0 %vm6525_vm1, %v6524_v4  ;;  %v3647_v57 = vsel %vm1533_vm4, %v3642_v1, 0 }
 0x90d   : > { %v3299_v44 = vpack.c.bf16 %v3291_v27, %v3291_v27  ;;  %5873 = vmatprep.subr.bf16.mxu0 %v6524_v4 }
 0x90e   : > { %v6228_v46 = vpop.eup %6227 }
 0x90f   : > { %v3292_v51 = vmul.f32 %v6228_v46, %v7412_v18  ;;  %5858 = vmatmul.mubr.msk.bf16.vlgmr.msra.gmra.mrb[84].mxu1 %vm1529_vm6, %v3299_v44  ;;  %v3594_v59 = vpop.permute.xlu0 %3593 }
 0x910   : > { %5868 = vmatpush3.bf16.msra.mxu1 %v3503_v48  ;;  %5869 = vmatprep.mubr.msk.bf16.mxu1 %vm6525_vm1, %v6524_v4  ;;  %v3599_v41 = vsel %vm1533_vm4, %v3594_v59, 0 }
 0x911   : > { %v3300_v49 = vpack.c.bf16 %v3292_v51, %v3292_v51  ;;  %5879 = vmatprep.subr.bf16.mxu1 %v6524_v4 }
 0x912   : > { %v6230_v7 = vpop.eup %6229 }
 0x913   : > { %v3293_v56 = vmul.f32 %v6230_v7, %v7416_v52  ;;  %5864 = vmatmul.mubr.msk.bf16.vlgmr.msra.gmra.mrb[88].mxu0 %vm1529_vm6, %v3300_v49 }
 0x914   : > { %5874 = vmatpush3.bf16.msra.mxu0 %v3551_v36  ;;  %5875 = vmatprep.mubr.msk.bf16.mxu0 %vm6525_vm1, %v6524_v4 }
 0x915   : > { %v3301_v18 = vpack.c.bf16 %v3293_v56, %v3293_v56  ;;  %5885 = vmatprep.subr.bf16.mxu0 %v6524_v4 }
 0x916   : > { %v6232_v60 = vpop.eup %6231 }
 0x917   : > { %v3294_v33 = vmul.f32 %v6232_v60, %v7420_v53  ;;  %5870 = vmatmul.mubr.msk.bf16.vlgmr.msra.gmra.mrb[88].mxu1 %vm1529_vm6, %v3301_v18 }
 0x918   : > { %5880 = vmatpush3.bf16.msra.mxu1 %v3599_v41  ;;  %5881 = vmatprep.mubr.msk.bf16.mxu1 %vm6525_vm1, %v6524_v4 }
 0x919   : > { %v3302_v52 = vpack.c.bf16 %v3294_v33, %v3294_v33  ;;  %5891 = vmatprep.subr.bf16.mxu1 %v6524_v4 }
 0x91b   : > { %5876 = vmatmul.mubr.msk.bf16.vlgmr.msra.gmra.mrb[92].mxu0 %vm1529_vm6, %v3302_v52 }
 0x91c   : > { %5886 = vmatpush3.bf16.msra.mxu0 %v3647_v57  ;;  %5887 = vmatprep.mubr.msk.bf16.mxu0 %vm6525_vm1, %v6524_v4 }
 0x91d   : > { %5897 = vmatprep.subr.bf16.mxu0 %v6524_v4 }
 0x93c   : > { %v3277_v53 = vpop.xlane.xlu1 %3276 }
 0x93d   : > { %6233 = vrcp.f32 %v3277_v53 }
 0x940   : > { %v3742_v55 = vpop.permute.xlu1 %3741  ;;  %v3280_v3 = vpop.xlane.xlu0 %3279 }
 0x941   : > { %6235 = vrcp.f32 %v3280_v3 }
 0x944   : > { %v3740_v47 = vpop.permute.xlu1 %3739  ;;  %v3692_v34 = vpop.permute.xlu0 %3691 }
 0x945   : > { %v3697_v42 = vsel %vm1032_vm3, %v3692_v34, 0 }
 0x947   : > { %v6234_v11 = vpop.eup %6233 }
 0x948   : > { %v3295_v13 = vmul.f32 %v6234_v11, %v7429_v6  ;;  %v3842_v14 = vpop.permute.xlu1 %3841  ;;  %v3690_v21 = vpop.permute.xlu0 %3689  ;;  %v3747_v6 = vsel %vm1032_vm3, %v3742_v55, 0 }
 0x949   : > { %v3847_v62 = vsel %vm1032_vm3, %v3842_v14, 0 }
 0x94a   : > { %v3303_v23 = vpack.c.bf16 %v3295_v13, %v3295_v13 }
 0x94b   : > { %v6236_v25 = vpop.eup %6235 }
 0x94c   : > { %v3296_v30 = vmul.f32 %v6236_v25, %v7433_v61  ;;  %v3840_v26 = vpop.permute.xlu1 %3839  ;;  %5882 = vmatmul.mubr.msk.bf16.vlgmr.msra.gmra.mrb[92].mxu1 %vm1529_vm6, %v3303_v23  ;;  %v3792_v50 = vpop.permute.xlu0 %3791 }
 0x94d   : > { %5892 = vmatpush3.bf16.xpose.msra.mxu1 %v3697_v42  ;;  %5893 = vmatprep.mubr.msk.bf16.mxu1 %vm6525_vm1, %v6524_v4  ;;  %v3797_v61 = vsel %vm1032_vm3, %v3792_v50, 0 }
 0x94e   : > { %v3304_v58 = vpack.c.bf16 %v3296_v30, %v3296_v30  ;;  %5903 = vmatprep.subr.bf16.mxu1 %v6524_v4 }
 0x950   : > { %5888 = vmatmul.mubr.msk.bf16.vlgmr.msra.gmra.mrb[96].mxu0 %vm1529_vm6, %v3304_v58  ;;  %v3790_v22 = vpop.permute.xlu0 %3789  ;;  %v3942_v29 = vpop.permute.xlu1 %3941 }
 0x951   : > { %5898 = vmatpush3.bf16.xpose.msra.mxu0 %v3747_v6  ;;  %5899 = vmatprep.mubr.msk.bf16.mxu0 %vm6525_vm1, %v6524_v4  ;;  %v3947_v51 = vsel %vm1032_vm3, %v3942_v29, 0 }
 0x952   : > { %5909 = vmatprep.subr.bf16.mxu0 %v6524_v4 }
 0x954   : > { %5894 = vmatmul.mubr.msk.bf16.vlgmr.msra.gmra.mrb[96].mxu1 %vm1032_vm3, %v3690_v21  ;;  %v3892_v43 = vpop.permute.xlu0 %3891  ;;  %v3940_v27 = vpop.permute.xlu1 %3939 }
 0x955   : > { %5904 = vmatpush3.bf16.xpose.msra.mxu1 %v3797_v61  ;;  %5905 = vmatprep.mubr.msk.bf16.mxu1 %vm6525_vm1, %v6524_v4  ;;  %v3897_v46 = vsel %vm1032_vm3, %v3892_v43, 0 }
 0x956   : > { %5915 = vmatprep.subr.bf16.mxu1 %v6524_v4 }
 0x958   : > { %5900 = vmatmul.mubr.msk.bf16.vlgmr.msra.gmra.mrb[100].mxu0 %vm1032_vm3, %v3740_v47  ;;  %v3890_v44 = vpop.permute.xlu0 %3889  ;;  %v4042_v48 = vpop.permute.xlu1 %4041 }
 0x959   : > { %5910 = vmatpush3.bf16.xpose.msra.mxu0 %v3847_v62  ;;  %5911 = vmatprep.mubr.msk.bf16.mxu0 %vm6525_vm1, %v6524_v4  ;;  %v4047_v56 = vsel %vm1032_vm3, %v4042_v48, 0 }
 0x95a   : > { %5921 = vmatprep.subr.bf16.mxu0 %v6524_v4 }
 0x95c   : > { %5906 = vmatmul.mubr.msk.bf16.vlgmr.msra.gmra.mrb[100].mxu1 %vm1032_vm3, %v3790_v22  ;;  %v3992_v49 = vpop.permute.xlu0 %3991  ;;  %v4040_v7 = vpop.permute.xlu1 %4039 }
 0x95d   : > { %5916 = vmatpush3.bf16.xpose.msra.mxu1 %v3897_v46  ;;  %5917 = vmatprep.mubr.msk.bf16.mxu1 %vm6525_vm1, %v6524_v4  ;;  %v3997_v36 = vsel %vm1032_vm3, %v3992_v49, 0 }
 0x95e   : > { %5927 = vmatprep.subr.bf16.mxu1 %v6524_v4 }
 0x960   : > { %5912 = vmatmul.mubr.msk.bf16.vlgmr.msra.gmra.mrb[104].mxu0 %vm1032_vm3, %v3840_v26  ;;  %v4194_v59 = vpop.permute.xlu1 %4193  ;;  %v3990_v18 = vpop.permute.xlu0 %3989 }
 0x961   : > { %5922 = vmatpush3.bf16.xpose.msra.mxu0 %v3947_v51  ;;  %5923 = vmatprep.mubr.msk.bf16.mxu0 %vm6525_vm1, %v6524_v4  ;;  %v4199_v60 = vsel %vm1533_vm4, %v4194_v59, 0 }
 0x962   : > { %5933 = vmatprep.subr.bf16.mxu0 %v6524_v4 }
 0x964   : > { %5918 = vmatmul.mubr.msk.bf16.vlgmr.msra.gmra.mrb[104].mxu1 %vm1032_vm3, %v3890_v44 }
 0x965   : > { %5928 = vmatpush3.bf16.xpose.msra.mxu1 %v3997_v36  ;;  %5929 = vmatprep.mubr.msk.bf16.mxu1 %vm6525_vm1, %v6524_v4 }
 0x966   : > { %5939 = vmatprep.subr.bf16.mxu1 %v6524_v4 }
 0x968   : > { %5924 = vmatmul.mubr.msk.bf16.vlgmr.msra.gmra.mrb[108].mxu0 %vm1032_vm3, %v3940_v27 }
 0x969   : > { %5934 = vmatpush3.bf16.xpose.msra.mxu0 %v4047_v56  ;;  %5935 = vmatprep.mubr.msk.bf16.mxu0 %vm6525_vm1, %v6524_v4 }
 0x96a   : > { %5945 = vmatprep.subr.bf16.mxu0 %v6524_v4 }
 0x96c   : > { %5930 = vmatmul.mubr.msk.bf16.vlgmr.msra.gmra.mrb[108].mxu1 %vm1032_vm3, %v3990_v18 }
 0x96d   : > { %5940 = vmatpush3.bf16.msra.mxu1 %v4199_v60  ;;  %5941 = vmatprep.mubr.msk.bf16.mxu1 %vm6525_vm1, %v6524_v4 }
 0x96e   : > { %5951 = vmatprep.subr.bf16.mxu1 %v6524_v4 }
 0x970   : > { %5936 = vmatmul.mubr.msk.bf16.vlgmr.msra.gmra.mrb[112].mxu0 %vm1032_vm3, %v4040_v7 }
 0x971   : > { %5947 = vmatprep.mubr.msk.bf16.mxu0 %vm6525_vm1, %v6524_v4 }
 0x9da   : > { %v7543_v33 = vpop.f32.mrb[80].mxu1 }
 0x9db   : > { %v5847_v41 = vpop.f32.mrb[81].mxu1 }
 0x9dc   : > { %v3350_v1 = vpop.f32.mrb[82].mxu1 }
 0x9dd   : > { %v5848_v52 = vpop.f32.mrb[83].mxu1 }
 0x9de   : > { %v7545_v57 = vpop.f32.mrb[84].mxu0 }
 0x9df   : > { %v5853_v53 = vpop.f32.mrb[85].mxu0 }
 0x9e0   : > { %v3398_v55 = vpop.f32.mrb[86].mxu0 }
 0x9e1   : > { %v5854_v3 = vpop.f32.mrb[87].mxu0 }
 0x9e2   : > { %v7547_v47 = vpop.f32.mrb[84].mxu1 }
 0x9e3   : > { %v5859_v34 = vpop.f32.mrb[85].mxu1 }
 0x9e4   : > { %v3446_v11 = vpop.f32.mrb[86].mxu1 }
 0x9e5   : > { %v5860_v13 = vpop.f32.mrb[87].mxu1 }
 0x9e6   : > { %v7549_v14 = vpop.f32.mrb[88].mxu0 }
 0x9e7   : > { %v5865_v21 = vpop.f32.mrb[89].mxu0 }
 0x9e8   : > { %v3494_v23 = vpop.f32.mrb[90].mxu0 }
 0x9e9   : > { %v5866_v25 = vpop.f32.mrb[91].mxu0 }
 0x9ea   : > { %v7551_v30 = vpop.f32.mrb[88].mxu1 }
 0x9eb   : > { %v5871_v42 = vpop.f32.mrb[89].mxu1 }
 0x9ec   : > { %v3542_v26 = vpop.f32.mrb[90].mxu1 }
 0x9ed   : > { %v5872_v50 = vpop.f32.mrb[91].mxu1 }
 0x9ee   : > { %v7553_v58 = vpop.f32.mrb[92].mxu0 }
 0x9ef   : > { %v5877_v6 = vpop.f32.mrb[93].mxu0 }
 0x9f0   : > { %v3590_v22 = vpop.f32.mrb[94].mxu0 }
 0x9f1   : > { %v5878_v29 = vpop.f32.mrb[95].mxu0 }
 0xa1f   : > { %v7555_v61 = vpop.f32.mrb[92].mxu1 }
 0xa20   : > { %v5883_v43 = vpop.f32.mrb[93].mxu1 }
 0xa21   : > { %v3638_v27 = vpop.f32.mrb[94].mxu1 }
 0xa22   : > { %v5884_v62 = vpop.f32.mrb[95].mxu1 }
 0xa23   : > { %v7557_v44 = vpop.f32.mrb[96].mxu0 }
 0xa24   : > { %v5889_v46 = vpop.f32.mrb[97].mxu0 }
 0xa25   : > { %v3686_v48 = vpop.f32.mrb[98].mxu0 }
 0xa26   : > { %v5890_v51 = vpop.f32.mrb[99].mxu0 }
 0xa27   : > { %v3733_v49 = vpop.f32.mrb[96].mxu1 }
 0xa28   : > { %v4089_v7 = vmul.f32 0.35355338, %v3733_v49  ;;  %v5895_v36 = vpop.f32.mrb[97].mxu1 }
 0xa29   : > { %v3736_v56 = vpop.f32.mrb[98].mxu1 }
 0xa2a   : > { %v5896_v59 = vpop.f32.mrb[99].mxu1  ;;  %v4097_v18 = vsel %vm1430_vm5, %v4089_v7, -inf }
 0xa2b   : > { %4098 = vmax.xlane.f32.xlu0 %v4097_v18  ;;  %v3783_v60 = vpop.f32.mrb[100].mxu0 }
 0xa2c   : > { %v4090_v41 = vmul.f32 0.35355338, %v3783_v60  ;;  %v5901_v1 = vpop.f32.mrb[101].mxu0 }
 0xa2d   : > { %v3786_v52 = vpop.f32.mrb[102].mxu0 }
 0xa2e   : > { %v5902_v53 = vpop.f32.mrb[103].mxu0  ;;  %v4100_v55 = vsel %vm1430_vm5, %v4090_v41, -inf }
 0xa2f   : > { %v3833_v3 = vpop.f32.mrb[100].mxu1  ;;  %4101 = vmax.xlane.f32.xlu1 %v4100_v55 }
 0xa30   : > { %v4091_v34 = vmul.f32 0.35355338, %v3833_v3  ;;  %v5907_v11 = vpop.f32.mrb[101].mxu1 }
 0xa31   : > { %v3836_v13 = vpop.f32.mrb[102].mxu1 }
 0xa32   : > { %v5908_v21 = vpop.f32.mrb[103].mxu1  ;;  %v4103_v23 = vsel %vm1430_vm5, %v4091_v34, -inf }
 0xa33   : > { %4104 = vmax.xlane.f32.xlu0 %v4103_v23  ;;  %v3883_v25 = vpop.f32.mrb[104].mxu0 }
 0xa34   : > { %v4092_v42 = vmul.f32 0.35355338, %v3883_v25  ;;  %v5913_v26 = vpop.f32.mrb[105].mxu0 }
 0xa35   : > { %v3886_v50 = vpop.f32.mrb[106].mxu0 }
 0xa36   : > { %v5914_v6 = vpop.f32.mrb[107].mxu0  ;;  %v4106_v22 = vsel %vm1430_vm5, %v4092_v42, -inf }
 0xa37   : > { %v3933_v29 = vpop.f32.mrb[104].mxu1  ;;  %4107 = vmax.xlane.f32.xlu0 %v4106_v22 }
 0xa38   : > { %v7563_v43 = vmul.f32 0.35355338, %v3933_v29  ;;  %v5919_v27 = vpop.f32.mrb[105].mxu1 }
 0xa39   : > { %v3936_v62 = vpop.f32.mrb[106].mxu1 }
 0xa3a   : > { %v5920_v46 = vpop.f32.mrb[107].mxu1  ;;  %v4109_v48 = vsel %vm1430_vm5, %v7563_v43, -inf }
 0xa3b   : > { %4110 = vmax.xlane.f32.xlu1 %v4109_v48  ;;  %v3983_v51 = vpop.f32.mrb[108].mxu0 }
 0xa3c   : > { %v7567_v49 = vmul.f32 0.35355338, %v3983_v51  ;;  %v5925_v36 = vpop.f32.mrb[109].mxu0 }
 0xa3d   : > { %v3986_v56 = vpop.f32.mrb[110].mxu0 }
 0xa3e   : > { %v5926_v59 = vpop.f32.mrb[111].mxu0  ;;  %v4112_v18 = vsel %vm1430_vm5, %v7567_v49, -inf }
 0xa3f   : > { %v4033_v60 = vpop.f32.mrb[108].mxu1  ;;  %4113 = vmax.xlane.f32.xlu0 %v4112_v18 }
 0xa40   : > { %v4095_v1 = vmul.f32 0.35355338, %v4033_v60  ;;  %v5931_v52 = vpop.f32.mrb[109].mxu1 }
 0xa41   : > { %v4036_v53 = vpop.f32.mrb[110].mxu1 }
 0xa42   : > { %v5932_v55 = vpop.f32.mrb[111].mxu1  ;;  %v4115_v3 = vsel %vm1430_vm5, %v4095_v1, -inf }
 0xa43   : > { %4116 = vmax.xlane.f32.xlu1 %v4115_v3  ;;  %v4083_v11 = vpop.f32.mrb[112].mxu0 }
 0xa44   : > { %v4096_v13 = vmul.f32 0.35355338, %v4083_v11  ;;  %v5937_v21 = vpop.f32.mrb[113].mxu0 }
 0xa45   : > { %v4086_v23 = vpop.f32.mrb[114].mxu0 }
 0xa46   : > { %v5938_v25 = vpop.f32.mrb[115].mxu0  ;;  %v4118_v26 = vsel %vm1430_vm5, %v4096_v13, -inf }
 0xa47   : > { %4119 = vmax.xlane.f32.xlu0 %v4118_v26 }
 0xa54   : > { %4289 = vrot.lane.b32.xlu1 %v6925_v28, %s6537_s27 }
 0xa58   : > { %4337 = vrot.lane.b32.xlu1 %v6932_v32, %s6537_s27 }
 0xa5d   : > { %4241 = vrot.lane.b32.xlu0 %v6929_v31, %s6537_s27 }
 0xab8   : > { %v4099_v50 = vpop.xlane.xlu0 %4098 }
 0xab9   : > { %v4121_v6 = vsub.f32 %v4089_v7, %v4099_v50 }
 0xabb   : > { %v4129_v22 = vmul.f32 1.442695, %v4121_v6 }
 0xabc   : > { %v4102_v29 = vpop.xlane.xlu1 %4101 }
 0xabd   : > { %6237 = vpow2.f32 %v4129_v22  ;;  %v4122_v27 = vsub.f32 %v4090_v41, %v4102_v29 }
 0xabf   : > { %v4131_v62 = vmul.f32 1.442695, %v4122_v27 }
 0xac0   : > { %v4105_v46 = vpop.xlane.xlu0 %4104 }
 0xac1   : > { %6239 = vpow2.f32 %v4131_v62  ;;  %v4123_v48 = vsub.f32 %v4091_v34, %v4105_v46 }
 0xac3   : > { %v4133_v51 = vmul.f32 1.442695, %v4123_v48 }
 0xac4   : > { %v4108_v36 = vpop.xlane.xlu0 %4107 }
 0xac5   : > { %6241 = vpow2.f32 %v4133_v51  ;;  %v4124_v28 = vsub.f32 %v4092_v42, %v4108_v36 }
 0xac7   : > { %v7579_v56 = vpop.eup %6237  ;;  %v4135_v32 = vmul.f32 1.442695, %v4124_v28 }
 0xac8   : > { %v4145_v31 = vsel %vm1430_vm5, %v7579_v56, 0.0  ;;  %v4111_v3 = vpop.xlane.xlu1 %4110 }
 0xac9   : > { %6243 = vpow2.f32 %v4135_v32  ;;  %4146 = vadd.xlane.f32.xlu1 %v4145_v31  ;;  %v4125_v11 = vsub.f32 %v7563_v43, %v4111_v3 }
 0xacb   : > { %v7583_v7 = vpop.eup %6239  ;;  %v4137_v25 = vmul.f32 1.442695, %v4125_v11 }
 0xacc   : > { %v4148_v41 = vsel %vm1430_vm5, %v7583_v7, 0.0  ;;  %v4114_v34 = vpop.xlane.xlu0 %4113 }
 0xacd   : > { %4149 = vadd.xlane.f32.xlu0 %v4148_v41  ;;  %v4126_v23 = vsub.f32 %v7567_v49, %v4114_v34  ;;  %6245 = vpow2.f32 %v4137_v25 }
 0xacf   : > { %v7587_v59 = vpop.eup %6241  ;;  %v4139_v50 = vmul.f32 1.442695, %v4126_v23 }
 0xad0   : > { %v4151_v42 = vsel %vm1430_vm5, %v7587_v59, 0.0  ;;  %v4117_v21 = vpop.xlane.xlu1 %4116 }
 0xad1   : > { %4152 = vadd.xlane.f32.xlu1 %v4151_v42  ;;  %v4127_v26 = vsub.f32 %v4095_v1, %v4117_v21  ;;  %6247 = vpow2.f32 %v4139_v50 }
 0xad3   : > { %v7591_v18 = vpop.eup %6243  ;;  %v4141_v6 = vmul.f32 1.442695, %v4127_v26 }
 0xad4   : > { %v4120_v60 = vpop.xlane.xlu0 %4119  ;;  %v4154_v52 = vsel %vm1430_vm5, %v7591_v18, 0.0 }
 0xad5   : > { %4155 = vadd.xlane.f32.xlu0 %v4154_v52  ;;  %v4128_v22 = vsub.f32 %v4096_v13, %v4120_v60  ;;  %6249 = vpow2.f32 %v4141_v6 }
 0xad7   : > { %v4143_v29 = vmul.f32 1.442695, %v4128_v22 }
 0xad8   : > { %v4242_v53 = vpop.permute.xlu0 %4241 }
 0xad9   : > { %v4247_v55 = vsel %vm1533_vm4, %v4242_v53, 0  ;;  %6251 = vpow2.f32 %v4143_v29 }
 0xada   : > { %5946 = vmatpush3.bf16.msra.mxu0 %v4247_v55 }
 0xadb   : > { %5957 = vmatprep.subr.bf16.mxu0 %v6524_v4 }
 0xae2   : > { %4433 = vrot.lane.b32.xlu1 %v6939_v37, %s6537_s27  ;;  %v7603_v37 = vpop.eup %6245 }
 0xae3   : > { %v7605_v27 = vpop.eup %6247 }
 0xae4   : > { %v7609_v43 = vpop.eup %6249  ;;  %v4160_v1 = vsel %vm1430_vm5, %v7605_v27, 0.0 }
 0xae5   : > { %v4163_v49 = vsel %vm1430_vm5, %v7609_v43, 0.0  ;;  %v7615_v13 = vpop.eup %6251 }
 0xae6   : > { %v4166_v62 = vsel %vm1430_vm5, %v7615_v13, 0.0 }
 0xaeb   : > { %4385 = vrot.lane.b32.xlu0 %v6936_v35, %s6537_s27  ;;  %v4157_v35 = vsel %vm1430_vm5, %v7603_v37, 0.0 }
 0xb06   : > { %4158 = vadd.xlane.f32.xlu1 %v4157_v35 }
 0xb0a   : > { %4164 = vadd.xlane.f32.xlu1 %v4163_v49  ;;  %4161 = vadd.xlane.f32.xlu0 %v4160_v1 }
 0xb0e   : > { %4167 = vadd.xlane.f32.xlu0 %v4166_v62 }
 0xb1b   : > { %4529 = vrot.lane.b32.xlu1 %v6945_v39, %s6537_s27 }
 0xb1f   : > { %4587 = vrot.lane.b32.xlu1 %v7367_v2, %s6538_s26 }
 0xb23   : > { %4591 = vrot.lane.b32.xlu1 %v7371_v10, %s6538_s26 }
 0xb24   : > { %4481 = vrot.lane.b32.xlu0 %v6942_v38, %s6537_s27  ;;  %v4290_v38 = vpop.permute.xlu1 %4289 }
 0xb27   : > { %4595 = vrot.lane.b32.xlu1 %v7375_v17, %s6538_s26 }
 0xb28   : > { %4585 = vrot.lane.b32.xlu0 %v7365_v63, %s6538_s26  ;;  %v4338_v39 = vpop.permute.xlu1 %4337 }
 0xb2b   : > { %4599 = vrot.lane.b32.xlu1 %v7379_v45, %s6538_s26 }
 0xb2c   : > { %4589 = vrot.lane.b32.xlu0 %v7369_v8, %s6538_s26 }
 0xb2f   : > { %4619 = vrot.lane.b32.xlu1 %v7545_v57, %s6539_s1 }
 0xb30   : > { %4593 = vrot.lane.b32.xlu0 %v7373_v19, %s6538_s26 }
 0xb33   : > { %4623 = vrot.lane.b32.xlu1 %v7549_v14, %s6539_s1 }
 0xb34   : > { %4597 = vrot.lane.b32.xlu0 %v7377_v40, %s6538_s26 }
 0xb37   : > { %4627 = vrot.lane.b32.xlu1 %v7553_v58, %s6539_s1 }
 0xb38   : > { %4617 = vrot.lane.b32.xlu0 %v7543_v33, %s6539_s1  ;;  %v4295_v33 = vsel %vm1533_vm4, %v4290_v38, 0 }
 0xb3b   : > { %4631 = vrot.lane.b32.xlu1 %v7557_v44, %s6539_s1 }
 0xb3c   : > { %4621 = vrot.lane.b32.xlu0 %v7547_v47, %s6539_s1 }
 0xb40   : > { %4625 = vrot.lane.b32.xlu0 %v7551_v30, %s6539_s1  ;;  %v4343_v30 = vsel %vm1533_vm4, %v4338_v39, 0 }
 0xb44   : > { %4629 = vrot.lane.b32.xlu0 %v7555_v61, %s6539_s1 }
 0xb56   : > { %v4147_v63 = vpop.xlane.xlu1 %4146 }
 0xb57   : > { %6253 = vrcp.f32 %v4147_v63 }
 0xb5a   : > { %v4150_v2 = vpop.xlane.xlu0 %4149 }
 0xb5b   : > { %6255 = vrcp.f32 %v4150_v2 }
 0xb5e   : > { %v4153_v8 = vpop.xlane.xlu1 %4152 }
 0xb5f   : > { %6257 = vrcp.f32 %v4153_v8 }
 0xb61   : > { %v6254_v10 = vpop.eup %6253 }
 0xb62   : > { %v4177_v19 = vmul.f32 %v6254_v10, %v7579_v56  ;;  %v4156_v17 = vpop.xlane.xlu0 %4155  ;;  %v4434_v36 = vpop.permute.xlu1 %4433 }
 0xb63   : > { %6259 = vrcp.f32 %v4156_v17  ;;  %v4439_v56 = vsel %vm1533_vm4, %v4434_v36, 0 }
 0xb64   : > { %v4185_v40 = vpack.c.bf16 %v4177_v19, %v4177_v19 }
 0xb65   : > { %v6256_v45 = vpop.eup %6255 }
 0xb66   : > { %v4178_v57 = vmul.f32 %v6256_v45, %v7583_v7  ;;  %5942 = vmatmul.mubr.msk.bf16.vlgmr.msra.gmra.mrb[112].mxu1 %vm1529_vm6, %v4185_v40  ;;  %v4386_v61 = vpop.permute.xlu0 %4385  ;;  %v6133_v45 = vld [vmem:[%s6869_s29] sm:$0xff]  }
 0xb67   : > { %5952 = vmatpush3.bf16.msra.mxu1 %v4295_v33  ;;  %5953 = vmatprep.mubr.msk.bf16.mxu1 %vm6525_vm1, %v6524_v4  ;;  %v4391_v51 = vsel %vm1533_vm4, %v4386_v61, 0 }
 0xb68   : > { %v4186_v47 = vpack.c.bf16 %v4178_v57, %v4178_v57  ;;  %5963 = vmatprep.subr.bf16.mxu1 %v6524_v4 }
 0xb69   : > { %v6258_v14 = vpop.eup %6257 }
 0xb6a   : > { %v4179_v58 = vmul.f32 %v6258_v14, %v7587_v59  ;;  %5948 = vmatmul.mubr.msk.bf16.vlgmr.msra.gmra.mrb[116].mxu0 %vm1529_vm6, %v4186_v47  ;;  %v6134_v14 = vld [vmem:[%s6869_s29 + $0x8] sm:$0xff]  }
 0xb6b   : > { %5958 = vmatpush3.bf16.msra.mxu0 %v4343_v30  ;;  %5959 = vmatprep.mubr.msk.bf16.mxu0 %vm6525_vm1, %v6524_v4 }
 0xb6c   : > { %v4187_v44 = vpack.c.bf16 %v4179_v58, %v4179_v58  ;;  %5969 = vmatprep.subr.bf16.mxu0 %v6524_v4 }
 0xb6d   : > { %v6260_v46 = vpop.eup %6259 }
 0xb6e   : > { %v4180_v48 = vmul.f32 %v6260_v46, %v7591_v18  ;;  %5954 = vmatmul.mubr.msk.bf16.vlgmr.msra.gmra.mrb[116].mxu1 %vm1529_vm6, %v4187_v44 }
 0xb6f   : > { %5964 = vmatpush3.bf16.msra.mxu1 %v4391_v51  ;;  %5965 = vmatprep.mubr.msk.bf16.mxu1 %vm6525_vm1, %v6524_v4 }
 0xb70   : > { %v4188_v28 = vpack.c.bf16 %v4180_v48, %v4180_v48  ;;  %5975 = vmatprep.subr.bf16.mxu1 %v6524_v4 }
 0xb72   : > { %5960 = vmatmul.mubr.msk.bf16.vlgmr.msra.gmra.mrb[120].mxu0 %vm1529_vm6, %v4188_v28 }
 0xb73   : > { %5970 = vmatpush3.bf16.msra.mxu0 %v4439_v56  ;;  %5971 = vmatprep.mubr.msk.bf16.mxu0 %vm6525_vm1, %v6524_v4 }
 0xb74   : > { %5981 = vmatprep.subr.bf16.mxu0 %v6524_v4 }
 0xb93   : > { %v4159_v32 = vpop.xlane.xlu1 %4158 }
 0xb94   : > { %6261 = vrcp.f32 %v4159_v32 }
 0xb97   : > { %v4165_v31 = vpop.xlane.xlu1 %4164  ;;  %v4162_v7 = vpop.xlane.xlu0 %4161 }
 0xb98   : > { %6263 = vrcp.f32 %v4165_v31 }
 0xb99   : > { %6265 = vrcp.f32 %v4162_v7 }
 0xb9b   : > { %v4168_v41 = vpop.xlane.xlu0 %4167  ;;  %v4530_v11 = vpop.permute.xlu1 %4529 }
 0xb9c   : > { %6267 = vrcp.f32 %v4168_v41  ;;  %v4535_v25 = vsel %vm1533_vm4, %v4530_v11, 0 }
 0xb9e   : > { %v6262_v59 = vpop.eup %6261 }
 0xb9f   : > { %v4181_v34 = vmul.f32 %v6262_v59, %v7603_v37  ;;  %v4482_v42 = vpop.permute.xlu0 %4481  ;;  %v4588_v36 = vpop.permute.xlu1 %4587 }
 0xba0   : > { %v4487_v53 = vsel %vm1533_vm4, %v4482_v42, 0 }
 0xba1   : > { %v4189_v18 = vpack.c.bf16 %v4181_v34, %v4181_v34 }
 0xba2   : > { %v6264_v60 = vpop.eup %6263 }
 0xba3   : > { %v6266_v52 = vpop.eup %6265  ;;  %5966 = vmatmul.mubr.msk.bf16.vlgmr.msra.gmra.mrb[120].mxu1 %vm1529_vm6, %v4189_v18  ;;  %v4183_v3 = vmul.f32 %v6264_v60, %v7609_v43  ;;  %v4586_v46 = vpop.permute.xlu0 %4585 }
 0xba4   : > { %v4182_v55 = vmul.f32 %v6266_v52, %v7605_v27  ;;  %5976 = vmatpush3.bf16.msra.mxu1 %v4487_v53  ;;  %5977 = vmatprep.mubr.msk.bf16.mxu1 %vm6525_vm1, %v6524_v4  ;;  %v4592_v41 = vpop.permute.xlu1 %4591 }
 0xba5   : > { %5987 = vmatprep.subr.bf16.mxu1 %v6524_v4  ;;  %v4191_v26 = vpack.c.bf16 %v4183_v3, %v4183_v3 }
 0xba6   : > { %v4190_v21 = vpack.c.bf16 %v4182_v55, %v4182_v55  ;;  %v6268_v23 = vpop.eup %6267 }
 0xba7   : > { %v4184_v50 = vmul.f32 %v6268_v23, %v7615_v13  ;;  %v4590_v31 = vpop.permute.xlu0 %4589 }
 0xba8   : > { %5972 = vmatmul.mubr.msk.bf16.vlgmr.msra.gmra.mrb[124].mxu0 %vm1529_vm6, %v4190_v21  ;;  %v4596_v34 = vpop.permute.xlu1 %4595 }
 0xba9   : > { %5982 = vmatpush3.bf16.msra.mxu0 %v4535_v25  ;;  %5983 = vmatprep.mubr.msk.bf16.mxu0 %vm6525_vm1, %v6524_v4  ;;  %v4192_v6 = vpack.c.bf16 %v4184_v50, %v4184_v50  ;;  %v4673_v50 = vsel %vm1032_vm3, %v7179_v54, %v4586_v46 }
 0xbaa   : > { %5995 = vmatprep.subr.bf16.mxu0 %v6524_v4 }
 0xbab   : > { %5978 = vmatmul.mubr.msk.bf16.vlgmr.msra.gmra.mrb[124].mxu1 %vm1529_vm6, %v4191_v26  ;;  %v4594_v59 = vpop.permute.xlu0 %4593  ;;  %v4674_v26 = vsel %vm1032_vm3, %v7181_v0, %v4588_v36  ;;  %v4675_v0 = vsel %vm1032_vm3, %v7183_v5, %v4590_v31 }
 0xbac   : > { %5991 = vmatprep.mubr.msk.bf16.mxu1 %vm6525_vm1, %v6524_v4  ;;  %5988 = vmatpush3.bf16.msra.mxu1 %v6133_v45  ;;  %v4600_v18 = vpop.permute.xlu1 %4599  ;;  %v4677_v5 = vsel %vm1032_vm3, %v7187_v12, %v4594_v59 }
 0xbad   : > { %5989 = vmatprep.subr.bf16.mxu1 %v6524_v4 }
 0xbaf   : > { %v4598_v42 = vpop.permute.xlu0 %4597 }
 0xbb0   : > { %5984 = vmatmul.mubr.msk.bf16.vlgmr.msra.gmra.mrb[128].mxu0 %vm1529_vm6, %v4192_v6  ;;  %5990 = vmatpush3.bf16.msra.mxu1 %v6134_v14  ;;  %v4620_v52 = vpop.permute.xlu1 %4619  ;;  %v4680_v14 = vsel %vm1032_vm3, %v7193_v24, %v4600_v18 }
 0xbb1   : > { %5999 = vmatprep.mubr.msk.bf16.mxu0 %vm6525_vm1, %v6524_v4  ;;  %6003 = vmatprep.subr.bf16.mxu1 %v6524_v4  ;;  %v4683_v6 = vsel %vm4681_vm7, %v4674_v26, %v4620_v52 }
 0xbb3   : > { %v4618_v60 = vpop.permute.xlu0 %4617 }
 0xbb4   : > { %v4624_v55 = vpop.permute.xlu1 %4623 }
 0xbb7   : > { %v4622_v53 = vpop.permute.xlu0 %4621 }
 0xbb8   : > { %v4628_v11 = vpop.permute.xlu1 %4627  ;;  %v4684_v54 = vsel %vm4681_vm7, %v4675_v0, %v4622_v53 }
 0xbbb   : > { %v4626_v3 = vpop.permute.xlu0 %4625 }
 0xbbc   : > { %v4632_v23 = vpop.permute.xlu1 %4631 }
 0xbbd   : > { %v4689_v12 = vsel %vm4681_vm7, %v4680_v14, %v4632_v23 }
 0xbbf   : > { %v4630_v21 = vpop.permute.xlu0 %4629 }
 0xc39   : > { %v4235_v22 = vpop.f32.mrb[112].mxu1 }
 0xc3a   : > { %v5943_v29 = vpop.f32.mrb[113].mxu1  ;;  %4649 = vrot.lane.b32.xlu0 %v4235_v22, %s6540_s2  ;;  %v4682_v22 = vsel %vm4681_vm7, %v4673_v50, %v4618_v60 }
 0xc3b   : > { %v4238_v37 = vpop.f32.mrb[114].mxu1 }
 0xc3c   : > { %v5944_v27 = vpop.f32.mrb[115].mxu1 }
 0xc3d   : > { %v4283_v35 = vpop.f32.mrb[116].mxu0 }
 0xc3e   : > { %4651 = vrot.lane.b32.xlu1 %v4283_v35, %s6540_s2  ;;  %v5949_v43 = vpop.f32.mrb[117].mxu0 }
 0xc3f   : > { %v4286_v49 = vpop.f32.mrb[118].mxu0 }
 0xc40   : > { %v5950_v1 = vpop.f32.mrb[119].mxu0  ;;  %v4676_v49 = vsel %vm1032_vm3, %v7185_v9, %v4592_v41  ;;  %v4678_v9 = vsel %vm1032_vm3, %v7189_v16, %v4596_v34  ;;  %v4679_v16 = vsel %vm1032_vm3, %v7191_v20, %v4598_v42  ;;  %v5426_v20 = vld [vmem:[%s7909_s7] ss:$0 sm:$0xff]  ;;  %v6278_v42 = vld [vmem:[#allocation2 + $0x8] sm:$0xff] }
 0xc41   : > { %v4331_v13 = vpop.f32.mrb[116].mxu1  ;;  %v4685_v1 = vsel %vm4681_vm7, %v4676_v49, %v4624_v55 }
 0xc42   : > { %v5955_v62 = vpop.f32.mrb[117].mxu1  ;;  %4653 = vrot.lane.b32.xlu0 %v4331_v13, %s6540_s2 }
 0xc43   : > { %v4334_v38 = vpop.f32.mrb[118].mxu1 }
 0xc44   : > { %v5956_v39 = vpop.f32.mrb[119].mxu1 }
 0xc45   : > { %v4379_v63 = vpop.f32.mrb[120].mxu0 }
 0xc46   : > { %4655 = vrot.lane.b32.xlu1 %v4379_v63, %s6540_s2  ;;  %v5961_v2 = vpop.f32.mrb[121].mxu0 }
 0xc47   : > { %v4382_v8 = vpop.f32.mrb[122].mxu0 }
 0xc48   : > { %v5962_v10 = vpop.f32.mrb[123].mxu0 }
 0xc76   : > { %v4427_v19 = vpop.f32.mrb[120].mxu1 }
 0xc77   : > { %4657 = vrot.lane.b32.xlu0 %v4427_v19, %s6540_s2  ;;  %v5967_v17 = vpop.f32.mrb[121].mxu1  ;;  %v4687_v19 = vsel %vm4681_vm7, %v4678_v9, %v4628_v11 }
 0xc78   : > { %v4430_v40 = vpop.f32.mrb[122].mxu1  ;;  %v4686_v17 = vsel %vm4681_vm7, %v4677_v5, %v4626_v3 }
 0xc79   : > { %v5968_v33 = vpop.f32.mrb[123].mxu1 }
 0xc7b   : > { %v4475_v57 = vpop.f32.mrb[124].mxu0 }
 0xc7c   : > { %4659 = vrot.lane.b32.xlu1 %v4475_v57, %s6540_s2  ;;  %v5973_v47 = vpop.f32.mrb[125].mxu0 }
 0xc7d   : > { %v4478_v30 = vpop.f32.mrb[126].mxu0 }
 0xc7e   : > { %v5974_v58 = vpop.f32.mrb[127].mxu0  ;;  %v4523_v61 = vpop.f32.mrb[124].mxu1  ;;  %v4688_v30 = vsel %vm4681_vm7, %v4679_v16, %v4630_v21 }
 0xc7f   : > { %4661 = vrot.lane.b32.xlu0 %v4523_v61, %s6540_s2  ;;  %v5979_v44 = vpop.f32.mrb[125].mxu1 }
 0xc80   : > { %v4526_v48 = vpop.f32.mrb[126].mxu1 }
 0xc81   : > { %v5980_v51 = vpop.f32.mrb[127].mxu1 }
 0xc83   : > { %v4571_v28 = vpop.f32.mrb[128].mxu0 }
 0xc84   : > { %4663 = vrot.lane.b32.xlu1 %v4571_v28, %s6540_s2  ;;  %v5985_v56 = vpop.f32.mrb[129].mxu0 }
 0xc85   : > { %v4574_v32 = vpop.f32.mrb[130].mxu0 }
 0xc86   : > { %v5986_v7 = vpop.f32.mrb[131].mxu0 }
 0xc87   : > { %v6277_v7 = vld [vmem:[#allocation2] sm:$0xff] }
 0xcac   : > { %v4650_v25 = vpop.permute.xlu0 %4649 }
 0xcad   : > { %v4691_v37 = vsel %vm4690_vm8, %v4682_v22, %v4650_v25  ;;  %v6135_v22 = vld [vmem:[%s6878_s0] sm:$0xff]  }
 0xcae   : > { %5996 = vmatpush3.bf16.msra.mxu0 %v6135_v22 }
 0xcaf   : > { %5997 = vmatprep.subr.bf16.mxu0 %v6524_v4 }
 0xcb0   : > { %v4652_v29 = vpop.permute.xlu1 %4651 }
 0xcb1   : > { %v4692_v27 = vsel %vm4690_vm8, %v4683_v6, %v4652_v29  ;;  %v6136_v29 = vld [vmem:[%s6878_s0 + $0x8] sm:$0xff]   ;;  %s7910_s0 = scalar_lea.vmem [#allocation8], %s6845_s23 }
 0xcb2   : > { %v4707_v35 = vcombine.low %v4691_v37, %v4692_v27  ;;  %5998 = vmatpush3.bf16.msra.mxu0 %v6136_v29  ;;  %v6137_v37 = vld [vmem:[%s6888_s15] sm:$0xff]   ;;  %v6138_v27 = vld [vmem:[%s6888_s15 + $0x8] sm:$0xff]  }
 0xcb3   : > { %v5443_v29 = vld [vmem:[%s737_s22] ss:$0 sm:$0xff] }
 0xcb4   : > { %v4654_v43 = vpop.permute.xlu0 %4653  ;;  %v4715_v63 = vrot.slane %v4707_v35, %v6919_v15 }
 0xcb5   : > { %v4693_v62 = vsel %vm4690_vm8, %v4684_v54, %v4654_v43 }
 0xcb8   : > { %v4656_v13 = vpop.permute.xlu1 %4655 }
 0xcb9   : > { %v4694_v38 = vsel %vm4690_vm8, %v4685_v1, %v4656_v13 }
 0xcba   : > { %v4708_v39 = vcombine.low %v4693_v62, %v4694_v38  ;;  %v5430_v38 = vld [vmem:[%s7910_s0] ss:$0 sm:$0xff] }
 0xcbc   : > { %v4722_v2 = vrot.slane %v4708_v39, %v6919_v15 }
 0xcbe   : > { %v4723_v8 = vcombine.low %v4715_v63, %v4722_v2 }
 0xce9   : > { %v4658_v10 = vpop.permute.xlu0 %4657 }
 0xcea   : > { %v4695_v45 = vsel %vm4690_vm8, %v4686_v17, %v4658_v10  ;;  %v6139_v17 = vld [vmem:[%s6888_s15 + $0x10] sm:$0xff]  }
 0xcee   : > { %v4660_v40 = vpop.permute.xlu1 %4659 }
 0xcef   : > { %v4696_v33 = vsel %vm4690_vm8, %v4687_v19, %v4660_v40  ;;  %v6140_v40 = vld [vmem:[%s6888_s15 + $0x18] sm:$0xff]  }
 0xcf0   : > { %v4724_v57 = vcombine.low %v4695_v45, %v4696_v33  ;;  %v5432_v45 = vld [vmem:[%s620_s17] ss:$0 sm:$0xff] }
 0xcf1   : > { %v4662_v47 = vpop.permute.xlu0 %4661 }
 0xcf2   : > { %v4697_v61 = vsel %vm4690_vm8, %v4688_v30, %v4662_v47  ;;  %v4732_v48 = vrot.slane %v4724_v57, %v6919_v15 }
 0xcf6   : > { %v4664_v58 = vpop.permute.xlu1 %4663 }
 0xcf7   : > { %v4698_v44 = vsel %vm4690_vm8, %v4689_v12, %v4664_v58 }
 0xcf8   : > { %v4725_v46 = vcombine.low %v4697_v61, %v4698_v44 }
 0xcfa   : > { %v4739_v51 = vrot.slane %v4725_v46, %v6919_v15 }
 0xcfc   : > { %v4740_v36 = vcombine.low %v4732_v48, %v4739_v51 }
 0xcfe   : > { %v4743_v28 = vpack.c.bf16 %v4740_v36, %v4723_v8  ;;  %v5431_v8 = vld [vmem:[%s612_s18] ss:$0 sm:$0xff] }
 0xd00   : > { %5992 = vmatmul.mubr.msk.bf16.vlgmr.msra.gmra.mrb[128].mxu1 %vm932_vm2, %v4743_v28 }
 0xd01   : > { %6011 = vmatprep.mubr.msk.bf16.mxu1 %vm6525_vm1, %v6524_v4  ;;  %6004 = vmatpush3.bf16.msra.mxu1 %v6137_v37 }
 0xd02   : > { %6005 = vmatprep.subr.bf16.mxu1 %v6524_v4 }
 0xd05   : > { %6006 = vmatpush3.bf16.msra.mxu1 %v6138_v27 }
 0xd06   : > { %6007 = vmatprep.subr.bf16.mxu1 %v6524_v4 }
 0xd09   : > { %6008 = vmatpush3.bf16.msra.mxu1 %v6139_v17 }
 0xd0a   : > { %6009 = vmatprep.subr.bf16.mxu1 %v6524_v4  ;;  %v5436_v4 = vld [vmem:[%s731_s12] ss:$0 sm:$0xff] }
 0xd0d   : > { %6010 = vmatpush3.bf16.msra.mxu1 %v6140_v40 }
 0xdd3   : > { %v4804_v24 = vpop.f32.mrb[128].mxu1 }
 0xdd4   : > { %v4805_v56 = vadd.f32 %v5426_v20, %v4804_v24  ;;  %v5993_v32 = vpop.f32.mrb[129].mxu1 }
 0xdd5   : > { %v4807_v31 = vpop.f32.mrb[130].mxu1 }
 0xdd6   : > { %v4811_v41 = vadd.f32 %v6277_v7, %v4805_v56  ;;  %v4808_v59 = vadd.f32 %v5426_v20, %v4807_v31  ;;  %v5994_v34 = vpop.f32.mrb[131].mxu1 }
 0xdd8   : > { %v4812_v18 = vadd.f32 %v6278_v42, %v4808_v59  ;;  %v4813_v60 = vsel %vm932_vm2, %v4811_v41, 0.0 }
 0xdd9   : > { %4814 = vadd.xlane.f32.xlu0 %v4813_v60 }
 0xdda   : > { %v4816_v52 = vsel %vm932_vm2, %v4812_v18, 0.0 }
 0xddb   : > { %4817 = vadd.xlane.f32.xlu1 %v4816_v52 }
 0xe66   : > { %v4815_v53 = vpop.xlane.xlu0 %4814 }
 0xe67   : > { %v4820_v55 = vmul.f32 0.03125, %v4815_v53 }
 0xe68   : > { %v4818_v3 = vpop.xlane.xlu1 %4817 }
 0xe69   : > { %v4822_v11 = vsub.f32 %v4811_v41, %v4820_v55  ;;  %v4821_v21 = vmul.f32 0.03125, %v4818_v3 }
 0xe6b   : > { %v4823_v23 = vsub.f32 %v4812_v18, %v4821_v21  ;;  %v4824_v25 = vmul.f32 %v4822_v11, %v4822_v11 }
 0xe6d   : > { %v4826_v26 = vsel %vm932_vm2, %v4824_v25, 0.0  ;;  %v4825_v50 = vmul.f32 %v4823_v23, %v4823_v23 }
 0xe6e   : > { %4827 = vadd.xlane.f32.xlu0 %v4826_v26 }
 0xe6f   : > { %v4829_v6 = vsel %vm932_vm2, %v4825_v50, 0.0  ;;  %v5442_v50 = vld [vmem:[%s734_s25] ss:$0 sm:$0xff] }
 0xe72   : > { %4830 = vadd.xlane.f32.xlu0 %v4829_v6 }
 0xefb   : > { %v4828_v35 = vpop.xlane.xlu0 %4827 }
 0xefc   : > { %v4832_v43 = vmul.f32 0.03125, %v4828_v35 }
 0xefe   : > { %v4834_v49 = vadd.f32 1e-05, %v4832_v43 }
 0xeff   : > { %v4831_v0 = vpop.xlane.xlu0 %4830 }
 0xf00   : > { %6269 = vrsqrt.f32 %v4834_v49  ;;  %v4833_v1 = vmul.f32 0.03125, %v4831_v0 }
 0xf02   : > { %v4835_v54 = vadd.f32 1e-05, %v4833_v1 }
 0xf04   : > { %6271 = vrsqrt.f32 %v4835_v54 }
 0xf0a   : > { %v6270_v13 = vpop.eup %6269 }
 0xf0b   : > { %v4838_v62 = vmul.f32 %v6270_v13, %v4822_v11 }
 0xf0d   : > { %v4847_v63 = vmul.f32 %v5430_v38, %v4838_v62 }
 0xf0e   : > { %v6272_v39 = vpop.eup %6271 }
 0xf0f   : > { %v4839_v2 = vmul.f32 %v6272_v39, %v4823_v23  ;;  %v4856_v9 = vadd.f32 %v5431_v8, %v4847_v63 }
 0xf11   : > { %v4848_v10 = vmul.f32 %v5430_v38, %v4839_v2 }
 0xf13   : > { %v4857_v5 = vadd.f32 %v5431_v8, %v4848_v10 }
 0xf15   : > { %v4858_v19 = vpack.c.bf16 %v4857_v5, %v4856_v9 }
 0xf17   : > { %6000 = vmatmul.mubr.msk.bf16.vlgmr.msra.gmra.mrb[132].mxu0 %vm932_vm2, %v4858_v19 }
 0xfea   : > { %v4919_v33 = vpop.f32.mrb[132].mxu0 }
 0xfeb   : > { %v4920_v57 = vadd.f32 %v5432_v45, %v4919_v33  ;;  %v6001_v47 = vpop.f32.mrb[133].mxu0 }
 0xfec   : > { %v4922_v14 = vpop.f32.mrb[134].mxu0 }
 0xfed   : > { %v4923_v16 = vadd.f32 %v5432_v45, %v4922_v14  ;;  %v6002_v12 = vpop.f32.mrb[135].mxu0  ;;  %v4926_v30 = vmax.f32 %v4920_v57, 0.0 }
 0xfef   : > { %v4927_v58 = vmax.f32 %v4923_v16, 0.0 }
 0xff1   : > { %v4928_v61 = vpack.c.bf16 %v4927_v58, %v4926_v30 }
 0xff3   : > { %6012 = vmatmul.mubr.msk.bf16.vlgmr.msra.gmra.mrb[132].mxu1 %vm4968_vm9, %v4928_v61 }
0x10c6   : > { %v5006_v44 = vpop.f32.mrb[132].mxu1 }
0x10c7   : > { %v5007_v46 = vadd.f32 %v5436_v4, %v5006_v44  ;;  %v6013_v48 = vpop.f32.mrb[133].mxu1 }
0x10c8   : > { %v5009_v51 = vpop.f32.mrb[134].mxu1 }
0x10c9   : > { %v5013_v36 = vadd.f32 %v5007_v46, %v4856_v9  ;;  %v5010_v28 = vadd.f32 %v5436_v4, %v5009_v51  ;;  %v6014_v20 = vpop.f32.mrb[135].mxu1 }
0x10cb   : > { %v5014_v24 = vadd.f32 %v5010_v28, %v4857_v5  ;;  %v5015_v56 = vsel %vm932_vm2, %v5013_v36, 0.0 }
0x10cc   : > { %5016 = vadd.xlane.f32.xlu1 %v5015_v56 }
0x10cd   : > { %v5018_v32 = vsel %vm932_vm2, %v5014_v24, 0.0 }
0x10ce   : > { %5019 = vadd.xlane.f32.xlu0 %v5018_v32 }
0x1159   : > { %v5017_v31 = vpop.xlane.xlu1 %5016 }
0x115a   : > { %v5021_v7 = vmul.f32 0.03125, %v5017_v31 }
0x115b   : > { %v5020_v41 = vpop.xlane.xlu0 %5019 }
0x115c   : > { %v5023_v59 = vsub.f32 %v5013_v36, %v5021_v7  ;;  %v5022_v34 = vmul.f32 0.03125, %v5020_v41 }
0x115e   : > { %v5024_v42 = vsub.f32 %v5014_v24, %v5022_v34  ;;  %v5025_v18 = vmul.f32 %v5023_v59, %v5023_v59 }
0x1160   : > { %v5027_v60 = vsel %vm932_vm2, %v5025_v18, 0.0  ;;  %v5026_v52 = vmul.f32 %v5024_v42, %v5024_v42 }
0x1161   : > { %5028 = vadd.xlane.f32.xlu1 %v5027_v60 }
0x1162   : > { %v5030_v53 = vsel %vm932_vm2, %v5026_v52, 0.0 }
0x1163   : > { %5031 = vadd.xlane.f32.xlu0 %v5030_v53 }
0x11ee   : > { %v5029_v55 = vpop.xlane.xlu1 %5028 }
0x11ef   : > { %v5033_v3 = vmul.f32 0.03125, %v5029_v55 }
0x11f0   : > { %v5032_v11 = vpop.xlane.xlu0 %5031 }
0x11f1   : > { %v5035_v21 = vadd.f32 1e-05, %v5033_v3  ;;  %v5034_v23 = vmul.f32 0.03125, %v5032_v11 }
0x11f3   : > { %6273 = vrsqrt.f32 %v5035_v21  ;;  %v5036_v25 = vadd.f32 1e-05, %v5034_v23 }
0x11f5   : > { %6275 = vrsqrt.f32 %v5036_v25 }
0x11fd   : > { %v6274_v26 = vpop.eup %6273 }
0x11fe   : > { %v5039_v6 = vmul.f32 %v6274_v26, %v5023_v59 }
0x11ff   : > { %v6276_v22 = vpop.eup %6275 }
0x1200   : > { %v5048_v37 = vmul.f32 %v5442_v50, %v5039_v6  ;;  %v5040_v27 = vmul.f32 %v6276_v22, %v5024_v42  ;;  %5064 = sbr.rel (%p5444_p5) target bundleno = 4621 (0x120d), region = 104 }
0x1202   : > { %v5057_v35 = vadd.f32 %v5443_v29, %v5048_v37  ;;  %v5049_v43 = vmul.f32 %v5442_v50, %v5040_v27 }
0x1204   : > { %5059 = vst.msk [vmem:[#allocation2] sm:$0xff] %vm932_vm2, %v5057_v35  ;;  %v5058_v49 = vadd.f32 %v5443_v29, %v5049_v43  ;;  %v5074_v0 = vrot.slane (!%p5444_p5), %v5057_v35, %v6919_v15  ;;  %v5067_v1 = vcombine.high (!%p5444_p5), %v5057_v35, %v5057_v35 }
0x1206   : > { %5060 = vst.msk [vmem:[#allocation2 + $0x8] sm:$0xff] %vm932_vm2, %v5058_v49  ;;  %v5091_v54 = vrot.slane (!%p5444_p5), %v5058_v49, %v6919_v15  ;;  %v5084_v13 = vcombine.high (!%p5444_p5), %v5058_v49, %v5058_v49  ;;  %v5082_v62 = vcombine.high (!%p5444_p5), %v5074_v0, %v5074_v0  ;;  %v5081_v38 = vrot.slane (!%p5444_p5), %v5067_v1, %v6919_v15 }
0x1207   : > { %5110 = vst.msk [vmem:[#allocation11] sm:$0x3] %vm5109_vm10, %v5074_v0 }
0x1208   : > { %5114 = vst.msk [vmem:[#allocation11 + $0x8] sm:$0x3] %vm5109_vm10, %v5091_v54  ;;  %v5099_v39 = vcombine.high %v5091_v54, %v5091_v54  ;;  %v5098_v63 = vrot.slane %v5084_v13, %v6919_v15  ;;  %5111 = vst.msk [vmem:[#allocation11 + $0x2] sm:$0x3] %vm5109_vm10, %v5082_v62  ;;  %v5083_v2 = vcombine.high %v5081_v38, %v5081_v38 }
0x1209   : > { %5112 = vst.msk [vmem:[#allocation11 + $0x4] sm:$0x3] %vm5109_vm10, %v5081_v38 }
0x120a   : > { %5115 = vst.msk [vmem:[#allocation11 + $0xa] sm:$0x3] %vm5109_vm10, %v5099_v39  ;;  %5116 = vst.msk [vmem:[#allocation11 + $0xc] sm:$0x3] %vm5109_vm10, %v5098_v63  ;;  %v5100_v8 = vcombine.high %v5098_v63, %v5098_v63 }
0x120b   : > { %5113 = vst.msk [vmem:[#allocation11 + $0x6] sm:$0x3] %vm5109_vm10, %v5083_v2 }
0x120c   : > { %5117 = vst.msk [vmem:[#allocation11 + $0xe] sm:$0x3] %vm5109_vm10, %v5100_v8 }
0x120d PF: > { %p6055_p3 = scmp.eq.s32.totalorder %s6648_s19, 1  ;;  %s6541_s16 = smov [#allocation11]  }
0x120e   : > { %s5127_s28 = sshll.u32 %s6541_s16, 4  ;;  %s5128_s28 = int_to_ptr.vmem [resolvable:$true] %s5127_s28 }
0x120f   : > { %s6425_s25 = scalar_lea.vmem %s5128_s28, 256  ;;  %p6432_p13 = scmp.lt.s32.totalorder %s5128_s28, %s5128_s28 }
0x1210   : > { %p6426_p12 = scmp.ne.s32.totalorder %s5128_s28, %s6425_s25  ;;  %p6433_p11 = scmp.lt.s32.totalorder %s6425_s25, %s6425_s25 }
0x1212   : > { %p6427_p10 = pnand %p6426_p12, %p6055_p3  ;;  %p6434_p0 = por %p6433_p11, %p6432_p13 }
0x1214   : > { %p6428_p8 = pneg %p6427_p10 }
0x1216   : > { %p6435_p2 = pnand %p6434_p0, %p6428_p8 }
0x1218   : > { %6438 = shalt.err (!%p6435_p2)
}
0x1219   : > { %s7914_s21 = sld [smem:[#allocation32_spill]] }
0x121f   : > { %s6439_s8 = scalar_lea.hbm %s7914_s21, 256 }
0x1220   : > { %p6440_p6 = scmp.ne.s32.totalorder %s7914_s21, %s6439_s8  ;;  %p6445_p9 = scmp.lt.u32.totalorder %s6439_s8, %s7914_s21 }
0x1222   : > { %p6441_p1 = pnand %p6440_p6, %p6055_p3 }
0x1224   : > { %p6442_p7 = pneg %p6441_p1 }
0x1226   : > { %p6447_p4 = pnand %p6445_p9, %p6442_p7 }
0x1228   : > { %6450 = shalt.err (!%p6447_p4)
}
0x1229   : > { %s6542_s1 = smov 32   ;;  %s6543_s2 = smov 2  }
0x122a   : > { %6030 = dma.vmem_to_hbm [thread:$0]  (%p6055_p3), %s5128_s28, 256, %s7914_s21, [#allocation5], %s6542_s1, %s6542_s1, %s6543_s2  }
0x122b   : > { %6488 = dma.done.wait (%p6055_p3), [#allocation5], 256  }
0x122c   : > { %6490 = vsyncadd (%p6055_p3), [#allocation5], 4294967040 }
0x122d PF: > { %s7915_s7 = sld [smem:[#allocation18_spill]]  ;;  %s7916_s0 = sld [smem:[#allocation16_spill]] }
0x122e   : > { %s7917_s15 = sld [smem:[#allocation20_spill]]  ;;  %s7918_s16 = sld [smem:[#allocation17_spill]] }
0x122f   : > { %s7919_s17 = sld [smem:[#allocation19_spill]]  ;;  %s7920_s29 = smov %s6497_s30 }
0x1233   : > { %s27_s18 = sadd.s32 1, %s7915_s7   ;;  %s7921_s30 = smov %s7916_s0 }
0x1234   : > { %p24_p5 = scmp.ge.s32.totalorder %s27_s18, 4  }
0x1236   :  { %26 = sbr.rel (!%p24_p5) target bundleno = 18 (0x12), region = 180 }
0x123d   :  { %5143 = vsyncpa [#allocation4], 1 }
0x123e   :  { %5145 = vsyncpa [#allocation4 + $0x1], 1 }
0x123f   :  { %5146 = vsyncpa [#allocation7], 1 }
0x1240   :  { %5147 = vsyncpa [#allocation5], 1 }
0x1241   :  { %5149 = vsyncpa [#allocation5 + $0x1], 1 }

</bundles_post_ra>
